<compile_context>
chip_gen: v6e
topology: v6e:2x2x1
jax: 0.10.0
libtpu: 0.0.40
codegen_flags: <defaults>
</compile_context>

<pallas_src>
import numpy as np
import jax
import jax.numpy as jnp
from jax import lax
from jax.experimental import pallas as pl
from jax.experimental.pallas import tpu as pltpu


def _round_up(x, m):
    return (x + m - 1) // m * m


# ---------------------------------------------------------------------------
# In-kernel BatchNorm (training-mode batch statistics on the f32 dot result).
# ---------------------------------------------------------------------------
def _bn_scale_shift(y, g, be, m_true, n_true, eps, mode):
    if mode == "channel":
        inv = 1.0 / float(m_true)
        s1 = jnp.sum(y, axis=0, keepdims=True)
        s2 = jnp.sum(y * y, axis=0, keepdims=True)
    else:  # "global" (BatchNorm2d(1)); padded columns are exactly zero.
        inv = 1.0 / float(m_true * n_true)
        s1 = jnp.sum(y)
        s2 = jnp.sum(y * y)
    mean = s1 * inv
    var = jnp.maximum(s2 * inv - mean * mean, 0.0)   # cancellation-safe
    scale = g * lax.rsqrt(var + eps)
    shift = be - mean * scale
    return y * scale + shift


# ---------------------------------------------------------------------------
# Fused single-matmul kernel:  out = epilogue(A @ W)
#   epilogue: optional BN (channel/global stats), bias, residual add, ReLU.
# Single K tile (K <= 512 everywhere in this model) -> no accumulator scratch.
# ---------------------------------------------------------------------------
def _make_single_kernel(bn, relu, has_bias, has_res, m_true, n_true, eps):
    def kernel(*refs):
        it = iter(refs)
        a_ref = next(it)
        w_ref = next(it)
        g_ref = next(it) if bn is not None else None
        be_ref = next(it) if bn is not None else None
        bias_ref = next(it) if has_bias else None
        res_ref = next(it) if has_res else None
        o_ref = next(it)

        y = jnp.dot(a_ref[...], w_ref[...], preferred_element_type=jnp.float32)
        if bn is not None:
            y = _bn_scale_shift(y, g_ref[...], be_ref[...],
                                m_true, n_true, eps, bn)
        if has_bias:
            y = y + bias_ref[...]
        if has_res:
            y = y + res_ref[...].astype(jnp.float32)
        if relu:
            y = jnp.maximum(y, 0.0)
        o_ref[...] = y.astype(o_ref.dtype)

    return kernel


# ---------------------------------------------------------------------------
# Fused dual-matmul kernel (conv3 + downsample of a bottleneck):
#   out = relu( BN1(A1 @ W1) + BN2(A2 @ W2) )
# Keeps the residual path entirely in VMEM (no HBM round trip).
# ---------------------------------------------------------------------------
def _make_dual_kernel(relu, m_true, eps):
    def kernel(a1_ref, w1_ref, g1_ref, b1_ref,
               a2_ref, w2_ref, g2_ref, b2_ref, o_ref):
        y1 = jnp.dot(a1_ref[...], w1_ref[...],
                     preferred_element_type=jnp.float32)
        y2 = jnp.dot(a2_ref[...], w2_ref[...],
                     preferred_element_type=jnp.float32)
        y1 = _bn_scale_shift(y1, g1_ref[...], b1_ref[...],
                             m_true, None, eps, "channel")
        y2 = _bn_scale_shift(y2, g2_ref[...], b2_ref[...],
                             m_true, None, eps, "channel")
        y = y1 + y2
        if relu:
            y = jnp.maximum(y, 0.0)
        o_ref[...] = y.astype(o_ref.dtype)

    return kernel


_VMEM_SPEC = pl.BlockSpec(memory_space=pltpu.MemorySpace.VMEM)


def fused_matmul(a, w_p, *, gamma_p=None, beta_p=None, bias_p=None,
                 residual=None, bn=None, relu=False, n_true=None,
                 out_dtype=jnp.bfloat16, eps=1e-5):
    """(M,K) @ pre-padded (Kp,Np) bf16 weight, with fused BN/bias/res/ReLU.

    gamma_p/beta_p/bias_p are pre-padded (1, Np) f32 (padded lanes are 0, so
    padded output columns are exactly 0).  Single grid step, whole-array VMEM
    blocks (M <= 128, Kp <= 512, Np <= 512 for this model)."""
    M, K = a.shape
    Kp, Np = w_p.shape
    assert Kp % 128 == 0 and Np % 128 == 0 and Kp >= K

    a_p = a.astype(jnp.bfloat16)
    if Kp != K:
        a_p = jnp.pad(a_p, ((0, 0), (0, Kp - K)))

    inputs = [a_p, w_p]
    if bn is not None:
        inputs += [gamma_p, beta_p]
    if bias_p is not None:
        inputs.append(bias_p)
    if residual is not None:
        r = residual.astype(jnp.bfloat16)
        if r.shape[1] != Np:
            r = jnp.pad(r, ((0, 0), (0, Np - r.shape[1])))
        inputs.append(r)

    kernel = _make_single_kernel(bn, relu, bias_p is not None,
                                 residual is not None, M, n_true, eps)
    return pl.pallas_call(
        kernel,
        out_shape=jax.ShapeDtypeStruct((M, Np), out_dtype),
        in_specs=[_VMEM_SPEC] * len(inputs),
        out_specs=_VMEM_SPEC,
    )(*inputs)


def fused_dual_matmul(a1, w1_p, g1_p, b1_p, a2, w2_p, g2_p, b2_p, *,
                      relu=True, out_dtype=jnp.bfloat16, eps=1e-5):
    """relu( BN(a1 @ w1) + BN(a2 @ w2) ) in a single kernel launch."""
    M, K1 = a1.shape
    M2, K2 = a2.shape
    Kp1, Np = w1_p.shape
    Kp2, Np2 = w2_p.shape
    assert M == M2 and Np == Np2

    a1_p = a1.astype(jnp.bfloat16)
    if Kp1 != K1:
        a1_p = jnp.pad(a1_p, ((0, 0), (0, Kp1 - K1)))
    a2_p = a2.astype(jnp.bfloat16)
    if Kp2 != K2:
        a2_p = jnp.pad(a2_p, ((0, 0), (0, Kp2 - K2)))

    kernel = _make_dual_kernel(relu, M, eps)
    return pl.pallas_call(
        kernel,
        out_shape=jax.ShapeDtypeStruct((M, Np), out_dtype),
        in_specs=[_VMEM_SPEC] * 8,
        out_specs=_VMEM_SPEC,
    )(a1_p, w1_p, g1_p, b1_p, a2_p, w2_p, g2_p, b2_p)


# ------------------------------ layer helpers ------------------------------

def conv2d_bn(x_nhwc, cp, *, kh, kw, cout, stride=1, padding=0, relu=False,
              residual=None, bn="channel"):
    """Conv (NHWC activations, pre-padded matmul weight) via im2col + one
    fused Pallas matmul; BN (+ReLU) (+residual) fused into the epilogue."""
    B, H, W, cin = x_nhwc.shape
    x = x_nhwc.astype(jnp.bfloat16)
    if padding:
        x = jnp.pad(x, ((0, 0), (padding, padding), (padding, padding), (0, 0)))
    Hp, Wp = x.shape[1], x.shape[2]
    Ho = (Hp - kh) // stride + 1
    Wo = (Wp - kw) // stride + 1
    if kh == 1 and kw == 1:
        cols = x[:, ::stride, ::stride, :][:, :Ho, :Wo, :].reshape(B * Ho * Wo, cin)
    else:
        # TODO(synk): im2col stays in XLA (jit-fused); in-kernel tap
        # accumulation skipped (tiny non-aligned NHWC reshapes in Mosaic).
        patches = [x[:, i:i + stride * Ho:stride, j:j + stride * Wo:stride, :]
                   for i in range(kh) for j in range(kw)]
        cols = jnp.stack(patches, axis=3).reshape(B * Ho * Wo, kh * kw * cin)
    res = None
    if residual is not None:
        res = residual.reshape(B * Ho * Wo, -1)
    out = fused_matmul(cols, cp['w'], gamma_p=cp['g'], beta_p=cp['b'],
                       residual=res, bn=bn, relu=relu, n_true=cout)
    out = out.reshape(B, Ho, Wo, -1)
    if out.shape[-1] != cout:
        out = out[..., :cout]
    return out


def avg_pool_3x3_s2_p1(x_nhwc):
    # PyTorch AvgPool2d(3, stride=2, padding=1), count_include_pad=True.
    # TODO(synk): pooling kept as an XLA reduce_window (tiny, not Pallas).
    s = lax.reduce_window(x_nhwc.astype(jnp.float32), 0.0, lax.add,
                          (1, 3, 3, 1), (1, 2, 2, 1),
                          ((0, 0), (1, 1), (1, 1), (0, 0)))
    return (s * (1.0 / 9.0)).astype(jnp.bfloat16)


def make_sinc_filters(out_channels, kernel_size, sample_rate=16000):
    if kernel_size % 2 == 0:
        kernel_size = kernel_size + 1
    NFFT = 2048
    f = int(sample_rate / 2) * np.linspace(0, 1, int(NFFT / 2) + 1)
    fmel = 2595 * np.log10(1 + f / 700)
    filmel = np.linspace(np.min(fmel), np.max(fmel), out_channels + 1)
    filhz = 700 * (10 ** (filmel / 2595) - 1)
    hsupp = np.arange(-(kernel_size - 1) / 2, (kernel_size - 1) / 2 + 1)
    ham = np.hamming(kernel_size)
    band_pass = np.zeros((out_channels, kernel_size), dtype=np.float64)
    for i in range(out_channels):
        fmin, fmax = filhz[i], filhz[i + 1]
        h_high = (2 * fmax / sample_rate) * np.sinc(2 * fmax * hsupp / sample_rate)
        h_low = (2 * fmin / sample_rate) * np.sinc(2 * fmin * hsupp / sample_rate)
        band_pass[i, :] = ham * (h_high - h_low)
    return jnp.asarray(band_pass, jnp.float32), kernel_size


def sinc_conv_bn(x, p, *, filts, kernel_size, stride=32):
    """1-D SincConv (no padding) with the following BatchNorm2d(1) fused into
    the matmul epilogue.  x: (B, L) -> (B, L_out, filts)."""
    B, L = x.shape
    L_out = (L - kernel_size) // stride + 1
    idx = jnp.arange(L_out)[:, None] * stride + jnp.arange(kernel_size)[None, :]
    cols = x[:, idx].reshape(B * L_out, kernel_size)
    out = fused_matmul(cols, p['w'], gamma_p=p['g'], beta_p=p['b'],
                       bn="global", relu=False, n_true=filts)
    return out.reshape(B, L_out, -1)[..., :filts]


# ------------------------------ parameters ------------------------------

class KeyGen:
    def __init__(self, key):
        self.key = key
        self.i = 0

    def __call__(self):
        self.i += 1
        return jax.random.fold_in(self.key, self.i)


def kaiming_conv(key, cout, cin, kh, kw):
    # kaiming_normal_(mode='fan_out', relu); stored HWIO.
    fan_out = cout * kh * kw
    std = float(np.sqrt(2.0 / fan_out))
    return jax.random.normal(key, (kh, kw, cin, cout), jnp.float32) * std


def _prep_w(w_km, cout):
    """(K, cout) f32 weight -> (Kp, Np) bf16 padded once at init time."""
    K = w_km.shape[0]
    Kp = _round_up(max(K, 128), 128)
    Np = _round_up(max(cout, 128), 128)
    return jnp.pad(w_km.astype(jnp.bfloat16), ((0, Kp - K), (0, Np - cout)))


def _prep_vec(v, cout):
    """scalar or (cout,) vector -> (1, Np) f32 padded once at init time."""
    v = jnp.asarray(v, jnp.float32).reshape(1, -1)
    if v.shape[1] == 1 and cout > 1:
        v = jnp.broadcast_to(v, (1, cout))
    Np = _round_up(max(cout, 128), 128)
    return jnp.pad(v, ((0, 0), (0, Np - cout)))


def prep_conv(w_hwio, gamma, beta):
    kh, kw, cin, cout = w_hwio.shape
    return {'w': _prep_w(w_hwio.reshape(kh * kw * cin, cout), cout),
            'g': _prep_vec(gamma, cout),
            'b': _prep_vec(beta, cout)}


def make_block_params(kg, inplanes, planes_l, scales, stride, expansion=4):
    bp = planes_l           # groups == 1 -> bottleneck_planes == planes
    cs = bp // scales
    p = {}
    p['conv1'] = prep_conv(kaiming_conv(kg(), bp, inplanes, 1, 1),
                           jnp.ones((bp,)), jnp.zeros((bp,)))
    p['conv2'] = [prep_conv(kaiming_conv(kg(), cs, cs, 3, 3),
                            jnp.ones((cs,)), jnp.zeros((cs,)))
                  for _ in range(scales - 1)]
    cout = planes_l * expansion
    p['conv3'] = prep_conv(kaiming_conv(kg(), cout, bp, 1, 1),
                           jnp.ones((cout,)), jnp.zeros((cout,)))
    if stride != 1 or inplanes != cout:
        p['down'] = prep_conv(kaiming_conv(kg(), cout, inplanes, 1, 1),
                              jnp.ones((cout,)), jnp.zeros((cout,)))
    return p


def make_layer_params(kg, inplanes, planes_l, blocks, stride, scales):
    ps = [make_block_params(kg, inplanes, planes_l, scales, stride)]
    inplanes = planes_l * 4
    for _ in range(1, blocks):
        ps.append(make_block_params(kg, inplanes, planes_l, scales, 1))
    return ps, inplanes


def init_res2net_params(key, d_args, width=16, scales=4):
    kg = KeyGen(key)
    planes = [int(width * scales * 2 ** i) for i in range(4)]
    params = {}
    filts = d_args['filts']
    filters, _ = make_sinc_filters(filts, d_args['first_conv'])
    params['sinc'] = {'w': _prep_w(filters.T, filts),
                      'g': _prep_vec(jnp.ones((1,)), filts),       # bn0 (BN2d(1))
                      'b': _prep_vec(jnp.zeros((1,)), filts)}
    params['conv1'] = prep_conv(kaiming_conv(kg(), planes[0], 1, 7, 7),
                                jnp.ones((planes[0],)), jnp.zeros((planes[0],)))
    inplanes = planes[0]
    params['layer1'], inplanes = make_layer_params(
        kg, inplanes, planes[0], d_args['layers'][0], 1, scales)
    params['layer2'], inplanes = make_layer_params(
        kg, inplanes, planes[1], d_args['layers'][1], 2, scales)
    fc_in = planes[1] * 4
    nc = d_args['num_classes']
    bound = 1.0 / float(np.sqrt(fc_in))
    fc_w = jax.random.uniform(kg(), (nc, fc_in), jnp.float32, -bound, bound)
    fc_b = jax.random.uniform(kg(), (nc,), jnp.float32, -bound, bound)
    params['fc'] = {'w': _prep_w(fc_w.T, nc), 'b': _prep_vec(fc_b, nc)}
    return params


# ------------------------------ forward ------------------------------

def build_forward(d_args, width=16, scales=4):
    """Builds a jitted forward; architecture constants stay static Python."""
    planes = [int(width * scales * 2 ** i) for i in range(4)]
    layers = d_args['layers']
    filts = d_args['filts']
    ksz = d_args['first_conv']
    if ksz % 2 == 0:
        ksz += 1
    expansion = 4

    def layer_cfg(inplanes, planes_l, blocks, stride):
        cfgs = []
        for b in range(blocks):
            s = stride if b == 0 else 1
            cfgs.append(dict(stride=s, inplanes=inplanes, planes=planes_l,
                             has_down=(s != 1 or inplanes != planes_l * expansion)))
            inplanes = planes_l * expansion
        return cfgs, inplanes

    inpl = planes[0]
    cfg1, inpl = layer_cfg(inpl, planes[0], layers[0], 1)
    cfg2, inpl = layer_cfg(inpl, planes[1], layers[1], 2)

    def bottleneck(x, p, cfg):
        stride = cfg['stride']
        bp = cfg['planes']
        cs = bp // scales
        cout = cfg['planes'] * expansion
        # conv1 (1x1, maybe strided) + bn1 + relu -> one fused kernel call
        out = conv2d_bn(x, p['conv1'], kh=1, kw=1, cout=bp, stride=stride,
                        relu=True)
        xs = [out[..., s * cs:(s + 1) * cs] for s in range(scales)]
        ys = [xs[0]]
        for s in range(1, scales):
            inp = xs[s] if s == 1 else xs[s] + ys[-1]
            # 3x3 conv + bn2 + relu -> one fused kernel call per scale branch
            ys.append(conv2d_bn(inp, p['conv2'][s - 1], kh=3, kw=3, cout=cs,
                                padding=1, relu=True))
        cat = jnp.concatenate(ys, axis=-1)
        B_, Ho, Wo, _ = cat.shape
        M = B_ * Ho * Wo
        if cfg['has_down']:
            # conv3+bn3 and downsample-conv+bn fused into ONE kernel:
            # relu( BN3(cat @ W3) + BNd(x_strided @ Wd) )
            x_s = x[:, ::stride, ::stride, :][:, :Ho, :Wo, :] if stride > 1 else x
            y = fused_dual_matmul(
                cat.reshape(M, bp),
                p['conv3']['w'], p['conv3']['g'], p['conv3']['b'],
                x_s.reshape(M, cfg['inplanes']),
                p['down']['w'], p['down']['g'], p['down']['b'],
                relu=True)
            y = y.reshape(B_, Ho, Wo, -1)
            if y.shape[-1] != cout:
                y = y[..., :cout]
        else:
            # conv3 + bn3 + residual add + relu -> one fused kernel call
            y = conv2d_bn(cat, p['conv3'], kh=1, kw=1, cout=cout, relu=True,
                          residual=x)
        return y

    def forward(params, x):
        # SincConv (matmul) + BatchNorm2d(1) fused into one kernel call
        x = sinc_conv_bn(x, params['sinc'], filts=filts, kernel_size=ksz,
                         stride=32)                       # (B, L_out, filts)
        x = jnp.transpose(x, (0, 2, 1))[..., None]        # NHWC (B, filts, L, 1)
        # 7x7 stride-2 stem conv + bn1 + relu fused into one kernel call
        x = conv2d_bn(x, params['conv1'], kh=7, kw=7, cout=planes[0],
                      stride=2, padding=3, relu=True)
        x = avg_pool_3x3_s2_p1(x)
        for blk_p, cfg in zip(params['layer1'], cfg1):
            x = bottleneck(x, blk_p, cfg)
        for blk_p, cfg in zip(params['layer2'], cfg2):
            x = bottleneck(x, blk_p, cfg)
        # TODO(synk): global average pool kept as a tiny XLA reduction.
        x = jnp.mean(x.astype(jnp.float32), axis=(1, 2))
        # FC with the bias fused into the matmul epilogue
        logits = fused_matmul(x, params['fc']['w'], bias_p=params['fc']['b'],
                              out_dtype=jnp.float32)
        return logits[:, :d_args['num_classes']]

    return jax.jit(forward)


# ------------------------------ main ------------------------------

if __name__ == "__main__":
    d_args = {
        'filts': 16,        # SincConv out channels -> image height
        'first_conv': 128,  # SincConv kernel size (made odd -> 129)
        'in_channels': 1,
        'layers': [1, 1],   # one Res2Net bottleneck per stage (small)
        'num_classes': 2,
    }
    key = jax.random.PRNGKey(0)
    params = init_res2net_params(jax.random.fold_in(key, 1), d_args)

    # len_seq chosen so SincConv(stride=32, k=129) gives 16 frames -> 16x16 map
    len_seq = 129 + 32 * 15   # 609
    x = jax.random.normal(jax.random.fold_in(key, 2), (2, len_seq), jnp.float32)

    forward = build_forward(d_args)
    logits = jax.block_until_ready(forward(params, x))
    assert logits.shape == (2, d_args['num_classes'])
    assert bool(jnp.all(jnp.isfinite(logits)))
    print("KERNEL_OK")
</pallas_src>

<mosaic_0001>
module attributes {stable_mosaic.version = 11 : i64} {
  func.func @kernel(%arg0: memref<32x256xbf16, #tpu.memory_space<vmem>>, %arg1: memref<256x128xbf16, #tpu.memory_space<vmem>>, %arg2: memref<1x128xf32, #tpu.memory_space<vmem>>, %arg3: memref<1x128xf32, #tpu.memory_space<vmem>>, %arg4: memref<32x128xbf16, #tpu.memory_space<vmem>>) attributes {dimension_semantics = [], scalar_prefetch = 0 : i64, scratch_operands = 0 : i64, tpu.core_type = #tpu.core_type<tc>} {
    %c0 = arith.constant 0 : index
    %c0_0 = arith.constant 0 : index
    %0 = vector.load %arg0[%c0, %c0_0] : memref<32x256xbf16, #tpu.memory_space<vmem>>, vector<32x256xbf16>
    %c0_1 = arith.constant 0 : index
    %c0_2 = arith.constant 0 : index
    %1 = vector.load %arg1[%c0_1, %c0_2] : memref<256x128xbf16, #tpu.memory_space<vmem>>, vector<256x128xbf16>
    %cst = arith.constant dense<0.000000e+00> : vector<32x128xf32>
    %2 = tpu.matmul %0, %1, %cst {dimension_numbers = #tpu.dot_dimension_numbers<[1], [0], [0], [1], [0, 0, 1, 1], [], []>} : vector<32x256xbf16>, vector<256x128xbf16>, vector<32x128xf32> -> vector<32x128xf32>
    %c0_3 = arith.constant 0 : index
    %c0_4 = arith.constant 0 : index
    %3 = vector.load %arg2[%c0_3, %c0_4] : memref<1x128xf32, #tpu.memory_space<vmem>>, vector<1x128xf32>
    %c0_5 = arith.constant 0 : index
    %c0_6 = arith.constant 0 : index
    %4 = vector.load %arg3[%c0_5, %c0_6] : memref<1x128xf32, #tpu.memory_space<vmem>>, vector<1x128xf32>
    %5 = vector.shape_cast %2 : vector<32x128xf32> to vector<1x32x128xf32>
    %cst_7 = arith.constant dense<0.000000e+00> : vector<1xf32>
    %6 = vector.multi_reduction <add>, %5, %cst_7 [1, 2] : vector<1x32x128xf32> to vector<1xf32>
    %7 = vector.shape_cast %6 : vector<1xf32> to vector<1x1x1xf32>
    %8 = vector.extract %7[0, 0, 0] : f32 from vector<1x1x1xf32>
    %9 = arith.mulf %2, %2 : vector<32x128xf32>
    %10 = vector.shape_cast %9 : vector<32x128xf32> to vector<1x32x128xf32>
    %cst_8 = arith.constant dense<0.000000e+00> : vector<1xf32>
    %11 = vector.multi_reduction <add>, %10, %cst_8 [1, 2] : vector<1x32x128xf32> to vector<1xf32>
    %12 = vector.shape_cast %11 : vector<1xf32> to vector<1x1x1xf32>
    %13 = vector.extract %12[0, 0, 0] : f32 from vector<1x1x1xf32>
    %cst_9 = arith.constant 0.001953125 : f32
    %14 = arith.mulf %8, %cst_9 : f32
    %cst_10 = arith.constant 0.001953125 : f32
    %15 = arith.mulf %13, %cst_10 : f32
    %16 = arith.mulf %14, %14 : f32
    %17 = arith.subf %15, %16 : f32
    %cst_11 = arith.constant 0.000000e+00 : f32
    %18 = arith.maximumf %17, %cst_11 : f32
    %cst_12 = arith.constant 9.99999974E-6 : f32
    %19 = arith.addf %18, %cst_12 : f32
    %20 = math.rsqrt %19 : f32
    %21 = vector.broadcast %20 : f32 to vector<1x128xf32>
    %22 = arith.mulf %3, %21 : vector<1x128xf32>
    %23 = vector.broadcast %14 : f32 to vector<1x128xf32>
    %24 = arith.mulf %23, %22 : vector<1x128xf32>
    %25 = arith.subf %4, %24 : vector<1x128xf32>
    %26 = vector.broadcast %22 : vector<1x128xf32> to vector<32x128xf32>
    %27 = arith.mulf %2, %26 : vector<32x128xf32>
    %28 = vector.broadcast %25 : vector<1x128xf32> to vector<32x128xf32>
    %29 = arith.addf %27, %28 : vector<32x128xf32>
    %30 = arith.truncf %29 : vector<32x128xf32> to vector<32x128xbf16>
    %c0_13 = arith.constant 0 : index
    %c0_14 = arith.constant 0 : index
    %31 = vector.load %arg4[%c0_13, %c0_14] : memref<32x128xbf16, #tpu.memory_space<vmem>>, vector<32x128xbf16>
    tpu.vector_store %arg4[%c0_13, %c0_14], %30 {strides = array<i32>} : memref<32x128xbf16, #tpu.memory_space<vmem>>, vector<32x128xbf16>,
    return
  }
}

module attributes {stable_mosaic.version = 11 : i64} {
  func.func @kernel(%arg0: memref<128x128xbf16, #tpu.memory_space<vmem>>, %arg1: memref<128x128xbf16, #tpu.memory_space<vmem>>, %arg2: memref<1x128xf32, #tpu.memory_space<vmem>>, %arg3: memref<1x128xf32, #tpu.memory_space<vmem>>, %arg4: memref<128x128xbf16, #tpu.memory_space<vmem>>) attributes {dimension_semantics = [], scalar_prefetch = 0 : i64, scratch_operands = 0 : i64, tpu.core_type = #tpu.core_type<tc>} {
    %c0 = arith.constant 0 : index
    %c0_0 = arith.constant 0 : index
    %0 = vector.load %arg0[%c0, %c0_0] : memref<128x128xbf16, #tpu.memory_space<vmem>>, vector<128x128xbf16>
    %c0_1 = arith.constant 0 : index
    %c0_2 = arith.constant 0 : index
    %1 = vector.load %arg1[%c0_1, %c0_2] : memref<128x128xbf16, #tpu.memory_space<vmem>>, vector<128x128xbf16>
    %cst = arith.constant dense<0.000000e+00> : vector<128x128xf32>
    %2 = tpu.matmul %0, %1, %cst {dimension_numbers = #tpu.dot_dimension_numbers<[1], [0], [0], [1], [0, 0, 1, 1], [], []>} : vector<128x128xbf16>, vector<128x128xbf16>, vector<128x128xf32> -> vector<128x128xf32>
    %c0_3 = arith.constant 0 : index
    %c0_4 = arith.constant 0 : index
    %3 = vector.load %arg2[%c0_3, %c0_4] : memref<1x128xf32, #tpu.memory_space<vmem>>, vector<1x128xf32>
    %c0_5 = arith.constant 0 : index
    %c0_6 = arith.constant 0 : index
    %4 = vector.load %arg3[%c0_5, %c0_6] : memref<1x128xf32, #tpu.memory_space<vmem>>, vector<1x128xf32>
    %cst_7 = arith.constant dense<0.000000e+00> : vector<128xf32>
    %5 = vector.multi_reduction <add>, %2, %cst_7 [0] : vector<128x128xf32> to vector<128xf32>
    %6 = vector.shape_cast %5 : vector<128xf32> to vector<1x128xf32>
    %7 = arith.mulf %2, %2 : vector<128x128xf32>
    %cst_8 = arith.constant dense<0.000000e+00> : vector<128xf32>
    %8 = vector.multi_reduction <add>, %7, %cst_8 [0] : vector<128x128xf32> to vector<128xf32>
    %9 = vector.shape_cast %8 : vector<128xf32> to vector<1x128xf32>
    %cst_9 = arith.constant 7.812500e-03 : f32
    %10 = vector.broadcast %cst_9 : f32 to vector<1x128xf32>
    %11 = arith.mulf %6, %10 : vector<1x128xf32>
    %cst_10 = arith.constant 7.812500e-03 : f32
    %12 = vector.broadcast %cst_10 : f32 to vector<1x128xf32>
    %13 = arith.mulf %9, %12 : vector<1x128xf32>
    %14 = arith.mulf %11, %11 : vector<1x128xf32>
    %15 = arith.subf %13, %14 : vector<1x128xf32>
    %cst_11 = arith.constant 0.000000e+00 : f32
    %16 = vector.broadcast %cst_11 : f32 to vector<1x128xf32>
    %17 = arith.maximumf %15, %16 : vector<1x128xf32>
    %cst_12 = arith.constant 9.99999974E-6 : f32
    %18 = vector.broadcast %cst_12 : f32 to vector<1x128xf32>
    %19 = arith.addf %17, %18 : vector<1x128xf32>
    %20 = math.rsqrt %19 : vector<1x128xf32>
    %21 = arith.mulf %3, %20 : vector<1x128xf32>
    %22 = arith.mulf %11, %21 : vector<1x128xf32>
    %23 = arith.subf %4, %22 : vector<1x128xf32>
    %24 = vector.broadcast %21 : vector<1x128xf32> to vector<128x128xf32>
    %25 = arith.mulf %2, %24 : vector<128x128xf32>
    %26 = vector.broadcast %23 : vector<1x128xf32> to vector<128x128xf32>
    %27 = arith.addf %25, %26 : vector<128x128xf32>
    %cst_13 = arith.constant 0.000000e+00 : f32
    %28 = vector.broadcast %cst_13 : f32 to vector<128x128xf32>
    %29 = arith.maximumf %27, %28 : vector<128x128xf32>
    %30 = arith.truncf %29 : vector<128x128xf32> to vector<128x128xbf16>
    %c0_14 = arith.constant 0 : index
    %c0_15 = arith.constant 0 : index
    %31 = vector.load %arg4[%c0_14, %c0_15] : memref<128x128xbf16, #tpu.memory_space<vmem>>, vector<128x128xbf16>
    tpu.vector_store %arg4[%c0_14, %c0_15], %30 {strides = array<i32>} : memref<128x128xbf16, #tpu.memory_space<vmem>>, vector<128x128xbf16>,
    return
  }
}

module attributes {stable_mosaic.version = 11 : i64} {
  func.func @kernel(%arg0: memref<32x128xbf16, #tpu.memory_space<vmem>>, %arg1: memref<128x128xbf16, #tpu.memory_space<vmem>>, %arg2: memref<1x128xf32, #tpu.memory_space<vmem>>, %arg3: memref<1x128xf32, #tpu.memory_space<vmem>>, %arg4: memref<32x128xbf16, #tpu.memory_space<vmem>>) attributes {dimension_semantics = [], scalar_prefetch = 0 : i64, scratch_operands = 0 : i64, tpu.core_type = #tpu.core_type<tc>} {
    %c0 = arith.constant 0 : index
    %c0_0 = arith.constant 0 : index
    %0 = vector.load %arg0[%c0, %c0_0] : memref<32x128xbf16, #tpu.memory_space<vmem>>, vector<32x128xbf16>
    %c0_1 = arith.constant 0 : index
    %c0_2 = arith.constant 0 : index
    %1 = vector.load %arg1[%c0_1, %c0_2] : memref<128x128xbf16, #tpu.memory_space<vmem>>, vector<128x128xbf16>
    %cst = arith.constant dense<0.000000e+00> : vector<32x128xf32>
    %2 = tpu.matmul %0, %1, %cst {dimension_numbers = #tpu.dot_dimension_numbers<[1], [0], [0], [1], [0, 0, 1, 1], [], []>} : vector<32x128xbf16>, vector<128x128xbf16>, vector<32x128xf32> -> vector<32x128xf32>
    %c0_3 = arith.constant 0 : index
    %c0_4 = arith.constant 0 : index
    %3 = vector.load %arg2[%c0_3, %c0_4] : memref<1x128xf32, #tpu.memory_space<vmem>>, vector<1x128xf32>
    %c0_5 = arith.constant 0 : index
    %c0_6 = arith.constant 0 : index
    %4 = vector.load %arg3[%c0_5, %c0_6] : memref<1x128xf32, #tpu.memory_space<vmem>>, vector<1x128xf32>
    %cst_7 = arith.constant dense<0.000000e+00> : vector<128xf32>
    %5 = vector.multi_reduction <add>, %2, %cst_7 [0] : vector<32x128xf32> to vector<128xf32>
    %6 = vector.shape_cast %5 : vector<128xf32> to vector<1x128xf32>
    %7 = arith.mulf %2, %2 : vector<32x128xf32>
    %cst_8 = arith.constant dense<0.000000e+00> : vector<128xf32>
    %8 = vector.multi_reduction <add>, %7, %cst_8 [0] : vector<32x128xf32> to vector<128xf32>
    %9 = vector.shape_cast %8 : vector<128xf32> to vector<1x128xf32>
    %cst_9 = arith.constant 3.125000e-02 : f32
    %10 = vector.broadcast %cst_9 : f32 to vector<1x128xf32>
    %11 = arith.mulf %6, %10 : vector<1x128xf32>
    %cst_10 = arith.constant 3.125000e-02 : f32
    %12 = vector.broadcast %cst_10 : f32 to vector<1x128xf32>
    %13 = arith.mulf %9, %12 : vector<1x128xf32>
    %14 = arith.mulf %11, %11 : vector<1x128xf32>
    %15 = arith.subf %13, %14 : vector<1x128xf32>
    %cst_11 = arith.constant 0.000000e+00 : f32
    %16 = vector.broadcast %cst_11 : f32 to vector<1x128xf32>
    %17 = arith.maximumf %15, %16 : vector<1x128xf32>
    %cst_12 = arith.constant 9.99999974E-6 : f32
    %18 = vector.broadcast %cst_12 : f32 to vector<1x128xf32>
    %19 = arith.addf %17, %18 : vector<1x128xf32>
    %20 = math.rsqrt %19 : vector<1x128xf32>
    %21 = arith.mulf %3, %20 : vector<1x128xf32>
    %22 = arith.mulf %11, %21 : vector<1x128xf32>
    %23 = arith.subf %4, %22 : vector<1x128xf32>
    %24 = vector.broadcast %21 : vector<1x128xf32> to vector<32x128xf32>
    %25 = arith.mulf %2, %24 : vector<32x128xf32>
    %26 = vector.broadcast %23 : vector<1x128xf32> to vector<32x128xf32>
    %27 = arith.addf %25, %26 : vector<32x128xf32>
    %cst_13 = arith.constant 0.000000e+00 : f32
    %28 = vector.broadcast %cst_13 : f32 to vector<32x128xf32>
    %29 = arith.maximumf %27, %28 : vector<32x128xf32>
    %30 = arith.truncf %29 : vector<32x128xf32> to vector<32x128xbf16>
    %c0_14 = arith.constant 0 : index
    %c0_15 = arith.constant 0 : index
    %31 = vector.load %arg4[%c0_14, %c0_15] : memref<32x128xbf16, #tpu.memory_space<vmem>>, vector<32x128xbf16>
    tpu.vector_store %arg4[%c0_14, %c0_15], %30 {strides = array<i32>} : memref<32x128xbf16, #tpu.memory_space<vmem>>, vector<32x128xbf16>,
    return
  }
}

module attributes {stable_mosaic.version = 11 : i64} {
  func.func @kernel(%arg0: memref<32x256xbf16, #tpu.memory_space<vmem>>, %arg1: memref<256x128xbf16, #tpu.memory_space<vmem>>, %arg2: memref<1x128xf32, #tpu.memory_space<vmem>>, %arg3: memref<1x128xf32, #tpu.memory_space<vmem>>, %arg4: memref<32x128xbf16, #tpu.memory_space<vmem>>) attributes {dimension_semantics = [], scalar_prefetch = 0 : i64, scratch_operands = 0 : i64, tpu.core_type = #tpu.core_type<tc>} {
    %c0 = arith.constant 0 : index
    %c0_0 = arith.constant 0 : index
    %0 = vector.load %arg0[%c0, %c0_0] : memref<32x256xbf16, #tpu.memory_space<vmem>>, vector<32x256xbf16>
    %c0_1 = arith.constant 0 : index
    %c0_2 = arith.constant 0 : index
    %1 = vector.load %arg1[%c0_1, %c0_2] : memref<256x128xbf16, #tpu.memory_space<vmem>>, vector<256x128xbf16>
    %cst = arith.constant dense<0.000000e+00> : vector<32x128xf32>
    %2 = tpu.matmul %0, %1, %cst {dimension_numbers = #tpu.dot_dimension_numbers<[1], [0], [0], [1], [0, 0, 1, 1], [], []>} : vector<32x256xbf16>, vector<256x128xbf16>, vector<32x128xf32> -> vector<32x128xf32>
    %c0_3 = arith.constant 0 : index
    %c0_4 = arith.constant 0 : index
    %3 = vector.load %arg2[%c0_3, %c0_4] : memref<1x128xf32, #tpu.memory_space<vmem>>, vector<1x128xf32>
    %c0_5 = arith.constant 0 : index
    %c0_6 = arith.constant 0 : index
    %4 = vector.load %arg3[%c0_5, %c0_6] : memref<1x128xf32, #tpu.memory_space<vmem>>, vector<1x128xf32>
    %cst_7 = arith.constant dense<0.000000e+00> : vector<128xf32>
    %5 = vector.multi_reduction <add>, %2, %cst_7 [0] : vector<32x128xf32> to vector<128xf32>
    %6 = vector.shape_cast %5 : vector<128xf32> to vector<1x128xf32>
    %7 = arith.mulf %2, %2 : vector<32x128xf32>
    %cst_8 = arith.constant dense<0.000000e+00> : vector<128xf32>
    %8 = vector.multi_reduction <add>, %7, %cst_8 [0] : vector<32x128xf32> to vector<128xf32>
    %9 = vector.shape_cast %8 : vector<128xf32> to vector<1x128xf32>
    %cst_9 = arith.constant 3.125000e-02 : f32
    %10 = vector.broadcast %cst_9 : f32 to vector<1x128xf32>
    %11 = arith.mulf %6, %10 : vector<1x128xf32>
    %cst_10 = arith.constant 3.125000e-02 : f32
    %12 = vector.broadcast %cst_10 : f32 to vector<1x128xf32>
    %13 = arith.mulf %9, %12 : vector<1x128xf32>
    %14 = arith.mulf %11, %11 : vector<1x128xf32>
    %15 = arith.subf %13, %14 : vector<1x128xf32>
    %cst_11 = arith.constant 0.000000e+00 : f32
    %16 = vector.broadcast %cst_11 : f32 to vector<1x128xf32>
    %17 = arith.maximumf %15, %16 : vector<1x128xf32>
    %cst_12 = arith.constant 9.99999974E-6 : f32
    %18 = vector.broadcast %cst_12 : f32 to vector<1x128xf32>
    %19 = arith.addf %17, %18 : vector<1x128xf32>
    %20 = math.rsqrt %19 : vector<1x128xf32>
    %21 = arith.mulf %3, %20 : vector<1x128xf32>
    %22 = arith.mulf %11, %21 : vector<1x128xf32>
    %23 = arith.subf %4, %22 : vector<1x128xf32>
    %24 = vector.broadcast %21 : vector<1x128xf32> to vector<32x128xf32>
    %25 = arith.mulf %2, %24 : vector<32x128xf32>
    %26 = vector.broadcast %23 : vector<1x128xf32> to vector<32x128xf32>
    %27 = arith.addf %25, %26 : vector<32x128xf32>
    %cst_13 = arith.constant 0.000000e+00 : f32
    %28 = vector.broadcast %cst_13 : f32 to vector<32x128xf32>
    %29 = arith.maximumf %27, %28 : vector<32x128xf32>
    %30 = arith.truncf %29 : vector<32x128xf32> to vector<32x128xbf16>
    %c0_14 = arith.constant 0 : index
    %c0_15 = arith.constant 0 : index
    %31 = vector.load %arg4[%c0_14, %c0_15] : memref<32x128xbf16, #tpu.memory_space<vmem>>, vector<32x128xbf16>
    tpu.vector_store %arg4[%c0_14, %c0_15], %30 {strides = array<i32>} : memref<32x128xbf16, #tpu.memory_space<vmem>>, vector<32x128xbf16>,
    return
  }
}

module attributes {stable_mosaic.version = 11 : i64} {
  func.func @kernel(%arg0: memref<32x128xbf16, #tpu.memory_space<vmem>>, %arg1: memref<128x256xbf16, #tpu.memory_space<vmem>>, %arg2: memref<1x256xf32, #tpu.memory_space<vmem>>, %arg3: memref<1x256xf32, #tpu.memory_space<vmem>>, %arg4: memref<32x128xbf16, #tpu.memory_space<vmem>>, %arg5: memref<128x256xbf16, #tpu.memory_space<vmem>>, %arg6: memref<1x256xf32, #tpu.memory_space<vmem>>, %arg7: memref<1x256xf32, #tpu.memory_space<vmem>>, %arg8: memref<32x256xbf16, #tpu.memory_space<vmem>>) attributes {dimension_semantics = [], scalar_prefetch = 0 : i64, scratch_operands = 0 : i64, tpu.core_type = #tpu.core_type<tc>} {
    %c0 = arith.constant 0 : index
    %c0_0 = arith.constant 0 : index
    %0 = vector.load %arg0[%c0, %c0_0] : memref<32x128xbf16, #tpu.memory_space<vmem>>, vector<32x128xbf16>
    %c0_1 = arith.constant 0 : index
    %c0_2 = arith.constant 0 : index
    %1 = vector.load %arg1[%c0_1, %c0_2] : memref<128x256xbf16, #tpu.memory_space<vmem>>, vector<128x256xbf16>
    %cst = arith.constant dense<0.000000e+00> : vector<32x256xf32>
    %2 = tpu.matmul %0, %1, %cst {dimension_numbers = #tpu.dot_dimension_numbers<[1], [0], [0], [1], [0, 0, 1, 1], [], []>} : vector<32x128xbf16>, vector<128x256xbf16>, vector<32x256xf32> -> vector<32x256xf32>
    %c0_3 = arith.constant 0 : index
    %c0_4 = arith.constant 0 : index
    %3 = vector.load %arg4[%c0_3, %c0_4] : memref<32x128xbf16, #tpu.memory_space<vmem>>, vector<32x128xbf16>
    %c0_5 = arith.constant 0 : index
    %c0_6 = arith.constant 0 : index
    %4 = vector.load %arg5[%c0_5, %c0_6] : memref<128x256xbf16, #tpu.memory_space<vmem>>, vector<128x256xbf16>
    %cst_7 = arith.constant dense<0.000000e+00> : vector<32x256xf32>
    %5 = tpu.matmul %3, %4, %cst_7 {dimension_numbers = #tpu.dot_dimension_numbers<[1], [0], [0], [1], [0, 0, 1, 1], [], []>} : vector<32x128xbf16>, vector<128x256xbf16>, vector<32x256xf32> -> vector<32x256xf32>
    %c0_8 = arith.constant 0 : index
    %c0_9 = arith.constant 0 : index
    %6 = vector.load %arg2[%c0_8, %c0_9] : memref<1x256xf32, #tpu.memory_space<vmem>>, vector<1x256xf32>
    %c0_10 = arith.constant 0 : index
    %c0_11 = arith.constant 0 : index
    %7 = vector.load %arg3[%c0_10, %c0_11] : memref<1x256xf32, #tpu.memory_space<vmem>>, vector<1x256xf32>
    %cst_12 = arith.constant dense<0.000000e+00> : vector<256xf32>
    %8 = vector.multi_reduction <add>, %2, %cst_12 [0] : vector<32x256xf32> to vector<256xf32>
    %9 = vector.shape_cast %8 : vector<256xf32> to vector<1x256xf32>
    %10 = arith.mulf %2, %2 : vector<32x256xf32>
    %cst_13 = arith.constant dense<0.000000e+00> : vector<256xf32>
    %11 = vector.multi_reduction <add>, %10, %cst_13 [0] : vector<32x256xf32> to vector<256xf32>
    %12 = vector.shape_cast %11 : vector<256xf32> to vector<1x256xf32>
    %cst_14 = arith.constant 3.125000e-02 : f32
    %13 = vector.broadcast %cst_14 : f32 to vector<1x256xf32>
    %14 = arith.mulf %9, %13 : vector<1x256xf32>
    %cst_15 = arith.constant 3.125000e-02 : f32
    %15 = vector.broadcast %cst_15 : f32 to vector<1x256xf32>
    %16 = arith.mulf %12, %15 : vector<1x256xf32>
    %17 = arith.mulf %14, %14 : vector<1x256xf32>
    %18 = arith.subf %16, %17 : vector<1x256xf32>
    %cst_16 = arith.constant 0.000000e+00 : f32
    %19 = vector.broadcast %cst_16 : f32 to vector<1x256xf32>
    %20 = arith.maximumf %18, %19 : vector<1x256xf32>
    %cst_17 = arith.constant 9.99999974E-6 : f32
    %21 = vector.broadcast %cst_17 : f32 to vector<1x256xf32>
    %22 = arith.addf %20, %21 : vector<1x256xf32>
    %23 = math.rsqrt %22 : vector<1x256xf32>
    %24 = arith.mulf %6, %23 : vector<1x256xf32>
    %25 = arith.mulf %14, %24 : vector<1x256xf32>
    %26 = arith.subf %7, %25 : vector<1x256xf32>
    %27 = vector.broadcast %24 : vector<1x256xf32> to vector<32x256xf32>
    %28 = arith.mulf %2, %27 : vector<32x256xf32>
    %29 = vector.broadcast %26 : vector<1x256xf32> to vector<32x256xf32>
    %30 = arith.addf %28, %29 : vector<32x256xf32>
    %c0_18 = arith.constant 0 : index
    %c0_19 = arith.constant 0 : index
    %31 = vector.load %arg6[%c0_18, %c0_19] : memref<1x256xf32, #tpu.memory_space<vmem>>, vector<1x256xf32>
    %c0_20 = arith.constant 0 : index
    %c0_21 = arith.constant 0 : index
    %32 = vector.load %arg7[%c0_20, %c0_21] : memref<1x256xf32, #tpu.memory_space<vmem>>, vector<1x256xf32>
    %cst_22 = arith.constant dense<0.000000e+00> : vector<256xf32>
    %33 = vector.multi_reduction <add>, %5, %cst_22 [0] : vector<32x256xf32> to vector<256xf32>
    %34 = vector.shape_cast %33 : vector<256xf32> to vector<1x256xf32>
    %35 = arith.mulf %5, %5 : vector<32x256xf32>
    %cst_23 = arith.constant dense<0.000000e+00> : vector<256xf32>
    %36 = vector.multi_reduction <add>, %35, %cst_23 [0] : vector<32x256xf32> to vector<256xf32>
    %37 = vector.shape_cast %36 : vector<256xf32> to vector<1x256xf32>
    %cst_24 = arith.constant 3.125000e-02 : f32
    %38 = vector.broadcast %cst_24 : f32 to vector<1x256xf32>
    %39 = arith.mulf %34, %38 : vector<1x256xf32>
    %cst_25 = arith.constant 3.125000e-02 : f32
    %40 = vector.broadcast %cst_25 : f32 to vector<1x256xf32>
    %41 = arith.mulf %37, %40 : vector<1x256xf32>
    %42 = arith.mulf %39, %39 : vector<1x256xf32>
    %43 = arith.subf %41, %42 : vector<1x256xf32>
    %cst_26 = arith.constant 0.000000e+00 : f32
    %44 = vector.broadcast %cst_26 : f32 to vector<1x256xf32>
    %45 = arith.maximumf %43, %44 : vector<1x256xf32>
    %cst_27 = arith.constant 9.99999974E-6 : f32
    %46 = vector.broadcast %cst_27 : f32 to vector<1x256xf32>
    %47 = arith.addf %45, %46 : vector<1x256xf32>
    %48 = math.rsqrt %47 : vector<1x256xf32>
    %49 = arith.mulf %31, %48 : vector<1x256xf32>
    %50 = arith.mulf %39, %49 : vector<1x256xf32>
    %51 = arith.subf %32, %50 : vector<1x256xf32>
    %52 = vector.broadcast %49 : vector<1x256xf32> to vector<32x256xf32>
    %53 = arith.mulf %5, %52 : vector<32x256xf32>
    %54 = vector.broadcast %51 : vector<1x256xf32> to vector<32x256xf32>
    %55 = arith.addf %53, %54 : vector<32x256xf32>
    %56 = arith.addf %30, %55 : vector<32x256xf32>
    %cst_28 = arith.constant 0.000000e+00 : f32
    %57 = vector.broadcast %cst_28 : f32 to vector<32x256xf32>
    %58 = arith.maximumf %56, %57 : vector<32x256xf32>
    %59 = arith.truncf %58 : vector<32x256xf32> to vector<32x256xbf16>
    %c0_29 = arith.constant 0 : index
    %c0_30 = arith.constant 0 : index
    %60 = vector.load %arg8[%c0_29, %c0_30] : memref<32x256xbf16, #tpu.memory_space<vmem>>, vector<32x256xbf16>
    tpu.vector_store %arg8[%c0_29, %c0_30], %59 {strides = array<i32>} : memref<32x256xbf16, #tpu.memory_space<vmem>>, vector<32x256xbf16>,
    return
  }
}

module attributes {stable_mosaic.version = 11 : i64} {
  func.func @kernel(%arg0: memref<8x256xbf16, #tpu.memory_space<vmem>>, %arg1: memref<256x128xbf16, #tpu.memory_space<vmem>>, %arg2: memref<1x128xf32, #tpu.memory_space<vmem>>, %arg3: memref<1x128xf32, #tpu.memory_space<vmem>>, %arg4: memref<8x128xbf16, #tpu.memory_space<vmem>>) attributes {dimension_semantics = [], scalar_prefetch = 0 : i64, scratch_operands = 0 : i64, tpu.core_type = #tpu.core_type<tc>} {
    %c0 = arith.constant 0 : index
    %c0_0 = arith.constant 0 : index
    %0 = vector.load %arg0[%c0, %c0_0] : memref<8x256xbf16, #tpu.memory_space<vmem>>, vector<8x256xbf16>
    %c0_1 = arith.constant 0 : index
    %c0_2 = arith.constant 0 : index
    %1 = vector.load %arg1[%c0_1, %c0_2] : memref<256x128xbf16, #tpu.memory_space<vmem>>, vector<256x128xbf16>
    %cst = arith.constant dense<0.000000e+00> : vector<8x128xf32>
    %2 = tpu.matmul %0, %1, %cst {dimension_numbers = #tpu.dot_dimension_numbers<[1], [0], [0], [1], [0, 0, 1, 1], [], []>} : vector<8x256xbf16>, vector<256x128xbf16>, vector<8x128xf32> -> vector<8x128xf32>
    %c0_3 = arith.constant 0 : index
    %c0_4 = arith.constant 0 : index
    %3 = vector.load %arg2[%c0_3, %c0_4] : memref<1x128xf32, #tpu.memory_space<vmem>>, vector<1x128xf32>
    %c0_5 = arith.constant 0 : index
    %c0_6 = arith.constant 0 : index
    %4 = vector.load %arg3[%c0_5, %c0_6] : memref<1x128xf32, #tpu.memory_space<vmem>>, vector<1x128xf32>
    %cst_7 = arith.constant dense<0.000000e+00> : vector<128xf32>
    %5 = vector.multi_reduction <add>, %2, %cst_7 [0] : vector<8x128xf32> to vector<128xf32>
    %6 = vector.shape_cast %5 : vector<128xf32> to vector<1x128xf32>
    %7 = arith.mulf %2, %2 : vector<8x128xf32>
    %cst_8 = arith.constant dense<0.000000e+00> : vector<128xf32>
    %8 = vector.multi_reduction <add>, %7, %cst_8 [0] : vector<8x128xf32> to vector<128xf32>
    %9 = vector.shape_cast %8 : vector<128xf32> to vector<1x128xf32>
    %cst_9 = arith.constant 1.250000e-01 : f32
    %10 = vector.broadcast %cst_9 : f32 to vector<1x128xf32>
    %11 = arith.mulf %6, %10 : vector<1x128xf32>
    %cst_10 = arith.constant 1.250000e-01 : f32
    %12 = vector.broadcast %cst_10 : f32 to vector<1x128xf32>
    %13 = arith.mulf %9, %12 : vector<1x128xf32>
    %14 = arith.mulf %11, %11 : vector<1x128xf32>
    %15 = arith.subf %13, %14 : vector<1x128xf32>
    %cst_11 = arith.constant 0.000000e+00 : f32
    %16 = vector.broadcast %cst_11 : f32 to vector<1x128xf32>
    %17 = arith.maximumf %15, %16 : vector<1x128xf32>
    %cst_12 = arith.constant 9.99999974E-6 : f32
    %18 = vector.broadcast %cst_12 : f32 to vector<1x128xf32>
    %19 = arith.addf %17, %18 : vector<1x128xf32>
    %20 = math.rsqrt %19 : vector<1x128xf32>
    %21 = arith.mulf %3, %20 : vector<1x128xf32>
    %22 = arith.mulf %11, %21 : vector<1x128xf32>
    %23 = arith.subf %4, %22 : vector<1x128xf32>
    %24 = vector.broadcast %21 : vector<1x128xf32> to vector<8x128xf32>
    %25 = arith.mulf %2, %24 : vector<8x128xf32>
    %26 = vector.broadcast %23 : vector<1x128xf32> to vector<8x128xf32>
    %27 = arith.addf %25, %26 : vector<8x128xf32>
    %cst_13 = arith.constant 0.000000e+00 : f32
    %28 = vector.broadcast %cst_13 : f32 to vector<8x128xf32>
    %29 = arith.maximumf %27, %28 : vector<8x128xf32>
    %30 = arith.truncf %29 : vector<8x128xf32> to vector<8x128xbf16>
    %c0_14 = arith.constant 0 : index
    %c0_15 = arith.constant 0 : index
    %31 = vector.load %arg4[%c0_14, %c0_15] : memref<8x128xbf16, #tpu.memory_space<vmem>>, vector<8x128xbf16>
    tpu.vector_store %arg4[%c0_14, %c0_15], %30 {strides = array<i32>} : memref<8x128xbf16, #tpu.memory_space<vmem>>, vector<8x128xbf16>,
    return
  }
}

module attributes {stable_mosaic.version = 11 : i64} {
  func.func @kernel(%arg0: memref<8x384xbf16, #tpu.memory_space<vmem>>, %arg1: memref<384x128xbf16, #tpu.memory_space<vmem>>, %arg2: memref<1x128xf32, #tpu.memory_space<vmem>>, %arg3: memref<1x128xf32, #tpu.memory_space<vmem>>, %arg4: memref<8x128xbf16, #tpu.memory_space<vmem>>) attributes {dimension_semantics = [], scalar_prefetch = 0 : i64, scratch_operands = 0 : i64, tpu.core_type = #tpu.core_type<tc>} {
    %c0 = arith.constant 0 : index
    %c0_0 = arith.constant 0 : index
    %0 = vector.load %arg0[%c0, %c0_0] : memref<8x384xbf16, #tpu.memory_space<vmem>>, vector<8x384xbf16>
    %c0_1 = arith.constant 0 : index
    %c0_2 = arith.constant 0 : index
    %1 = vector.load %arg1[%c0_1, %c0_2] : memref<384x128xbf16, #tpu.memory_space<vmem>>, vector<384x128xbf16>
    %cst = arith.constant dense<0.000000e+00> : vector<8x128xf32>
    %2 = tpu.matmul %0, %1, %cst {dimension_numbers = #tpu.dot_dimension_numbers<[1], [0], [0], [1], [0, 0, 1, 1], [], []>} : vector<8x384xbf16>, vector<384x128xbf16>, vector<8x128xf32> -> vector<8x128xf32>
    %c0_3 = arith.constant 0 : index
    %c0_4 = arith.constant 0 : index
    %3 = vector.load %arg2[%c0_3, %c0_4] : memref<1x128xf32, #tpu.memory_space<vmem>>, vector<1x128xf32>
    %c0_5 = arith.constant 0 : index
    %c0_6 = arith.constant 0 : index
    %4 = vector.load %arg3[%c0_5, %c0_6] : memref<1x128xf32, #tpu.memory_space<vmem>>, vector<1x128xf32>
    %cst_7 = arith.constant dense<0.000000e+00> : vector<128xf32>
    %5 = vector.multi_reduction <add>, %2, %cst_7 [0] : vector<8x128xf32> to vector<128xf32>
    %6 = vector.shape_cast %5 : vector<128xf32> to vector<1x128xf32>
    %7 = arith.mulf %2, %2 : vector<8x128xf32>
    %cst_8 = arith.constant dense<0.000000e+00> : vector<128xf32>
    %8 = vector.multi_reduction <add>, %7, %cst_8 [0] : vector<8x128xf32> to vector<128xf32>
    %9 = vector.shape_cast %8 : vector<128xf32> to vector<1x128xf32>
    %cst_9 = arith.constant 1.250000e-01 : f32
    %10 = vector.broadcast %cst_9 : f32 to vector<1x128xf32>
    %11 = arith.mulf %6, %10 : vector<1x128xf32>
    %cst_10 = arith.constant 1.250000e-01 : f32
    %12 = vector.broadcast %cst_10 : f32 to vector<1x128xf32>
    %13 = arith.mulf %9, %12 : vector<1x128xf32>
    %14 = arith.mulf %11, %11 : vector<1x128xf32>
    %15 = arith.subf %13, %14 : vector<1x128xf32>
    %cst_11 = arith.constant 0.000000e+00 : f32
    %16 = vector.broadcast %cst_11 : f32 to vector<1x128xf32>
    %17 = arith.maximumf %15, %16 : vector<1x128xf32>
    %cst_12 = arith.constant 9.99999974E-6 : f32
    %18 = vector.broadcast %cst_12 : f32 to vector<1x128xf32>
    %19 = arith.addf %17, %18 : vector<1x128xf32>
    %20 = math.rsqrt %19 : vector<1x128xf32>
    %21 = arith.mulf %3, %20 : vector<1x128xf32>
    %22 = arith.mulf %11, %21 : vector<1x128xf32>
    %23 = arith.subf %4, %22 : vector<1x128xf32>
    %24 = vector.broadcast %21 : vector<1x128xf32> to vector<8x128xf32>
    %25 = arith.mulf %2, %24 : vector<8x128xf32>
    %26 = vector.broadcast %23 : vector<1x128xf32> to vector<8x128xf32>
    %27 = arith.addf %25, %26 : vector<8x128xf32>
    %cst_13 = arith.constant 0.000000e+00 : f32
    %28 = vector.broadcast %cst_13 : f32 to vector<8x128xf32>
    %29 = arith.maximumf %27, %28 : vector<8x128xf32>
    %30 = arith.truncf %29 : vector<8x128xf32> to vector<8x128xbf16>
    %c0_14 = arith.constant 0 : index
    %c0_15 = arith.constant 0 : index
    %31 = vector.load %arg4[%c0_14, %c0_15] : memref<8x128xbf16, #tpu.memory_space<vmem>>, vector<8x128xbf16>
    tpu.vector_store %arg4[%c0_14, %c0_15], %30 {strides = array<i32>} : memref<8x128xbf16, #tpu.memory_space<vmem>>, vector<8x128xbf16>,
    return
  }
}

module attributes {stable_mosaic.version = 11 : i64} {
  func.func @kernel(%arg0: memref<2x512xbf16, #tpu.memory_space<vmem>>, %arg1: memref<512x128xbf16, #tpu.memory_space<vmem>>, %arg2: memref<1x128xf32, #tpu.memory_space<vmem>>, %arg3: memref<2x128xf32, #tpu.memory_space<vmem>>) attributes {dimension_semantics = [], scalar_prefetch = 0 : i64, scratch_operands = 0 : i64, tpu.core_type = #tpu.core_type<tc>} {
    %c0 = arith.constant 0 : index
    %c0_0 = arith.constant 0 : index
    %0 = vector.load %arg0[%c0, %c0_0] : memref<2x512xbf16, #tpu.memory_space<vmem>>, vector<2x512xbf16>
    %c0_1 = arith.constant 0 : index
    %c0_2 = arith.constant 0 : index
    %1 = vector.load %arg1[%c0_1, %c0_2] : memref<512x128xbf16, #tpu.memory_space<vmem>>, vector<512x128xbf16>
    %cst = arith.constant dense<0.000000e+00> : vector<2x128xf32>
    %2 = tpu.matmul %0, %1, %cst {dimension_numbers = #tpu.dot_dimension_numbers<[1], [0], [0], [1], [0, 0, 1, 1], [], []>} : vector<2x512xbf16>, vector<512x128xbf16>, vector<2x128xf32> -> vector<2x128xf32>
    %c0_3 = arith.constant 0 : index
    %c0_4 = arith.constant 0 : index
    %3 = vector.load %arg2[%c0_3, %c0_4] : memref<1x128xf32, #tpu.memory_space<vmem>>, vector<1x128xf32>
    %4 = vector.broadcast %3 : vector<1x128xf32> to vector<2x128xf32>
    %5 = arith.addf %2, %4 : vector<2x128xf32>
    %c0_5 = arith.constant 0 : index
    %c0_6 = arith.constant 0 : index
    %6 = vector.load %arg3[%c0_5, %c0_6] : memref<2x128xf32, #tpu.memory_space<vmem>>, vector<2x128xf32>
    tpu.vector_store %arg3[%c0_5, %c0_6], %5 {strides = array<i32>} : memref<2x128xf32, #tpu.memory_space<vmem>>, vector<2x128xf32>,
    return
  }
}

module attributes {stable_mosaic.version = 11 : i64} {
  func.func @kernel(%arg0: memref<8x128xbf16, #tpu.memory_space<vmem>>, %arg1: memref<128x512xbf16, #tpu.memory_space<vmem>>, %arg2: memref<1x512xf32, #tpu.memory_space<vmem>>, %arg3: memref<1x512xf32, #tpu.memory_space<vmem>>, %arg4: memref<8x256xbf16, #tpu.memory_space<vmem>>, %arg5: memref<256x512xbf16, #tpu.memory_space<vmem>>, %arg6: memref<1x512xf32, #tpu.memory_space<vmem>>, %arg7: memref<1x512xf32, #tpu.memory_space<vmem>>, %arg8: memref<8x512xbf16, #tpu.memory_space<vmem>>) attributes {dimension_semantics = [], scalar_prefetch = 0 : i64, scratch_operands = 0 : i64, tpu.core_type = #tpu.core_type<tc>} {
    %c0 = arith.constant 0 : index
    %c0_0 = arith.constant 0 : index
    %0 = vector.load %arg0[%c0, %c0_0] : memref<8x128xbf16, #tpu.memory_space<vmem>>, vector<8x128xbf16>
    %c0_1 = arith.constant 0 : index
    %c0_2 = arith.constant 0 : index
    %1 = vector.load %arg1[%c0_1, %c0_2] : memref<128x512xbf16, #tpu.memory_space<vmem>>, vector<128x512xbf16>
    %cst = arith.constant dense<0.000000e+00> : vector<8x512xf32>
    %2 = tpu.matmul %0, %1, %cst {dimension_numbers = #tpu.dot_dimension_numbers<[1], [0], [0], [1], [0, 0, 1, 1], [], []>} : vector<8x128xbf16>, vector<128x512xbf16>, vector<8x512xf32> -> vector<8x512xf32>
    %c0_3 = arith.constant 0 : index
    %c0_4 = arith.constant 0 : index
    %3 = vector.load %arg4[%c0_3, %c0_4] : memref<8x256xbf16, #tpu.memory_space<vmem>>, vector<8x256xbf16>
    %c0_5 = arith.constant 0 : index
    %c0_6 = arith.constant 0 : index
    %4 = vector.load %arg5[%c0_5, %c0_6] : memref<256x512xbf16, #tpu.memory_space<vmem>>, vector<256x512xbf16>
    %cst_7 = arith.constant dense<0.000000e+00> : vector<8x512xf32>
    %5 = tpu.matmul %3, %4, %cst_7 {dimension_numbers = #tpu.dot_dimension_numbers<[1], [0], [0], [1], [0, 0, 1, 1], [], []>} : vector<8x256xbf16>, vector<256x512xbf16>, vector<8x512xf32> -> vector<8x512xf32>
    %c0_8 = arith.constant 0 : index
    %c0_9 = arith.constant 0 : index
    %6 = vector.load %arg2[%c0_8, %c0_9] : memref<1x512xf32, #tpu.memory_space<vmem>>, vector<1x512xf32>
    %c0_10 = arith.constant 0 : index
    %c0_11 = arith.constant 0 : index
    %7 = vector.load %arg3[%c0_10, %c0_11] : memref<1x512xf32, #tpu.memory_space<vmem>>, vector<1x512xf32>
    %cst_12 = arith.constant dense<0.000000e+00> : vector<512xf32>
    %8 = vector.multi_reduction <add>, %2, %cst_12 [0] : vector<8x512xf32> to vector<512xf32>
    %9 = vector.shape_cast %8 : vector<512xf32> to vector<1x512xf32>
    %10 = arith.mulf %2, %2 : vector<8x512xf32>
    %cst_13 = arith.constant dense<0.000000e+00> : vector<512xf32>
    %11 = vector.multi_reduction <add>, %10, %cst_13 [0] : vector<8x512xf32> to vector<512xf32>
    %12 = vector.shape_cast %11 : vector<512xf32> to vector<1x512xf32>
    %cst_14 = arith.constant 1.250000e-01 : f32
    %13 = vector.broadcast %cst_14 : f32 to vector<1x512xf32>
    %14 = arith.mulf %9, %13 : vector<1x512xf32>
    %cst_15 = arith.constant 1.250000e-01 : f32
    %15 = vector.broadcast %cst_15 : f32 to vector<1x512xf32>
    %16 = arith.mulf %12, %15 : vector<1x512xf32>
    %17 = arith.mulf %14, %14 : vector<1x512xf32>
    %18 = arith.subf %16, %17 : vector<1x512xf32>
    %cst_16 = arith.constant 0.000000e+00 : f32
    %19 = vector.broadcast %cst_16 : f32 to vector<1x512xf32>
    %20 = arith.maximumf %18, %19 : vector<1x512xf32>
    %cst_17 = arith.constant 9.99999974E-6 : f32
    %21 = vector.broadcast %cst_17 : f32 to vector<1x512xf32>
    %22 = arith.addf %20, %21 : vector<1x512xf32>
    %23 = math.rsqrt %22 : vector<1x512xf32>
    %24 = arith.mulf %6, %23 : vector<1x512xf32>
    %25 = arith.mulf %14, %24 : vector<1x512xf32>
    %26 = arith.subf %7, %25 : vector<1x512xf32>
    %27 = vector.broadcast %24 : vector<1x512xf32> to vector<8x512xf32>
    %28 = arith.mulf %2, %27 : vector<8x512xf32>
    %29 = vector.broadcast %26 : vector<1x512xf32> to vector<8x512xf32>
    %30 = arith.addf %28, %29 : vector<8x512xf32>
    %c0_18 = arith.constant 0 : index
    %c0_19 = arith.constant 0 : index
    %31 = vector.load %arg6[%c0_18, %c0_19] : memref<1x512xf32, #tpu.memory_space<vmem>>, vector<1x512xf32>
    %c0_20 = arith.constant 0 : index
    %c0_21 = arith.constant 0 : index
    %32 = vector.load %arg7[%c0_20, %c0_21] : memref<1x512xf32, #tpu.memory_space<vmem>>, vector<1x512xf32>
    %cst_22 = arith.constant dense<0.000000e+00> : vector<512xf32>
    %33 = vector.multi_reduction <add>, %5, %cst_22 [0] : vector<8x512xf32> to vector<512xf32>
    %34 = vector.shape_cast %33 : vector<512xf32> to vector<1x512xf32>
    %35 = arith.mulf %5, %5 : vector<8x512xf32>
    %cst_23 = arith.constant dense<0.000000e+00> : vector<512xf32>
    %36 = vector.multi_reduction <add>, %35, %cst_23 [0] : vector<8x512xf32> to vector<512xf32>
    %37 = vector.shape_cast %36 : vector<512xf32> to vector<1x512xf32>
    %cst_24 = arith.constant 1.250000e-01 : f32
    %38 = vector.broadcast %cst_24 : f32 to vector<1x512xf32>
    %39 = arith.mulf %34, %38 : vector<1x512xf32>
    %cst_25 = arith.constant 1.250000e-01 : f32
    %40 = vector.broadcast %cst_25 : f32 to vector<1x512xf32>
    %41 = arith.mulf %37, %40 : vector<1x512xf32>
    %42 = arith.mulf %39, %39 : vector<1x512xf32>
    %43 = arith.subf %41, %42 : vector<1x512xf32>
    %cst_26 = arith.constant 0.000000e+00 : f32
    %44 = vector.broadcast %cst_26 : f32 to vector<1x512xf32>
    %45 = arith.maximumf %43, %44 : vector<1x512xf32>
    %cst_27 = arith.constant 9.99999974E-6 : f32
    %46 = vector.broadcast %cst_27 : f32 to vector<1x512xf32>
    %47 = arith.addf %45, %46 : vector<1x512xf32>
    %48 = math.rsqrt %47 : vector<1x512xf32>
    %49 = arith.mulf %31, %48 : vector<1x512xf32>
    %50 = arith.mulf %39, %49 : vector<1x512xf32>
    %51 = arith.subf %32, %50 : vector<1x512xf32>
    %52 = vector.broadcast %49 : vector<1x512xf32> to vector<8x512xf32>
    %53 = arith.mulf %5, %52 : vector<8x512xf32>
    %54 = vector.broadcast %51 : vector<1x512xf32> to vector<8x512xf32>
    %55 = arith.addf %53, %54 : vector<8x512xf32>
    %56 = arith.addf %30, %55 : vector<8x512xf32>
    %cst_28 = arith.constant 0.000000e+00 : f32
    %57 = vector.broadcast %cst_28 : f32 to vector<8x512xf32>
    %58 = arith.maximumf %56, %57 : vector<8x512xf32>
    %59 = arith.truncf %58 : vector<8x512xf32> to vector<8x512xbf16>
    %c0_29 = arith.constant 0 : index
    %c0_30 = arith.constant 0 : index
    %60 = vector.load %arg8[%c0_29, %c0_30] : memref<8x512xbf16, #tpu.memory_space<vmem>>, vector<8x512xbf16>
    tpu.vector_store %arg8[%c0_29, %c0_30], %59 {strides = array<i32>} : memref<8x512xbf16, #tpu.memory_space<vmem>>, vector<8x512xbf16>,
    return
  }
}

</mosaic_0001>

<bundles_post_ra>
// kernel: forward.13
= control target key start
LH: loop header
LB: loop body
LE: loop exit
PB: predicated region body
PF: predicated region fallthrough
CT: control target
= control target key end

     0   :  { %s421_s7 = smov 0.0   ;;  %v264_v58 = vlaneseq  ;;  %s519_s1 = inlined_call_operand.vmem [shape: bf16[256,128], index: 1, kind: input, shape index: {}]   ;;  %s520_s0 = inlined_call_operand.vmem [shape: bf16[32,256], index: 0, kind: input, shape index: {}]   ;;  %s521_s2 = inlined_call_operand.vmem [shape: f32[1,128], index: 2, kind: input, shape index: {}]   ;;  %s522_s3 = inlined_call_operand.vmem [shape: f32[1,128], index: 3, kind: input, shape index: {}]   ;;  %s523_s4 = inlined_call_operand.vmem [shape: bf16[32,128], index: 4, kind: output, shape index: {}]  }
   0x1   :  { %v397_v0 = vld [vmem:[%s519_s1 + $0x78] sm:$0xff]   ;;  %v399_v2 = vld [vmem:[%s519_s1 + $0x70] sm:$0xff]   ;;  %v401_v4 = vld [vmem:[%s519_s1 + $0x68] sm:$0xff]  }
   0x2   :  { %v398_v1 = vld [vmem:[%s519_s1 + $0x38] sm:$0xff]   ;;  %346 = vmatprep.subr.bf16.mxu0 %v397_v0  ;;  %374 = vmatprep.subr.bf16.mxu1 %v397_v0  ;;  %v400_v3 = vld [vmem:[%s519_s1 + $0x30] sm:$0xff]   ;;  %v402_v5 = vld [vmem:[%s519_s1 + $0x28] sm:$0xff]   ;;  %v265_v59 = vshrl.u32 %v264_v58, 7 }
   0x3   :  { %347 = vmatpush3.bf16.msra.mxu0 %v398_v1  ;;  %382 = vmatpush3.bf16.msra.mxu1 %v398_v1  ;;  %v403_v6 = vld [vmem:[%s519_s1 + $0x60] sm:$0xff]   ;;  %v405_v8 = vld [vmem:[%s519_s1 + $0x58] sm:$0xff]   ;;  %v407_v10 = vld [vmem:[%s519_s1 + $0x50] sm:$0xff]  }
   0x4   :  { %348 = vmatprep.subr.bf16.mxu0 %v399_v2  ;;  %375 = vmatprep.subr.bf16.mxu1 %v399_v2  ;;  %v404_v7 = vld [vmem:[%s519_s1 + $0x20] sm:$0xff]   ;;  %v406_v9 = vld [vmem:[%s519_s1 + $0x18] sm:$0xff]   ;;  %v408_v13 = vld [vmem:[%s519_s1 + $0x10] sm:$0xff]   ;;  %v266_v61 = vsub.s32 0, %v265_v59 }
   0x5   :  { %v415_v11 = vld [vmem:[%s520_s0 + $0x4] ss:$8 sps:$4 sm:$0xff]   ;;  %v418_v12 = vld [vmem:[%s520_s0 + $0x14] ss:$8 sps:$4 sm:$0xff]   ;;  %v413_v18 = vld [vmem:[%s520_s0] ss:$8 sps:$4 sm:$0xff]  }
   0x6   :  { %v409_v14 = vld [vmem:[%s519_s1 + $0x48] sm:$0xff]   ;;  %202 = vmatprep.mubr.bf16.mxu0 %v415_v11  ;;  %210 = vmatprep.mubr.bf16.mxu1 %v418_v12  ;;  %v411_v16 = vld [vmem:[%s519_s1 + $0x40] sm:$0xff]   ;;  %v416_v19 = vld [vmem:[%s520_s0 + $0x10] ss:$8 sps:$4 sm:$0xff]  }
   0x7   :  { %349 = vmatpush3.bf16.msra.mxu0 %v400_v3  ;;  %383 = vmatpush3.bf16.msra.mxu1 %v400_v3  ;;  %v410_v15 = vld [vmem:[%s519_s1 + $0x8] sm:$0xff]   ;;  %v412_v17 = vld [vmem:[%s519_s1] sm:$0xff]  }
   0x8   :  { %350 = vmatprep.subr.bf16.mxu0 %v401_v4  ;;  %376 = vmatprep.subr.bf16.mxu1 %v401_v4  ;;  %v219_v60 = vld [vmem:[%s521_s2] sm:$0x1] }
   0x9   :  { %v220_v1 = vld [vmem:[%s522_s3] sm:$0x1] }
   0xb   :  { %351 = vmatpush3.bf16.msra.mxu0 %v402_v5  ;;  %384 = vmatpush3.bf16.msra.mxu1 %v402_v5 }
   0xc   :  { %352 = vmatprep.subr.bf16.mxu0 %v403_v6  ;;  %377 = vmatprep.subr.bf16.mxu1 %v403_v6 }
   0xf   :  { %353 = vmatpush3.bf16.msra.mxu0 %v404_v7  ;;  %385 = vmatpush3.bf16.msra.mxu1 %v404_v7 }
  0x10   :  { %354 = vmatprep.subr.bf16.mxu0 %v405_v8  ;;  %378 = vmatprep.subr.bf16.mxu1 %v405_v8 }
  0x13   :  { %355 = vmatpush3.bf16.msra.mxu0 %v406_v9  ;;  %386 = vmatpush3.bf16.msra.mxu1 %v406_v9 }
  0x14   :  { %356 = vmatprep.subr.bf16.mxu0 %v407_v10  ;;  %379 = vmatprep.subr.bf16.mxu1 %v407_v10 }
  0x17   :  { %357 = vmatpush3.bf16.msra.mxu0 %v408_v13  ;;  %387 = vmatpush3.bf16.msra.mxu1 %v408_v13 }
  0x18   :  { %358 = vmatprep.subr.bf16.mxu0 %v409_v14  ;;  %380 = vmatprep.subr.bf16.mxu1 %v409_v14 }
  0x1b   :  { %359 = vmatpush3.bf16.msra.mxu0 %v410_v15  ;;  %388 = vmatpush3.bf16.msra.mxu1 %v410_v15 }
  0x1c   :  { %360 = vmatprep.subr.bf16.mxu0 %v411_v16  ;;  %381 = vmatprep.subr.bf16.mxu1 %v411_v16 }
  0x1f   :  { %361 = vmatpush3.bf16.msra.mxu0 %v412_v17  ;;  %389 = vmatpush3.bf16.msra.mxu1 %v412_v17 }
  0x22   :  { %203 = vmatmul.mubr.bf16.vlgmr.msra.gmra.mxu0 %v413_v18  ;;  %211 = vmatmul.mubr.bf16.vlgmr.msra.gmra.mxu1 %v416_v19 }
  0xe2   :  { %v362_v20 = vpop.f32.mrf.mxu0  ;;  %v368_v21 = vpop.f32.mrf.mxu1 }
  0xe4   :  { %v363_v22 = vpop.f32.mrf.mxu0  ;;  %v369_v23 = vpop.f32.mrf.mxu1 }
  0xe5   :  { %v364_v26 = vadd.f32 %v363_v22, %v362_v20  ;;  %v370_v28 = vadd.f32 %v369_v23, %v368_v21 }
  0xe6   :  { %v365_v24 = vpop.f32.mrf.mxu0  ;;  %v371_v25 = vpop.f32.mrf.mxu1 }
  0xe7   :  { %v233_v31 = vmul.f32 %v364_v26, %v364_v26  ;;  %v235_v34 = vmul.f32 %v370_v28, %v370_v28 }
  0xe8   :  { %v366_v27 = vpop.f32.mrf.mxu0  ;;  %v372_v30 = vpop.f32.mrf.mxu1 }
  0xe9   :  { %v367_v29 = vadd.f32 %v366_v27, %v365_v24  ;;  %v373_v35 = vadd.f32 %v372_v30, %v371_v25 }
  0xeb   :  { %v234_v32 = vmul.f32 %v367_v29, %v367_v29  ;;  %v221_v33 = vadd.f32 %v367_v29, %v364_v26  ;;  %v236_v40 = vmul.f32 %v373_v35, %v373_v35 }
  0xed   :  { %v222_v36 = vadd.f32 %v370_v28, %v221_v33  ;;  %v237_v37 = vadd.f32 %v234_v32, %v233_v31 }
  0xef   :  { %v223_v38 = vadd.f32 %v373_v35, %v222_v36  ;;  %v238_v39 = vadd.f32 %v237_v37, %v235_v34 }
  0xf1   :  { %224 = vadd.xlane.f32.xlu0 %v223_v38  ;;  %v239_v41 = vadd.f32 %v238_v39, %v236_v40 }
  0xf5   :  { %240 = vadd.xlane.f32.xlu0 %v239_v41 }
 0x17a   :  { %v225_v42 = vpop.xlane.xlu0 %224 }
 0x17b   :  { %v226_v43 = vrot.slane %v225_v42, 4 }
 0x17d   :  { %v227_v44 = vadd.f32 %v226_v43, %v225_v42 }
 0x17e   :  { %v241_v45 = vpop.xlane.xlu0 %240 }
 0x17f   :  { %v228_v46 = vrot.slane %v227_v44, 2  ;;  %v242_v47 = vrot.slane %v241_v45, 4 }
 0x181   :  { %v243_v48 = vadd.f32 %v242_v47, %v241_v45  ;;  %v229_v49 = vadd.f32 %v228_v46, %v227_v44 }
 0x183   :  { %v244_v50 = vrot.slane %v243_v48, 2  ;;  %v230_v51 = vrot.slane %v229_v49, 1 }
 0x185   :  { %v245_v52 = vadd.f32 %v244_v50, %v243_v48  ;;  %v231_v53 = vadd.f32 %v230_v51, %v229_v49 }
 0x187   :  { %390 = vpush %v231_v53  ;;  %v246_v54 = vrot.slane %v245_v52, 1 }
 0x189   :  { %v247_v55 = vadd.f32 %v246_v54, %v245_v52 }
 0x18b   :  { %392 = vpush %v247_v55 }
 0x1b8   :  { %s391_s0 = spop %390 }
 0x1b9   :  { %s249_s1 = smul.f32 0.001953125, %s391_s0 }
 0x1bb   :  { %s251_s29 = smul.f32 %s249_s1, %s249_s1  ;;  %v260_v0 = vstv %s249_s1 }
 0x1bc   :  { %s393_s30 = spop %392 }
 0x1bd   :  { %s250_s5 = smul.f32 0.001953125, %s393_s30 }
 0x1bf   :  { %s252_s6 = ssub.f32 %s250_s5, %s251_s29 }
 0x1c1   :  { %s253_s8 = smax.f32 %s421_s7, %s252_s6 }
 0x1c2   :  { %s254_s9 = sadd.f32 1e-05, %s253_s8 }
 0x1c4   :  { %v255_v56 = vstv %s254_s9 }
 0x1c5   :  { %419 = vrsqrt.f32 %v255_v56 }
 0x1d2   :  { %v420_v57 = vpop.eup %419 }
 0x1d3   :  { %394 = vpush %v420_v57 }
 0x204   :  { %s395_s12 = spop %394 }
 0x205   :  { %v258_v62 = vstv %s395_s12 }
 0x206   :  { %v259_v63 = vmul.f32 %v258_v62, %v219_v60 }
 0x208   :  { %v261_v2 = vmul.f32 %v260_v0, %v259_v63  ;;  %v267_v3 = vrot.slane %v259_v63, %v266_v61 }
 0x20a   :  { %v262_v4 = vsub.f32 %v220_v1, %v261_v2  ;;  %v269_v5 = vmul.f32 %v364_v26, %v267_v3  ;;  %v270_v6 = vmul.f32 %v367_v29, %v267_v3  ;;  %v271_v7 = vmul.f32 %v370_v28, %v267_v3 }
 0x20b   :  { %v272_v8 = vmul.f32 %v373_v35, %v267_v3 }
 0x20c   :  { %v277_v9 = vrot.slane %v262_v4, %v266_v61 }
 0x20e   :  { %v279_v10 = vadd.f32 %v277_v9, %v269_v5  ;;  %v280_v11 = vadd.f32 %v277_v9, %v270_v6  ;;  %v281_v12 = vadd.f32 %v277_v9, %v271_v7  ;;  %v282_v13 = vadd.f32 %v277_v9, %v272_v8 }
 0x210   :  { %v338_v14 = vpack.c.bf16 %v280_v11, %v279_v10  ;;  %v343_v15 = vpack.c.bf16 %v282_v13, %v281_v12 }
 0x212   :  { %339 = vst [vmem:[%s523_s4] sm:$0xff] %v338_v14   ;;  %345 = vst [vmem:[%s523_s4 + $0x8] sm:$0xff] %v343_v15  }

// kernel: forward.14
= control target key start
LH: loop header
LB: loop body
LE: loop exit
PB: predicated region body
PF: predicated region fallthrough
CT: control target
= control target key end

     0   :  { %s827_s1 = inlined_call_operand.vmem [shape: bf16[128,128], index: 1, kind: input, shape index: {}]   ;;  %s828_s0 = inlined_call_operand.vmem [shape: bf16[128,128], index: 0, kind: input, shape index: {}]   ;;  %s829_s2 = inlined_call_operand.vmem [shape: f32[1,128], index: 2, kind: input, shape index: {}]   ;;  %s830_s3 = inlined_call_operand.vmem [shape: f32[1,128], index: 3, kind: input, shape index: {}]   ;;  %s831_s4 = inlined_call_operand.vmem [shape: bf16[128,128], index: 4, kind: output, shape index: {}]  }
   0x1   :  { %v616_v0 = vld [vmem:[%s827_s1 + $0x38] sm:$0xff]   ;;  %v617_v1 = vld [vmem:[%s827_s1 + $0x30] sm:$0xff]   ;;  %v618_v2 = vld [vmem:[%s827_s1 + $0x28] sm:$0xff]  }
   0x2   :  { %568 = vmatprep.subr.bf16.mxu0 %v616_v0  ;;  %600 = vmatprep.subr.bf16.mxu1 %v616_v0  ;;  %v619_v3 = vld [vmem:[%s827_s1 + $0x20] sm:$0xff]   ;;  %v620_v5 = vld [vmem:[%s827_s1 + $0x18] sm:$0xff]   ;;  %v621_v7 = vld [vmem:[%s827_s1 + $0x10] sm:$0xff]  }
   0x3   :  { %569 = vmatpush3.bf16.msra.mxu0 %v616_v0  ;;  %608 = vmatpush3.bf16.msra.mxu1 %v616_v0  ;;  %v624_v4 = vld [vmem:[%s828_s0] sm:$0xff]   ;;  %v622_v8 = vld [vmem:[%s827_s1 + $0x8] sm:$0xff]   ;;  %v626_v12 = vld [vmem:[%s828_s0 + $0x10] sm:$0xff]  }
   0x4   :  { %570 = vmatprep.subr.bf16.mxu0 %v617_v1  ;;  %601 = vmatprep.subr.bf16.mxu1 %v617_v1  ;;  %v628_v6 = vld [vmem:[%s828_s0 + $0x20] sm:$0xff]   ;;  %v625_v10 = vld [vmem:[%s828_s0 + $0x8] sm:$0xff]   ;;  %v630_v13 = vld [vmem:[%s828_s0 + $0x30] sm:$0xff]  }
   0x5   :  { %584 = vmatprep.mubr.bf16.mxu0 %v624_v4  ;;  %592 = vmatprep.mubr.bf16.mxu1 %v628_v6  ;;  %v623_v9 = vld [vmem:[%s827_s1] sm:$0xff]   ;;  %v629_v11 = vld [vmem:[%s828_s0 + $0x28] sm:$0xff]   ;;  %v627_v14 = vld [vmem:[%s828_s0 + $0x18] sm:$0xff]  }
   0x6   :  { %v631_v15 = vld [vmem:[%s828_s0 + $0x38] sm:$0xff]  }
   0x7   :  { %571 = vmatpush3.bf16.msra.mxu0 %v617_v1  ;;  %609 = vmatpush3.bf16.msra.mxu1 %v617_v1 }
   0x8   :  { %572 = vmatprep.subr.bf16.mxu0 %v618_v2  ;;  %602 = vmatprep.subr.bf16.mxu1 %v618_v2 }
   0xb   :  { %573 = vmatpush3.bf16.msra.mxu0 %v618_v2  ;;  %610 = vmatpush3.bf16.msra.mxu1 %v618_v2 }
   0xc   :  { %574 = vmatprep.subr.bf16.mxu0 %v619_v3  ;;  %603 = vmatprep.subr.bf16.mxu1 %v619_v3 }
   0xf   :  { %575 = vmatpush3.bf16.msra.mxu0 %v619_v3  ;;  %611 = vmatpush3.bf16.msra.mxu1 %v619_v3 }
  0x10   :  { %576 = vmatprep.subr.bf16.mxu0 %v620_v5  ;;  %604 = vmatprep.subr.bf16.mxu1 %v620_v5 }
  0x13   :  { %577 = vmatpush3.bf16.msra.mxu0 %v620_v5  ;;  %612 = vmatpush3.bf16.msra.mxu1 %v620_v5 }
  0x14   :  { %578 = vmatprep.subr.bf16.mxu0 %v621_v7  ;;  %605 = vmatprep.subr.bf16.mxu1 %v621_v7 }
  0x17   :  { %579 = vmatpush3.bf16.msra.mxu0 %v621_v7  ;;  %613 = vmatpush3.bf16.msra.mxu1 %v621_v7 }
  0x18   :  { %580 = vmatprep.subr.bf16.mxu0 %v622_v8  ;;  %606 = vmatprep.subr.bf16.mxu1 %v622_v8 }
  0x1b   :  { %581 = vmatpush3.bf16.msra.mxu0 %v622_v8  ;;  %614 = vmatpush3.bf16.msra.mxu1 %v622_v8 }
  0x1c   :  { %582 = vmatprep.subr.bf16.mxu0 %v623_v9  ;;  %607 = vmatprep.subr.bf16.mxu1 %v623_v9 }
  0x1f   :  { %583 = vmatpush3.bf16.msra.mxu0 %v623_v9  ;;  %615 = vmatpush3.bf16.msra.mxu1 %v623_v9 }
  0x22   :  { %585 = vmatmul.mubr.bf16.vlgmr.msra.gmra.mxu0 %v625_v10  ;;  %593 = vmatmul.mubr.bf16.vlgmr.msra.gmra.mxu1 %v629_v11 }
  0x23   :  { %588 = vmatprep.mubr.bf16.mxu0 %v626_v12  ;;  %596 = vmatprep.mubr.bf16.mxu1 %v630_v13 }
  0x2a   :  { %589 = vmatmul.mubr.bf16.gmra.mxu0 %v627_v14  ;;  %597 = vmatmul.mubr.bf16.gmra.mxu1 %v631_v15 }
  0xe2   :  { %v707_v16 = vpop.f32.mrf.mxu0  ;;  %v709_v17 = vpop.f32.mrf.mxu1 }
  0xe3   :  { %v268_v27 = vmul.f32 %v707_v16, %v707_v16  ;;  %v276_v58 = vmul.f32 %v709_v17, %v709_v17 }
  0xe4   :  { %v711_v18 = vpop.f32.mrf.mxu0  ;;  %v715_v20 = vpop.f32.mrf.mxu1 }
  0xe5   :  { %v266_v22 = vmul.f32 %v711_v18, %v711_v18  ;;  %v274_v51 = vmul.f32 %v715_v20, %v715_v20 }
  0xe6   :  { %v713_v19 = vpop.f32.mrf.mxu0  ;;  %v727_v26 = vpop.f32.mrf.mxu1 }
  0xe7   :  { %v269_v31 = vmul.f32 %v713_v19, %v713_v19  ;;  %v277_v61 = vmul.f32 %v727_v26, %v727_v26 }
  0xe8   :  { %v717_v21 = vpop.f32.mrf.mxu0  ;;  %v739_v35 = vpop.f32.mrf.mxu1 }
  0xe9   :  { %v245_v23 = vadd.f32 %v717_v21, %v711_v18  ;;  %v267_v24 = vmul.f32 %v717_v21, %v717_v21  ;;  %v275_v55 = vmul.f32 %v739_v35, %v739_v35 }
  0xea   :  { %v725_v25 = vpop.f32.mrf.mxu0  ;;  %v749_v43 = vpop.f32.mrf.mxu1 }
  0xeb   :  { %v246_v28 = vadd.f32 %v707_v16, %v245_v23  ;;  %v282_v29 = vadd.f32 %v267_v24, %v266_v22  ;;  %v272_v44 = vmul.f32 %v725_v25, %v725_v25  ;;  %v280_v7 = vmul.f32 %v749_v43, %v749_v43 }
  0xec   :  { %v732_v30 = vpop.f32.mrf.mxu0  ;;  %v757_v50 = vpop.f32.mrf.mxu1 }
  0xed   :  { %v283_v32 = vadd.f32 %v282_v29, %v268_v27  ;;  %v247_v33 = vadd.f32 %v713_v19, %v246_v28  ;;  %v270_v37 = vmul.f32 %v732_v30, %v732_v30  ;;  %v278_v2 = vmul.f32 %v757_v50, %v757_v50 }
  0xee   :  { %v737_v34 = vpop.f32.mrf.mxu0  ;;  %v765_v57 = vpop.f32.mrf.mxu1 }
  0xef   :  { %v248_v36 = vadd.f32 %v247_v33, %v732_v30  ;;  %v284_v38 = vadd.f32 %v283_v32, %v269_v31  ;;  %v273_v47 = vmul.f32 %v737_v34, %v737_v34  ;;  %v281_v10 = vmul.f32 %v765_v57, %v765_v57 }
  0xf0   :  { %v744_v39 = vpop.f32.mrf.mxu0  ;;  %v231_v0 = vpop.f32.mrf.mxu1 }
  0xf1   :  { %v285_v40 = vadd.f32 %v284_v38, %v270_v37  ;;  %v249_v41 = vadd.f32 %v248_v36, %v744_v39  ;;  %v271_v42 = vmul.f32 %v744_v39, %v744_v39  ;;  %v279_v6 = vmul.f32 %v231_v0, %v231_v0 }
  0xf3   :  { %v250_v45 = vadd.f32 %v725_v25, %v249_v41  ;;  %v286_v46 = vadd.f32 %v285_v40, %v271_v42 }
  0xf5   :  { %v251_v48 = vadd.f32 %v737_v34, %v250_v45  ;;  %v287_v49 = vadd.f32 %v286_v46, %v272_v44  ;;  %v314_v45 = vlaneseq }
  0xf7   :  { %v288_v52 = vadd.f32 %v287_v49, %v273_v47  ;;  %v252_v53 = vadd.f32 %v251_v48, %v715_v20  ;;  %v315_v46 = vshrl.u32 %v314_v45, 7  ;;  %v243_v47 = vld [vmem:[%s829_s2] sm:$0x1] }
  0xf9   :  { %v253_v54 = vadd.f32 %v252_v53, %v739_v35  ;;  %v289_v56 = vadd.f32 %v288_v52, %v274_v51  ;;  %v316_v48 = vsub.s32 0, %v315_v46  ;;  %v244_v52 = vld [vmem:[%s830_s3] sm:$0x1] }
  0xfb   :  { %v254_v59 = vadd.f32 %v709_v17, %v253_v54  ;;  %v290_v60 = vadd.f32 %v289_v56, %v275_v55 }
  0xfd   :  { %v291_v62 = vadd.f32 %v290_v60, %v276_v58  ;;  %v255_v63 = vadd.f32 %v727_v26, %v254_v59 }
  0xff   :  { %v256_v1 = vadd.f32 %v255_v63, %v757_v50  ;;  %v292_v3 = vadd.f32 %v291_v62, %v277_v61 }
 0x101   :  { %v293_v4 = vadd.f32 %v292_v3, %v278_v2  ;;  %v257_v5 = vadd.f32 %v256_v1, %v231_v0 }
 0x103   :  { %v258_v8 = vadd.f32 %v749_v43, %v257_v5  ;;  %v294_v9 = vadd.f32 %v293_v4, %v279_v6 }
 0x105   :  { %v259_v11 = vadd.f32 %v765_v57, %v258_v8  ;;  %v295_v12 = vadd.f32 %v294_v9, %v280_v7 }
 0x107   :  { %v260_v13 = vrot.slane %v259_v11, 4  ;;  %v296_v14 = vadd.f32 %v295_v12, %v281_v10 }
 0x109   :  { %v261_v15 = vadd.f32 %v260_v13, %v259_v11  ;;  %v297_v22 = vrot.slane %v296_v14, 4 }
 0x10b   :  { %v262_v23 = vrot.slane %v261_v15, 2  ;;  %v298_v24 = vadd.f32 %v297_v22, %v296_v14 }
 0x10d   :  { %v263_v27 = vadd.f32 %v262_v23, %v261_v15  ;;  %v299_v28 = vrot.slane %v298_v24, 2 }
 0x10f   :  { %v264_v29 = vrot.slane %v263_v27, 1  ;;  %v300_v31 = vadd.f32 %v299_v28, %v298_v24 }
 0x111   :  { %v265_v32 = vadd.f32 %v264_v29, %v263_v27  ;;  %v301_v33 = vrot.slane %v300_v31, 1 }
 0x113   :  { %v302_v36 = vadd.f32 %v301_v33, %v300_v31  ;;  %v303_v37 = vmul.f32 0.0078125, %v265_v32 }
 0x115   :  { %v304_v38 = vmul.f32 0.0078125, %v302_v36  ;;  %v305_v40 = vmul.f32 %v303_v37, %v303_v37 }
 0x117   :  { %v306_v41 = vsub.f32 %v304_v38, %v305_v40 }
 0x119   :  { %v307_v42 = vmax.f32 %v306_v41, 0.0 }
 0x11b   :  { %v308_v44 = vadd.f32 1e-05, %v307_v42 }
 0x11d   :  { %632 = vrsqrt.f32 %v308_v44 }
 0x12a   :  { %v633_v49 = vpop.eup %632 }
 0x12b   :  { %v310_v51 = vmul.f32 %v633_v49, %v243_v47 }
 0x12d   :  { %v311_v53 = vmul.f32 %v310_v51, %v303_v37  ;;  %v317_v54 = vrot.slane %v310_v51, %v316_v48 }
 0x12f   :  { %v312_v55 = vsub.f32 %v244_v52, %v311_v53  ;;  %v319_v56 = vmul.f32 %v317_v54, %v711_v18  ;;  %v320_v58 = vmul.f32 %v317_v54, %v717_v21  ;;  %v321_v59 = vmul.f32 %v707_v16, %v317_v54 }
 0x130   :  { %v322_v60 = vmul.f32 %v713_v19, %v317_v54  ;;  %v323_v61 = vmul.f32 %v317_v54, %v732_v30  ;;  %v324_v62 = vmul.f32 %v317_v54, %v744_v39  ;;  %v325_v63 = vmul.f32 %v725_v25, %v317_v54 }
 0x131   :  { %v326_v1 = vmul.f32 %v737_v34, %v317_v54  ;;  %v327_v2 = vmul.f32 %v317_v54, %v715_v20  ;;  %v328_v3 = vmul.f32 %v317_v54, %v739_v35  ;;  %v329_v18 = vmul.f32 %v709_v17, %v317_v54 }
 0x132   :  { %v330_v21 = vmul.f32 %v727_v26, %v317_v54  ;;  %v339_v4 = vrot.slane %v312_v55, %v316_v48  ;;  %v331_v16 = vmul.f32 %v317_v54, %v757_v50  ;;  %v332_v19 = vmul.f32 %v317_v54, %v231_v0 }
 0x133   :  { %v333_v30 = vmul.f32 %v749_v43, %v317_v54  ;;  %v334_v39 = vmul.f32 %v765_v57, %v317_v54 }
 0x134   :  { %v341_v5 = vadd.f32 %v339_v4, %v319_v56  ;;  %v342_v25 = vadd.f32 %v339_v4, %v320_v58  ;;  %v343_v6 = vadd.f32 %v339_v4, %v321_v59  ;;  %v344_v34 = vadd.f32 %v339_v4, %v322_v60 }
 0x135   :  { %v345_v7 = vadd.f32 %v339_v4, %v323_v61  ;;  %v346_v20 = vadd.f32 %v339_v4, %v324_v62  ;;  %v347_v8 = vadd.f32 %v339_v4, %v325_v63  ;;  %v348_v35 = vadd.f32 %v339_v4, %v326_v1 }
 0x136   :  { %v349_v9 = vadd.f32 %v339_v4, %v327_v2  ;;  %v350_v17 = vadd.f32 %v339_v4, %v328_v3  ;;  %v351_v10 = vadd.f32 %v339_v4, %v329_v18  ;;  %v352_v26 = vadd.f32 %v339_v4, %v330_v21 }
 0x137   :  { %v353_v11 = vadd.f32 %v339_v4, %v331_v16  ;;  %v354_v12 = vadd.f32 %v339_v4, %v332_v19  ;;  %v355_v50 = vadd.f32 %v339_v4, %v333_v30  ;;  %v356_v0 = vadd.f32 %v339_v4, %v334_v39 }
 0x138   :  { %v357_v13 = vmax.f32 %v341_v5, 0.0  ;;  %v358_v43 = vmax.f32 %v342_v25, 0.0  ;;  %v359_v14 = vmax.f32 %v343_v6, 0.0  ;;  %v360_v57 = vmax.f32 %v344_v34, 0.0 }
 0x139   :  { %v361_v15 = vmax.f32 %v345_v7, 0.0  ;;  %v362_v22 = vmax.f32 %v346_v20, 0.0  ;;  %v363_v23 = vmax.f32 %v347_v8, 0.0  ;;  %v364_v24 = vmax.f32 %v348_v35, 0.0 }
 0x13a   :  { %v365_v27 = vmax.f32 %v349_v9, 0.0  ;;  %v366_v28 = vmax.f32 %v350_v17, 0.0  ;;  %v367_v29 = vmax.f32 %v351_v10, 0.0  ;;  %v368_v31 = vmax.f32 %v352_v26, 0.0 }
 0x13b   :  { %v369_v32 = vmax.f32 %v353_v11, 0.0  ;;  %v370_v33 = vmax.f32 %v354_v12, 0.0  ;;  %v371_v36 = vmax.f32 %v355_v50, 0.0  ;;  %v372_v37 = vmax.f32 %v356_v0, 0.0 }
 0x13c   :  { %v508_v38 = vpack.c.bf16 %v358_v43, %v357_v13  ;;  %v513_v40 = vpack.c.bf16 %v360_v57, %v359_v14  ;;  %v518_v41 = vpack.c.bf16 %v362_v22, %v361_v15  ;;  %v523_v42 = vpack.c.bf16 %v364_v24, %v363_v23 }
 0x13d   :  { %v528_v44 = vpack.c.bf16 %v366_v28, %v365_v27  ;;  %v533_v45 = vpack.c.bf16 %v368_v31, %v367_v29  ;;  %v538_v46 = vpack.c.bf16 %v370_v33, %v369_v32  ;;  %v543_v47 = vpack.c.bf16 %v372_v37, %v371_v36 }
 0x13e   :  { %509 = vst [vmem:[%s831_s4] sm:$0xff] %v508_v38   ;;  %545 = vst [vmem:[%s831_s4 + $0x8] sm:$0xff] %v513_v40  }
 0x13f   :  { %546 = vst [vmem:[%s831_s4 + $0x10] sm:$0xff] %v518_v41   ;;  %547 = vst [vmem:[%s831_s4 + $0x18] sm:$0xff] %v523_v42  }
 0x140   :  { %548 = vst [vmem:[%s831_s4 + $0x20] sm:$0xff] %v528_v44   ;;  %549 = vst [vmem:[%s831_s4 + $0x28] sm:$0xff] %v533_v45  }
 0x141   :  { %550 = vst [vmem:[%s831_s4 + $0x30] sm:$0xff] %v538_v46   ;;  %551 = vst [vmem:[%s831_s4 + $0x38] sm:$0xff] %v543_v47  }

// kernel: forward.15
= control target key start
LH: loop header
LB: loop body
LE: loop exit
PB: predicated region body
PF: predicated region fallthrough
CT: control target
= control target key end

     0   :  { %v182_v42 = vlaneseq  ;;  %s367_s1 = inlined_call_operand.vmem [shape: bf16[128,128], index: 1, kind: input, shape index: {}]   ;;  %s368_s0 = inlined_call_operand.vmem [shape: bf16[32,128], index: 0, kind: input, shape index: {}]   ;;  %s369_s2 = inlined_call_operand.vmem [shape: f32[1,128], index: 2, kind: input, shape index: {}]   ;;  %s370_s3 = inlined_call_operand.vmem [shape: f32[1,128], index: 3, kind: input, shape index: {}]   ;;  %s371_s4 = inlined_call_operand.vmem [shape: bf16[32,128], index: 4, kind: output, shape index: {}]  }
   0x1   :  { %v288_v0 = vld [vmem:[%s367_s1 + $0x38] sm:$0xff]   ;;  %v289_v1 = vld [vmem:[%s367_s1 + $0x30] sm:$0xff]   ;;  %v290_v2 = vld [vmem:[%s367_s1 + $0x28] sm:$0xff]  }
   0x2   :  { %268 = vmatprep.subr.bf16.mxu0 %v288_v0  ;;  %v291_v3 = vld [vmem:[%s367_s1 + $0x20] sm:$0xff]   ;;  %v292_v5 = vld [vmem:[%s367_s1 + $0x18] sm:$0xff]   ;;  %v293_v6 = vld [vmem:[%s367_s1 + $0x10] sm:$0xff]   ;;  %v183_v43 = vshrl.u32 %v182_v42, 7 }
   0x3   :  { %269 = vmatpush3.bf16.msra.mxu0 %v288_v0  ;;  %v296_v4 = vld [vmem:[%s368_s0] sm:$0xff]   ;;  %v294_v7 = vld [vmem:[%s367_s1 + $0x8] sm:$0xff]  }
   0x4   :  { %270 = vmatprep.subr.bf16.mxu0 %v289_v1  ;;  %284 = vmatprep.mubr.bf16.mxu0 %v296_v4  ;;  %v295_v8 = vld [vmem:[%s367_s1] sm:$0xff]   ;;  %v297_v9 = vld [vmem:[%s368_s0 + $0x8] sm:$0xff]   ;;  %v184_v45 = vsub.s32 0, %v183_v43 }
   0x5   :  { %v147_v44 = vld [vmem:[%s369_s2] sm:$0x1] }
   0x6   :  { %v148_v48 = vld [vmem:[%s370_s3] sm:$0x1] }
   0x7   :  { %271 = vmatpush3.bf16.msra.mxu0 %v289_v1 }
   0x8   :  { %272 = vmatprep.subr.bf16.mxu0 %v290_v2 }
   0xb   :  { %273 = vmatpush3.bf16.msra.mxu0 %v290_v2 }
   0xc   :  { %274 = vmatprep.subr.bf16.mxu0 %v291_v3 }
   0xf   :  { %275 = vmatpush3.bf16.msra.mxu0 %v291_v3 }
  0x10   :  { %276 = vmatprep.subr.bf16.mxu0 %v292_v5 }
  0x13   :  { %277 = vmatpush3.bf16.msra.mxu0 %v292_v5 }
  0x14   :  { %278 = vmatprep.subr.bf16.mxu0 %v293_v6 }
  0x17   :  { %279 = vmatpush3.bf16.msra.mxu0 %v293_v6 }
  0x18   :  { %280 = vmatprep.subr.bf16.mxu0 %v294_v7 }
  0x1b   :  { %281 = vmatpush3.bf16.msra.mxu0 %v294_v7 }
  0x1c   :  { %282 = vmatprep.subr.bf16.mxu0 %v295_v8 }
  0x1f   :  { %283 = vmatpush3.bf16.msra.mxu0 %v295_v8 }
  0x22   :  { %285 = vmatmul.mubr.bf16.vlgmr.msra.gmra.mxu0 %v297_v9 }
  0xe2   :  { %v286_v10 = vpop.f32.mrf.mxu0 }
  0xe3   :  { %v160_v17 = vmul.f32 %v286_v10, %v286_v10 }
  0xe4   :  { %v132_v11 = vpop.f32.mrf.mxu0 }
  0xe5   :  { %v158_v14 = vmul.f32 %v132_v11, %v132_v11 }
  0xe6   :  { %v287_v12 = vpop.f32.mrf.mxu0 }
  0xe7   :  { %v161_v20 = vmul.f32 %v287_v12, %v287_v12 }
  0xe8   :  { %v135_v13 = vpop.f32.mrf.mxu0 }
  0xe9   :  { %v149_v15 = vadd.f32 %v135_v13, %v132_v11  ;;  %v159_v16 = vmul.f32 %v135_v13, %v135_v13 }
  0xeb   :  { %v150_v18 = vadd.f32 %v286_v10, %v149_v15  ;;  %v162_v19 = vadd.f32 %v159_v16, %v158_v14 }
  0xed   :  { %v151_v21 = vadd.f32 %v287_v12, %v150_v18  ;;  %v163_v22 = vadd.f32 %v162_v19, %v160_v17 }
  0xef   :  { %v152_v23 = vrot.slane %v151_v21, 4  ;;  %v164_v24 = vadd.f32 %v163_v22, %v161_v20 }
  0xf1   :  { %v153_v25 = vadd.f32 %v152_v23, %v151_v21  ;;  %v165_v26 = vrot.slane %v164_v24, 4 }
  0xf3   :  { %v154_v27 = vrot.slane %v153_v25, 2  ;;  %v166_v28 = vadd.f32 %v165_v26, %v164_v24 }
  0xf5   :  { %v155_v29 = vadd.f32 %v154_v27, %v153_v25  ;;  %v167_v30 = vrot.slane %v166_v28, 2 }
  0xf7   :  { %v156_v31 = vrot.slane %v155_v29, 1  ;;  %v168_v32 = vadd.f32 %v167_v30, %v166_v28 }
  0xf9   :  { %v157_v33 = vadd.f32 %v156_v31, %v155_v29  ;;  %v169_v34 = vrot.slane %v168_v32, 1 }
  0xfb   :  { %v170_v35 = vadd.f32 %v169_v34, %v168_v32  ;;  %v171_v36 = vmul.f32 0.03125, %v157_v33 }
  0xfd   :  { %v172_v37 = vmul.f32 0.03125, %v170_v35  ;;  %v173_v38 = vmul.f32 %v171_v36, %v171_v36 }
  0xff   :  { %v174_v39 = vsub.f32 %v172_v37, %v173_v38 }
 0x101   :  { %v175_v40 = vmax.f32 %v174_v39, 0.0 }
 0x103   :  { %v176_v41 = vadd.f32 1e-05, %v175_v40 }
 0x105   :  { %298 = vrsqrt.f32 %v176_v41 }
 0x112   :  { %v299_v46 = vpop.eup %298 }
 0x113   :  { %v178_v47 = vmul.f32 %v299_v46, %v147_v44 }
 0x115   :  { %v179_v49 = vmul.f32 %v178_v47, %v171_v36  ;;  %v185_v50 = vrot.slane %v178_v47, %v184_v45 }
 0x117   :  { %v180_v51 = vsub.f32 %v148_v48, %v179_v49  ;;  %v187_v52 = vmul.f32 %v185_v50, %v132_v11  ;;  %v188_v53 = vmul.f32 %v185_v50, %v135_v13  ;;  %v189_v54 = vmul.f32 %v286_v10, %v185_v50 }
 0x118   :  { %v190_v55 = vmul.f32 %v287_v12, %v185_v50 }
 0x119   :  { %v195_v56 = vrot.slane %v180_v51, %v184_v45 }
 0x11b   :  { %v197_v57 = vadd.f32 %v195_v56, %v187_v52  ;;  %v198_v58 = vadd.f32 %v195_v56, %v188_v53  ;;  %v199_v59 = vadd.f32 %v195_v56, %v189_v54  ;;  %v200_v60 = vadd.f32 %v195_v56, %v190_v55 }
 0x11d   :  { %v201_v61 = vmax.f32 %v197_v57, 0.0  ;;  %v202_v62 = vmax.f32 %v198_v58, 0.0  ;;  %v203_v63 = vmax.f32 %v199_v59, 0.0  ;;  %v204_v0 = vmax.f32 %v200_v60, 0.0 }
 0x11f   :  { %v250_v1 = vpack.c.bf16 %v202_v62, %v201_v61  ;;  %v255_v2 = vpack.c.bf16 %v204_v0, %v203_v63 }
 0x121   :  { %251 = vst [vmem:[%s371_s4] sm:$0xff] %v250_v1   ;;  %257 = vst [vmem:[%s371_s4 + $0x8] sm:$0xff] %v255_v2  }

// kernel: forward.16
= control target key start
LH: loop header
LB: loop body
LE: loop exit
PB: predicated region body
PF: predicated region fallthrough
CT: control target
= control target key end

     0   :  { %v254_v60 = vlaneseq  ;;  %s505_s1 = inlined_call_operand.vmem [shape: bf16[256,128], index: 1, kind: input, shape index: {}]   ;;  %s506_s0 = inlined_call_operand.vmem [shape: bf16[32,256], index: 0, kind: input, shape index: {}]   ;;  %s507_s2 = inlined_call_operand.vmem [shape: f32[1,128], index: 2, kind: input, shape index: {}]   ;;  %s508_s3 = inlined_call_operand.vmem [shape: f32[1,128], index: 3, kind: input, shape index: {}]   ;;  %s509_s4 = inlined_call_operand.vmem [shape: bf16[32,128], index: 4, kind: output, shape index: {}]  }
   0x1   :  { %v384_v0 = vld [vmem:[%s505_s1 + $0x78] sm:$0xff]   ;;  %v386_v2 = vld [vmem:[%s505_s1 + $0x70] sm:$0xff]   ;;  %v388_v4 = vld [vmem:[%s505_s1 + $0x68] sm:$0xff]  }
   0x2   :  { %v385_v1 = vld [vmem:[%s505_s1 + $0x38] sm:$0xff]   ;;  %340 = vmatprep.subr.bf16.mxu0 %v384_v0  ;;  %368 = vmatprep.subr.bf16.mxu1 %v384_v0  ;;  %v387_v3 = vld [vmem:[%s505_s1 + $0x30] sm:$0xff]   ;;  %v389_v5 = vld [vmem:[%s505_s1 + $0x28] sm:$0xff]   ;;  %v255_v61 = vshrl.u32 %v254_v60, 7 }
   0x3   :  { %341 = vmatpush3.bf16.msra.mxu0 %v385_v1  ;;  %376 = vmatpush3.bf16.msra.mxu1 %v385_v1  ;;  %v390_v6 = vld [vmem:[%s505_s1 + $0x60] sm:$0xff]   ;;  %v392_v8 = vld [vmem:[%s505_s1 + $0x58] sm:$0xff]   ;;  %v394_v10 = vld [vmem:[%s505_s1 + $0x50] sm:$0xff]  }
   0x4   :  { %342 = vmatprep.subr.bf16.mxu0 %v386_v2  ;;  %369 = vmatprep.subr.bf16.mxu1 %v386_v2  ;;  %v391_v7 = vld [vmem:[%s505_s1 + $0x20] sm:$0xff]   ;;  %v393_v9 = vld [vmem:[%s505_s1 + $0x18] sm:$0xff]   ;;  %v395_v13 = vld [vmem:[%s505_s1 + $0x10] sm:$0xff]   ;;  %v256_v63 = vsub.s32 0, %v255_v61 }
   0x5   :  { %v402_v11 = vld [vmem:[%s506_s0 + $0x4] ss:$8 sps:$4 sm:$0xff]   ;;  %v405_v12 = vld [vmem:[%s506_s0 + $0x14] ss:$8 sps:$4 sm:$0xff]   ;;  %v400_v18 = vld [vmem:[%s506_s0] ss:$8 sps:$4 sm:$0xff]  }
   0x6   :  { %v396_v14 = vld [vmem:[%s505_s1 + $0x48] sm:$0xff]   ;;  %202 = vmatprep.mubr.bf16.mxu0 %v402_v11  ;;  %210 = vmatprep.mubr.bf16.mxu1 %v405_v12  ;;  %v398_v16 = vld [vmem:[%s505_s1 + $0x40] sm:$0xff]   ;;  %v403_v19 = vld [vmem:[%s506_s0 + $0x10] ss:$8 sps:$4 sm:$0xff]  }
   0x7   :  { %343 = vmatpush3.bf16.msra.mxu0 %v387_v3  ;;  %377 = vmatpush3.bf16.msra.mxu1 %v387_v3  ;;  %v397_v15 = vld [vmem:[%s505_s1 + $0x8] sm:$0xff]   ;;  %v399_v17 = vld [vmem:[%s505_s1] sm:$0xff]  }
   0x8   :  { %344 = vmatprep.subr.bf16.mxu0 %v388_v4  ;;  %370 = vmatprep.subr.bf16.mxu1 %v388_v4  ;;  %v219_v62 = vld [vmem:[%s507_s2] sm:$0x1] }
   0x9   :  { %v220_v2 = vld [vmem:[%s508_s3] sm:$0x1] }
   0xb   :  { %345 = vmatpush3.bf16.msra.mxu0 %v389_v5  ;;  %378 = vmatpush3.bf16.msra.mxu1 %v389_v5 }
   0xc   :  { %346 = vmatprep.subr.bf16.mxu0 %v390_v6  ;;  %371 = vmatprep.subr.bf16.mxu1 %v390_v6 }
   0xf   :  { %347 = vmatpush3.bf16.msra.mxu0 %v391_v7  ;;  %379 = vmatpush3.bf16.msra.mxu1 %v391_v7 }
  0x10   :  { %348 = vmatprep.subr.bf16.mxu0 %v392_v8  ;;  %372 = vmatprep.subr.bf16.mxu1 %v392_v8 }
  0x13   :  { %349 = vmatpush3.bf16.msra.mxu0 %v393_v9  ;;  %380 = vmatpush3.bf16.msra.mxu1 %v393_v9 }
  0x14   :  { %350 = vmatprep.subr.bf16.mxu0 %v394_v10  ;;  %373 = vmatprep.subr.bf16.mxu1 %v394_v10 }
  0x17   :  { %351 = vmatpush3.bf16.msra.mxu0 %v395_v13  ;;  %381 = vmatpush3.bf16.msra.mxu1 %v395_v13 }
  0x18   :  { %352 = vmatprep.subr.bf16.mxu0 %v396_v14  ;;  %374 = vmatprep.subr.bf16.mxu1 %v396_v14 }
  0x1b   :  { %353 = vmatpush3.bf16.msra.mxu0 %v397_v15  ;;  %382 = vmatpush3.bf16.msra.mxu1 %v397_v15 }
  0x1c   :  { %354 = vmatprep.subr.bf16.mxu0 %v398_v16  ;;  %375 = vmatprep.subr.bf16.mxu1 %v398_v16 }
  0x1f   :  { %355 = vmatpush3.bf16.msra.mxu0 %v399_v17  ;;  %383 = vmatpush3.bf16.msra.mxu1 %v399_v17 }
  0x22   :  { %203 = vmatmul.mubr.bf16.vlgmr.msra.gmra.mxu0 %v400_v18  ;;  %211 = vmatmul.mubr.bf16.vlgmr.msra.gmra.mxu1 %v403_v19 }
  0xe2   :  { %v356_v20 = vpop.f32.mrf.mxu0  ;;  %v362_v21 = vpop.f32.mrf.mxu1 }
  0xe4   :  { %v357_v22 = vpop.f32.mrf.mxu0  ;;  %v363_v23 = vpop.f32.mrf.mxu1 }
  0xe5   :  { %v358_v26 = vadd.f32 %v357_v22, %v356_v20  ;;  %v364_v29 = vadd.f32 %v363_v23, %v362_v21 }
  0xe6   :  { %v359_v24 = vpop.f32.mrf.mxu0  ;;  %v365_v25 = vpop.f32.mrf.mxu1 }
  0xe7   :  { %v230_v31 = vmul.f32 %v358_v26, %v358_v26  ;;  %v232_v35 = vmul.f32 %v364_v29, %v364_v29 }
  0xe8   :  { %v360_v27 = vpop.f32.mrf.mxu0  ;;  %v366_v28 = vpop.f32.mrf.mxu1 }
  0xe9   :  { %v361_v30 = vadd.f32 %v360_v27, %v359_v24  ;;  %v367_v34 = vadd.f32 %v366_v28, %v365_v25 }
  0xeb   :  { %v221_v32 = vadd.f32 %v361_v30, %v358_v26  ;;  %v231_v33 = vmul.f32 %v361_v30, %v361_v30  ;;  %v233_v39 = vmul.f32 %v367_v34, %v367_v34 }
  0xed   :  { %v234_v36 = vadd.f32 %v231_v33, %v230_v31  ;;  %v222_v37 = vadd.f32 %v364_v29, %v221_v32 }
  0xef   :  { %v223_v38 = vadd.f32 %v367_v34, %v222_v37  ;;  %v235_v40 = vadd.f32 %v234_v36, %v232_v35 }
  0xf1   :  { %v224_v41 = vrot.slane %v223_v38, 4  ;;  %v236_v42 = vadd.f32 %v235_v40, %v233_v39 }
  0xf3   :  { %v225_v43 = vadd.f32 %v224_v41, %v223_v38  ;;  %v237_v44 = vrot.slane %v236_v42, 4 }
  0xf5   :  { %v226_v45 = vrot.slane %v225_v43, 2  ;;  %v238_v46 = vadd.f32 %v237_v44, %v236_v42 }
  0xf7   :  { %v227_v47 = vadd.f32 %v226_v45, %v225_v43  ;;  %v239_v48 = vrot.slane %v238_v46, 2 }
  0xf9   :  { %v228_v49 = vrot.slane %v227_v47, 1  ;;  %v240_v50 = vadd.f32 %v239_v48, %v238_v46 }
  0xfb   :  { %v229_v51 = vadd.f32 %v228_v49, %v227_v47  ;;  %v241_v52 = vrot.slane %v240_v50, 1 }
  0xfd   :  { %v242_v53 = vadd.f32 %v241_v52, %v240_v50  ;;  %v243_v54 = vmul.f32 0.03125, %v229_v51 }
  0xff   :  { %v244_v55 = vmul.f32 0.03125, %v242_v53  ;;  %v245_v56 = vmul.f32 %v243_v54, %v243_v54 }
 0x101   :  { %v246_v57 = vsub.f32 %v244_v55, %v245_v56 }
 0x103   :  { %v247_v58 = vmax.f32 %v246_v57, 0.0 }
 0x105   :  { %v248_v59 = vadd.f32 1e-05, %v247_v58 }
 0x107   :  { %406 = vrsqrt.f32 %v248_v59 }
 0x114   :  { %v407_v0 = vpop.eup %406 }
 0x115   :  { %v250_v1 = vmul.f32 %v407_v0, %v219_v62 }
 0x117   :  { %v251_v3 = vmul.f32 %v250_v1, %v243_v54  ;;  %v257_v4 = vrot.slane %v250_v1, %v256_v63 }
 0x119   :  { %v252_v5 = vsub.f32 %v220_v2, %v251_v3  ;;  %v259_v6 = vmul.f32 %v358_v26, %v257_v4  ;;  %v260_v7 = vmul.f32 %v361_v30, %v257_v4  ;;  %v261_v8 = vmul.f32 %v364_v29, %v257_v4 }
 0x11a   :  { %v262_v9 = vmul.f32 %v367_v34, %v257_v4 }
 0x11b   :  { %v267_v10 = vrot.slane %v252_v5, %v256_v63 }
 0x11d   :  { %v269_v11 = vadd.f32 %v267_v10, %v259_v6  ;;  %v270_v12 = vadd.f32 %v267_v10, %v260_v7  ;;  %v271_v13 = vadd.f32 %v267_v10, %v261_v8  ;;  %v272_v14 = vadd.f32 %v267_v10, %v262_v9 }
 0x11f   :  { %v273_v15 = vmax.f32 %v269_v11, 0.0  ;;  %v274_v16 = vmax.f32 %v270_v12, 0.0  ;;  %v275_v17 = vmax.f32 %v271_v13, 0.0  ;;  %v276_v18 = vmax.f32 %v272_v14, 0.0 }
 0x121   :  { %v332_v19 = vpack.c.bf16 %v274_v16, %v273_v15  ;;  %v337_v20 = vpack.c.bf16 %v276_v18, %v275_v17 }
 0x123   :  { %333 = vst [vmem:[%s509_s4] sm:$0xff] %v332_v19   ;;  %339 = vst [vmem:[%s509_s4 + $0x8] sm:$0xff] %v337_v20  }

// kernel: forward.20
= control target key start
LH: loop header
LB: loop body
LE: loop exit
PB: predicated region body
PF: predicated region fallthrough
CT: control target
= control target key end

     0   :  { %v220_v43 = vlaneseq  ;;  %s385_s1 = inlined_call_operand.vmem [shape: bf16[256,128], index: 1, kind: input, shape index: {}]   ;;  %s386_s0 = inlined_call_operand.vmem [shape: bf16[8,256], index: 0, kind: input, shape index: {}]   ;;  %s387_s2 = inlined_call_operand.vmem [shape: f32[1,128], index: 2, kind: input, shape index: {}]   ;;  %s388_s3 = inlined_call_operand.vmem [shape: f32[1,128], index: 3, kind: input, shape index: {}]   ;;  %s389_s4 = inlined_call_operand.vmem [shape: bf16[8,128], index: 4, kind: output, shape index: {}]  }
   0x1   :  { %v280_v0 = vld [vmem:[%s385_s1 + $0x78] sm:$0xff]   ;;  %v282_v2 = vld [vmem:[%s385_s1 + $0x70] sm:$0xff]   ;;  %v284_v4 = vld [vmem:[%s385_s1 + $0x68] sm:$0xff]  }
   0x2   :  { %v281_v1 = vld [vmem:[%s385_s1 + $0x38] sm:$0xff]   ;;  %258 = vmatprep.subr.bf16.mxu0 %v280_v0  ;;  %v283_v3 = vld [vmem:[%s385_s1 + $0x30] sm:$0xff]   ;;  %v285_v5 = vld [vmem:[%s385_s1 + $0x28] sm:$0xff]   ;;  %v221_v44 = vshrl.u32 %v220_v43, 7 }
   0x3   :  { %259 = vmatpush3.bf16.msra.mxu0 %v281_v1  ;;  %v286_v6 = vld [vmem:[%s385_s1 + $0x60] sm:$0xff]   ;;  %v288_v8 = vld [vmem:[%s385_s1 + $0x58] sm:$0xff]   ;;  %v290_v10 = vld [vmem:[%s385_s1 + $0x50] sm:$0xff]  }
   0x4   :  { %260 = vmatprep.subr.bf16.mxu0 %v282_v2  ;;  %v287_v7 = vld [vmem:[%s385_s1 + $0x20] sm:$0xff]   ;;  %v289_v9 = vld [vmem:[%s385_s1 + $0x18] sm:$0xff]   ;;  %v291_v13 = vld [vmem:[%s385_s1 + $0x10] sm:$0xff]   ;;  %v222_v46 = vsub.s32 0, %v221_v44 }
   0x5   :  { %v18_v11 = vld [vmem:[%s386_s0] sm:$0xff]  ;;  %v292_v14 = vld [vmem:[%s385_s1 + $0x48] sm:$0xff]  }
   0x6   :  { %v241_v12 = vcombine.high %v18_v11, %v18_v11  ;;  %v293_v15 = vld [vmem:[%s385_s1 + $0x8] sm:$0xff]   ;;  %v294_v16 = vld [vmem:[%s385_s1 + $0x40] sm:$0xff]   ;;  %v240_v18 = vcombine.low %v18_v11, %v18_v11 }
   0x7   :  { %261 = vmatpush3.bf16.msra.mxu0 %v283_v3  ;;  %v295_v17 = vld [vmem:[%s385_s1] sm:$0xff]  }
   0x8   :  { %262 = vmatprep.subr.bf16.mxu0 %v284_v4  ;;  %186 = vmatprep.mubr.bf16.mxu0 %v241_v12  ;;  %v194_v45 = vld [vmem:[%s387_s2] sm:$0x1] }
   0x9   :  { %v195_v49 = vld [vmem:[%s388_s3] sm:$0x1] }
   0xb   :  { %263 = vmatpush3.bf16.msra.mxu0 %v285_v5 }
   0xc   :  { %264 = vmatprep.subr.bf16.mxu0 %v286_v6 }
   0xf   :  { %265 = vmatpush3.bf16.msra.mxu0 %v287_v7 }
  0x10   :  { %266 = vmatprep.subr.bf16.mxu0 %v288_v8 }
  0x13   :  { %267 = vmatpush3.bf16.msra.mxu0 %v289_v9 }
  0x14   :  { %268 = vmatprep.subr.bf16.mxu0 %v290_v10 }
  0x17   :  { %269 = vmatpush3.bf16.msra.mxu0 %v291_v13 }
  0x18   :  { %270 = vmatprep.subr.bf16.mxu0 %v292_v14 }
  0x1b   :  { %271 = vmatpush3.bf16.msra.mxu0 %v293_v15 }
  0x1c   :  { %272 = vmatprep.subr.bf16.mxu0 %v294_v16 }
  0x1f   :  { %273 = vmatpush3.bf16.msra.mxu0 %v295_v17 }
  0x22   :  { %187 = vmatmul.mubr.bf16.vlgmr.msra.gmra.mxu0 %v240_v18 }
  0xe2   :  { %v274_v19 = vpop.f32.mrf.mxu0 }
  0xe4   :  { %v275_v20 = vpop.f32.mrf.mxu0 }
  0xe5   :  { %v276_v21 = vadd.f32 %v275_v20, %v274_v19 }
  0xe6   :  { %v277_v22 = vpop.f32.mrf.mxu0 }
  0xe7   :  { %v196_v23 = vrot.slane %v276_v21, 4  ;;  %v202_v24 = vmul.f32 %v276_v21, %v276_v21 }
  0xe8   :  { %v278_v25 = vpop.f32.mrf.mxu0 }
  0xe9   :  { %v197_v26 = vadd.f32 %v276_v21, %v196_v23  ;;  %v203_v27 = vrot.slane %v202_v24, 4 }
  0xeb   :  { %v198_v28 = vrot.slane %v197_v26, 2  ;;  %v204_v29 = vadd.f32 %v203_v27, %v202_v24 }
  0xed   :  { %v199_v30 = vadd.f32 %v198_v28, %v197_v26  ;;  %v205_v31 = vrot.slane %v204_v29, 2 }
  0xef   :  { %v200_v32 = vrot.slane %v199_v30, 1  ;;  %v206_v33 = vadd.f32 %v205_v31, %v204_v29 }
  0xf1   :  { %v201_v34 = vadd.f32 %v200_v32, %v199_v30  ;;  %v207_v35 = vrot.slane %v206_v33, 1 }
  0xf3   :  { %v208_v36 = vadd.f32 %v207_v35, %v206_v33  ;;  %v209_v37 = vmul.f32 0.125, %v201_v34 }
  0xf5   :  { %v210_v38 = vmul.f32 0.125, %v208_v36  ;;  %v211_v39 = vmul.f32 %v209_v37, %v209_v37 }
  0xf7   :  { %v212_v40 = vsub.f32 %v210_v38, %v211_v39 }
  0xf9   :  { %v213_v41 = vmax.f32 %v212_v40, 0.0 }
  0xfb   :  { %v214_v42 = vadd.f32 1e-05, %v213_v41 }
  0xfd   :  { %298 = vrsqrt.f32 %v214_v42 }
 0x10a   :  { %v299_v47 = vpop.eup %298 }
 0x10b   :  { %v216_v48 = vmul.f32 %v299_v47, %v194_v45 }
 0x10d   :  { %v217_v50 = vmul.f32 %v216_v48, %v209_v37  ;;  %v223_v51 = vrot.slane %v216_v48, %v222_v46 }
 0x10f   :  { %v218_v52 = vsub.f32 %v195_v49, %v217_v50  ;;  %v225_v53 = vmul.f32 %v276_v21, %v223_v51 }
 0x111   :  { %v230_v54 = vrot.slane %v218_v52, %v222_v46 }
 0x113   :  { %v232_v55 = vadd.f32 %v230_v54, %v225_v53 }
 0x115   :  { %v233_v56 = vmax.f32 %v232_v55, 0.0 }
 0x117   :  { %v234_v57 = vpack.c.bf16 %v233_v56, %v233_v56 }
 0x119   :  { %235 = vst [vmem:[%s389_s4] sm:$0xf] %v234_v57 }

// kernel: forward.19
= control target key start
LH: loop header
LB: loop body
LE: loop exit
PB: predicated region body
PF: predicated region fallthrough
CT: control target
= control target key end

     0   :  { %v790_v1 = vmov 0   ;;  %s1079_s1 = inlined_call_operand.vmem [shape: bf16[128,256], index: 1, kind: input, shape index: {}]   ;;  %s1080_s5 = inlined_call_operand.vmem [shape: bf16[128,256], index: 5, kind: input, shape index: {}]   ;;  %s1081_s0 = inlined_call_operand.vmem [shape: bf16[32,128], index: 0, kind: input, shape index: {}]   ;;  %s1082_s4 = inlined_call_operand.vmem [shape: bf16[32,128], index: 4, kind: input, shape index: {}]   ;;  %s1083_s2 = inlined_call_operand.vmem [shape: f32[1,256], index: 2, kind: input, shape index: {}]   ;;  %s1084_s6 = inlined_call_operand.vmem [shape: f32[1,256], index: 6, kind: input, shape index: {}]   ;;  %s1085_s3 = inlined_call_operand.vmem [shape: f32[1,256], index: 3, kind: input, shape index: {}]   ;;  %s1086_s7 = inlined_call_operand.vmem [shape: f32[1,256], index: 7, kind: input, shape index: {}]   ;;  %s1087_s8 = inlined_call_operand.vmem [shape: bf16[32,256], index: 8, kind: output, shape index: {}]  }
   0x1   :  { %v730_v0 = vld [vmem:[%s1079_s1 + $0x74] ss:$8 sps:$4 sm:$0xff]   ;;  %174 = vmatprep.mubr.bf16.mxu0 %v790_v1  ;;  %339 = vmatprep.mubr.bf16.mxu1 %v790_v1  ;;  %v734_v3 = vld [vmem:[%s1079_s1 + $0x70] ss:$8 sps:$4 sm:$0xff]   ;;  %v736_v5 = vld [vmem:[%s1079_s1 + $0x64] ss:$8 sps:$4 sm:$0xff]  }
   0x2   :  { %v732_v2 = vld [vmem:[%s1080_s5 + $0x74] ss:$8 sps:$4 sm:$0xff]   ;;  %142 = vmatprep.subr.bf16.mxu0 %v730_v0  ;;  %v735_v4 = vld [vmem:[%s1080_s5 + $0x70] ss:$8 sps:$4 sm:$0xff]   ;;  %v738_v6 = vld [vmem:[%s1080_s5 + $0x64] ss:$8 sps:$4 sm:$0xff]  }
   0x3   :  { %307 = vmatprep.subr.bf16.mxu1 %v732_v2  ;;  %143 = vmatpush1.bf16.msra.mxu0 %v734_v3  ;;  %v740_v7 = vld [vmem:[%s1079_s1 + $0x60] ss:$8 sps:$4 sm:$0xff]   ;;  %v742_v9 = vld [vmem:[%s1079_s1 + $0x54] ss:$8 sps:$4 sm:$0xff]   ;;  %v746_v11 = vld [vmem:[%s1079_s1 + $0x50] ss:$8 sps:$4 sm:$0xff]  }
   0x4   :  { %308 = vmatpush1.bf16.msra.mxu1 %v735_v4  ;;  %144 = vmatprep.subr.bf16.mxu0 %v736_v5  ;;  %v741_v8 = vld [vmem:[%s1080_s5 + $0x60] ss:$8 sps:$4 sm:$0xff]   ;;  %v744_v10 = vld [vmem:[%s1080_s5 + $0x54] ss:$8 sps:$4 sm:$0xff]   ;;  %v747_v12 = vld [vmem:[%s1080_s5 + $0x50] ss:$8 sps:$4 sm:$0xff]  }
   0x5   :  { %309 = vmatprep.subr.bf16.mxu1 %v738_v6  ;;  %v748_v13 = vld [vmem:[%s1079_s1 + $0x44] ss:$8 sps:$4 sm:$0xff]   ;;  %v752_v15 = vld [vmem:[%s1079_s1 + $0x40] ss:$8 sps:$4 sm:$0xff]   ;;  %v754_v17 = vld [vmem:[%s1079_s1 + $0x34] ss:$8 sps:$4 sm:$0xff]  }
   0x6   :  { %v750_v14 = vld [vmem:[%s1080_s5 + $0x44] ss:$8 sps:$4 sm:$0xff]   ;;  %v753_v16 = vld [vmem:[%s1080_s5 + $0x40] ss:$8 sps:$4 sm:$0xff]   ;;  %v756_v18 = vld [vmem:[%s1080_s5 + $0x34] ss:$8 sps:$4 sm:$0xff]  }
   0x7   :  { %145 = vmatpush1.bf16.msra.mxu0 %v740_v7  ;;  %v758_v19 = vld [vmem:[%s1079_s1 + $0x30] ss:$8 sps:$4 sm:$0xff]   ;;  %v760_v21 = vld [vmem:[%s1079_s1 + $0x24] ss:$8 sps:$4 sm:$0xff]   ;;  %v764_v23 = vld [vmem:[%s1079_s1 + $0x20] ss:$8 sps:$4 sm:$0xff]  }
   0x8   :  { %310 = vmatpush1.bf16.msra.mxu1 %v741_v8  ;;  %146 = vmatprep.subr.bf16.mxu0 %v742_v9  ;;  %v759_v20 = vld [vmem:[%s1080_s5 + $0x30] ss:$8 sps:$4 sm:$0xff]   ;;  %v762_v22 = vld [vmem:[%s1080_s5 + $0x24] ss:$8 sps:$4 sm:$0xff]   ;;  %v765_v24 = vld [vmem:[%s1080_s5 + $0x20] ss:$8 sps:$4 sm:$0xff]  }
   0x9   :  { %311 = vmatprep.subr.bf16.mxu1 %v744_v10  ;;  %v766_v25 = vld [vmem:[%s1079_s1 + $0x14] ss:$8 sps:$4 sm:$0xff]   ;;  %v770_v27 = vld [vmem:[%s1079_s1 + $0x10] ss:$8 sps:$4 sm:$0xff]   ;;  %v772_v29 = vld [vmem:[%s1079_s1 + $0x4] ss:$8 sps:$4 sm:$0xff]  }
   0xa   :  { %v768_v26 = vld [vmem:[%s1080_s5 + $0x14] ss:$8 sps:$4 sm:$0xff]   ;;  %v771_v28 = vld [vmem:[%s1080_s5 + $0x10] ss:$8 sps:$4 sm:$0xff]   ;;  %v774_v30 = vld [vmem:[%s1080_s5 + $0x4] ss:$8 sps:$4 sm:$0xff]  }
   0xb   :  { %147 = vmatpush1.bf16.msra.mxu0 %v746_v11  ;;  %v776_v31 = vld [vmem:[%s1079_s1] ss:$8 sps:$4 sm:$0xff]  }
   0xc   :  { %312 = vmatpush1.bf16.msra.mxu1 %v747_v12  ;;  %148 = vmatprep.subr.bf16.mxu0 %v748_v13  ;;  %v777_v32 = vld [vmem:[%s1080_s5] ss:$8 sps:$4 sm:$0xff]  }
   0xd   :  { %313 = vmatprep.subr.bf16.mxu1 %v750_v14  ;;  %v778_v33 = vld [vmem:[%s1081_s0] sm:$0xff]   ;;  %v780_v35 = vld [vmem:[%s1081_s0 + $0x8] sm:$0xff]  }
   0xe   :  { %v779_v34 = vld [vmem:[%s1082_s4] sm:$0xff]   ;;  %v781_v36 = vld [vmem:[%s1082_s4 + $0x8] sm:$0xff]  }
   0xf   :  { %149 = vmatpush1.bf16.msra.mxu0 %v752_v15 }
  0x10   :  { %314 = vmatpush1.bf16.msra.mxu1 %v753_v16  ;;  %150 = vmatprep.subr.bf16.mxu0 %v754_v17 }
  0x11   :  { %315 = vmatprep.subr.bf16.mxu1 %v756_v18 }
  0x13   :  { %151 = vmatpush1.bf16.msra.mxu0 %v758_v19 }
  0x14   :  { %316 = vmatpush1.bf16.msra.mxu1 %v759_v20  ;;  %152 = vmatprep.subr.bf16.mxu0 %v760_v21 }
  0x15   :  { %317 = vmatprep.subr.bf16.mxu1 %v762_v22 }
  0x17   :  { %153 = vmatpush1.bf16.msra.mxu0 %v764_v23 }
  0x18   :  { %318 = vmatpush1.bf16.msra.mxu1 %v765_v24  ;;  %154 = vmatprep.subr.bf16.mxu0 %v766_v25 }
  0x19   :  { %319 = vmatprep.subr.bf16.mxu1 %v768_v26 }
  0x1b   :  { %155 = vmatpush1.bf16.msra.mxu0 %v770_v27 }
  0x1c   :  { %320 = vmatpush1.bf16.msra.mxu1 %v771_v28  ;;  %156 = vmatprep.subr.bf16.mxu0 %v772_v29 }
  0x1d   :  { %321 = vmatprep.subr.bf16.mxu1 %v774_v30 }
  0x1f   :  { %157 = vmatpush1.bf16.msra.mxu0 %v776_v31 }
  0x20   :  { %322 = vmatpush1.bf16.msra.mxu1 %v777_v32 }
  0x22   :  { %175 = vmatmul.mubr.bf16.vlgmr.msra.gmra.mxu0 %v778_v33 }
  0x23   :  { %340 = vmatmul.mubr.bf16.vlgmr.msra.gmra.mxu1 %v779_v34  ;;  %184 = vmatprep.mubr.bf16.mxu0 %v790_v1 }
  0x24   :  { %349 = vmatprep.mubr.bf16.mxu1 %v790_v1 }
  0x2a   :  { %185 = vmatmul.mubr.bf16.gmra.mxu0 %v780_v35 }
  0x2b   :  { %350 = vmatmul.mubr.bf16.gmra.mxu1 %v781_v36 }
  0xe2   :  { %v949_v37 = vpop.f32.mrf.mxu0 }
  0xe3   :  { %v951_v38 = vpop.f32.mrf.mxu1  ;;  %v380_v47 = vmul.f32 %v949_v37, %v949_v37 }
  0xe4   :  { %v953_v39 = vpop.f32.mrf.mxu0  ;;  %v518_v49 = vmul.f32 %v951_v38, %v951_v38 }
  0xe5   :  { %v955_v40 = vpop.f32.mrf.mxu1  ;;  %v381_v50 = vmul.f32 %v953_v39, %v953_v39 }
  0xe6   :  { %v957_v41 = vpop.f32.mrf.mxu0  ;;  %v519_v51 = vmul.f32 %v955_v40, %v955_v40 }
  0xe7   :  { %v959_v42 = vpop.f32.mrf.mxu1  ;;  %v382_v43 = vmul.f32 %v957_v41, %v957_v41  ;;  %v362_v55 = vadd.f32 %v957_v41, %v949_v37 }
  0xe8   :  { %v520_v44 = vmul.f32 %v959_v42, %v959_v42  ;;  %v965_v45 = vpop.f32.mrf.mxu0  ;;  %v500_v57 = vadd.f32 %v959_v42, %v951_v38 }
  0xe9   :  { %v967_v46 = vpop.f32.mrf.mxu1  ;;  %v383_v48 = vmul.f32 %v965_v45, %v965_v45  ;;  %v388_v56 = vadd.f32 %v382_v43, %v380_v47  ;;  %v371_v60 = vadd.f32 %v965_v45, %v953_v39 }
  0xea   :  { %v521_v52 = vmul.f32 %v967_v46, %v967_v46  ;;  %v981_v53 = vpop.f32.mrf.mxu0  ;;  %v526_v59 = vadd.f32 %v520_v44, %v518_v49  ;;  %v509_v61 = vadd.f32 %v967_v46, %v955_v40 }
  0xeb   :  { %v983_v54 = vpop.f32.mrf.mxu1  ;;  %v384_v58 = vmul.f32 %v981_v53, %v981_v53  ;;  %v397_v1 = vadd.f32 %v383_v48, %v381_v50  ;;  %v363_v2 = vadd.f32 %v362_v55, %v981_v53 }
  0xec   :  { %v522_v62 = vmul.f32 %v983_v54, %v983_v54  ;;  %v997_v63 = vpop.f32.mrf.mxu0  ;;  %v501_v3 = vadd.f32 %v500_v57, %v983_v54  ;;  %v535_v5 = vadd.f32 %v521_v52, %v519_v51 }
  0xed   :  { %v999_v0 = vpop.f32.mrf.mxu1  ;;  %v385_v4 = vmul.f32 %v997_v63, %v997_v63  ;;  %v389_v6 = vadd.f32 %v388_v56, %v384_v58  ;;  %v372_v7 = vadd.f32 %v371_v60, %v997_v63 }
  0xee   :  { %v523_v8 = vmul.f32 %v999_v0, %v999_v0  ;;  %v1008_v9 = vpop.f32.mrf.mxu0  ;;  %v510_v11 = vadd.f32 %v509_v61, %v999_v0  ;;  %v527_v15 = vadd.f32 %v526_v59, %v522_v62 }
  0xef   :  { %v1010_v10 = vpop.f32.mrf.mxu1  ;;  %v364_v12 = vadd.f32 %v363_v2, %v1008_v9  ;;  %v386_v13 = vmul.f32 %v1008_v9, %v1008_v9  ;;  %v398_v16 = vadd.f32 %v397_v1, %v385_v4 }
  0xf0   :  { %v502_v14 = vadd.f32 %v501_v3, %v1010_v10  ;;  %v536_v17 = vadd.f32 %v535_v5, %v523_v8  ;;  %v524_v18 = vmul.f32 %v1010_v10, %v1010_v10  ;;  %v1019_v19 = vpop.f32.mrf.mxu0 }
  0xf1   :  { %v1021_v20 = vpop.f32.mrf.mxu1  ;;  %v365_v21 = vrot.slane %v364_v12, 4  ;;  %v390_v22 = vadd.f32 %v389_v6, %v386_v13  ;;  %v373_v24 = vadd.f32 %v372_v7, %v1019_v19  ;;  %v387_v26 = vmul.f32 %v1019_v19, %v1019_v19 }
  0xf2   :  { %v503_v23 = vrot.slane %v502_v14, 4  ;;  %v528_v25 = vadd.f32 %v527_v15, %v524_v18  ;;  %v511_v27 = vadd.f32 %v510_v11, %v1021_v20  ;;  %v525_v28 = vmul.f32 %v1021_v20, %v1021_v20 }
  0xf3   :  { %v366_v29 = vadd.f32 %v365_v21, %v364_v12  ;;  %v391_v30 = vrot.slane %v390_v22, 4  ;;  %v374_v32 = vrot.slane %v373_v24, 4  ;;  %v399_v34 = vadd.f32 %v398_v16, %v387_v26 }
  0xf4   :  { %v504_v31 = vadd.f32 %v503_v23, %v502_v14  ;;  %v529_v33 = vrot.slane %v528_v25, 4  ;;  %v512_v35 = vrot.slane %v511_v27, 4  ;;  %v537_v36 = vadd.f32 %v536_v17, %v525_v28 }
  0xf5   :  { %v367_v43 = vrot.slane %v366_v29, 2  ;;  %v392_v44 = vadd.f32 %v391_v30, %v390_v22  ;;  %v375_v48 = vadd.f32 %v374_v32, %v373_v24  ;;  %v400_v50 = vrot.slane %v399_v34, 4 }
  0xf6   :  { %v505_v47 = vrot.slane %v504_v31, 2  ;;  %v530_v49 = vadd.f32 %v529_v33, %v528_v25  ;;  %v513_v51 = vadd.f32 %v512_v35, %v511_v27  ;;  %v538_v52 = vrot.slane %v537_v36, 4 }
  0xf7   :  { %v368_v55 = vadd.f32 %v367_v43, %v366_v29  ;;  %v393_v56 = vrot.slane %v392_v44, 2  ;;  %v376_v58 = vrot.slane %v375_v48, 2  ;;  %v401_v60 = vadd.f32 %v400_v50, %v399_v34 }
  0xf8   :  { %v506_v57 = vadd.f32 %v505_v47, %v504_v31  ;;  %v531_v59 = vrot.slane %v530_v49, 2  ;;  %v514_v61 = vrot.slane %v513_v51, 2  ;;  %v539_v62 = vadd.f32 %v538_v52, %v537_v36 }
  0xf9   :  { %v369_v1 = vrot.slane %v368_v55, 1  ;;  %v394_v2 = vadd.f32 %v393_v56, %v392_v44  ;;  %v377_v4 = vadd.f32 %v376_v58, %v375_v48  ;;  %v402_v6 = vrot.slane %v401_v60, 2 }
  0xfa   :  { %v507_v3 = vrot.slane %v506_v57, 1  ;;  %v532_v5 = vadd.f32 %v531_v59, %v530_v49  ;;  %v515_v7 = vadd.f32 %v514_v61, %v513_v51  ;;  %v540_v8 = vrot.slane %v539_v62, 2 }
  0xfb   :  { %v370_v11 = vadd.f32 %v369_v1, %v368_v55  ;;  %v395_v12 = vrot.slane %v394_v2, 1  ;;  %v378_v14 = vrot.slane %v377_v4, 1  ;;  %v403_v16 = vadd.f32 %v402_v6, %v401_v60 }
  0xfc   :  { %v508_v13 = vadd.f32 %v507_v3, %v506_v57  ;;  %v533_v15 = vrot.slane %v532_v5, 1  ;;  %v516_v17 = vrot.slane %v515_v7, 1  ;;  %v541_v18 = vadd.f32 %v540_v8, %v539_v62 }
  0xfd   :  { %v396_v21 = vadd.f32 %v395_v12, %v394_v2  ;;  %v1029_v22 = vmul.f32 0.03125, %v370_v11  ;;  %v379_v24 = vadd.f32 %v378_v14, %v377_v4  ;;  %v404_v26 = vrot.slane %v403_v16, 1 }
  0xfe   :  { %v1031_v23 = vmul.f32 0.03125, %v508_v13  ;;  %v534_v25 = vadd.f32 %v533_v15, %v532_v5  ;;  %v517_v27 = vadd.f32 %v516_v17, %v515_v7  ;;  %v542_v28 = vrot.slane %v541_v18, 1 }
  0xff   :  { %v408_v29 = vmul.f32 0.03125, %v396_v21  ;;  %v410_v30 = vmul.f32 %v1029_v22, %v1029_v22  ;;  %v407_v32 = vmul.f32 0.03125, %v379_v24  ;;  %v405_v34 = vadd.f32 %v404_v26, %v403_v16  ;;  %v360_v16 = vld [vmem:[%s1083_s2] sm:$0x3] }
 0x100   :  { %v548_v31 = vmul.f32 %v1031_v23, %v1031_v23  ;;  %v546_v33 = vmul.f32 0.03125, %v534_v25  ;;  %v543_v35 = vadd.f32 %v542_v28, %v541_v18  ;;  %v545_v36 = vmul.f32 0.03125, %v517_v27  ;;  %v498_v25 = vld [vmem:[%s1084_s6] sm:$0x3] }
 0x101   :  { %v412_v43 = vsub.f32 %v408_v29, %v410_v30  ;;  %v411_v44 = vmul.f32 %v407_v32, %v407_v32  ;;  %v409_v48 = vmul.f32 0.03125, %v405_v34  ;;  %v791_v1 = vmov 1966171168  }
 0x102   :  { %v550_v47 = vsub.f32 %v546_v33, %v548_v31  ;;  %v547_v49 = vmul.f32 0.03125, %v543_v35  ;;  %v549_v50 = vmul.f32 %v545_v36, %v545_v36  ;;  %v424_v2 = vunpack.c.l.s4 %v791_v1 }
 0x103   :  { %v414_v51 = vmax.f32 %v412_v43, 0.0  ;;  %v413_v55 = vsub.f32 %v409_v48, %v411_v44  ;;  %v426_v3 = vlaneseq }
 0x104   :  { %v552_v52 = vmax.f32 %v550_v47, 0.0  ;;  %v551_v56 = vsub.f32 %v547_v49, %v549_v50  ;;  %v425_v4 = vunpack.c.0.s8 %v424_v2  ;;  %v361_v49 = vld [vmem:[%s1085_s3] sm:$0x3] }
 0x105   :  { %v416_v57 = vadd.f32 1e-05, %v414_v51  ;;  %v415_v59 = vmax.f32 %v413_v55, 0.0  ;;  %v427_v5 = vshrl.u32 %v426_v3, 7 }
 0x106   :  { %v554_v58 = vadd.f32 1e-05, %v552_v52  ;;  %v553_v60 = vmax.f32 %v551_v56, 0.0 }
 0x107   :  { %782 = vrsqrt.f32 %v416_v57  ;;  %v417_v61 = vadd.f32 1e-05, %v415_v59  ;;  %v428_v8 = vsub.s32 %v425_v4, %v427_v5  ;;  %v442_v21 = vsub.s32 0, %v427_v5 }
 0x108   :  { %v555_v62 = vadd.f32 1e-05, %v553_v60  ;;  %784 = vrsqrt.f32 %v554_v58  ;;  %v446_v24 = vsub.s32 1, %v427_v5 }
 0x109   :  { %786 = vrsqrt.f32 %v417_v61 }
 0x10a   :  { %788 = vrsqrt.f32 %v555_v62 }
 0x114   :  { %v783_v6 = vpop.eup %782 }
 0x115   :  { %v785_v7 = vpop.eup %784 }
 0x116   :  { %v787_v11 = vpop.eup %786 }
 0x117   :  { %v789_v12 = vpop.eup %788  ;;  %v422_v13 = vcombine.low %v783_v6, %v787_v11 }
 0x118   :  { %v560_v14 = vcombine.low %v785_v7, %v789_v12 }
 0x119   :  { %v429_v15 = vrot.slane %v422_v13, %v428_v8 }
 0x11a   :  { %v567_v17 = vrot.slane %v560_v14, %v428_v8 }
 0x11b   :  { %v436_v18 = vrot.slane %v429_v15, %v428_v8 }
 0x11c   :  { %v574_v26 = vrot.slane %v567_v17, %v428_v8 }
 0x11d   :  { %v438_v27 = vmul.f32 %v436_v18, %v360_v16 }
 0x11e   :  { %v576_v28 = vmul.f32 %v574_v26, %v498_v25 }
 0x11f   :  { %v443_v29 = vrot.slane %v438_v27, %v442_v21  ;;  %v447_v30 = vrot.slane %v438_v27, %v446_v24 }
 0x120   :  { %v581_v31 = vrot.slane %v576_v28, %v442_v21  ;;  %v585_v33 = vrot.slane %v576_v28, %v446_v24 }
 0x121   :  { %v450_v34 = vmul.f32 %v443_v29, %v1029_v22  ;;  %v451_v35 = vmul.f32 %v447_v30, %v407_v32  ;;  %v471_v56 = vmul.f32 %v443_v29, %v949_v37  ;;  %v472_v57 = vmul.f32 %v447_v30, %v953_v39  ;;  %v499_v22 = vld [vmem:[%s1086_s7] sm:$0x3] }
 0x122   :  { %v588_v44 = vmul.f32 %v581_v31, %v1031_v23  ;;  %v589_v47 = vmul.f32 %v585_v33, %v545_v36  ;;  %v473_v23 = vmul.f32 %v443_v29, %v957_v41  ;;  %v474_v32 = vmul.f32 %v447_v30, %v965_v45 }
 0x123   :  { %v454_v43 = vcombine.low %v450_v34, %v451_v35  ;;  %v475_v36 = vmul.f32 %v443_v29, %v981_v53  ;;  %v476_v59 = vmul.f32 %v447_v30, %v997_v63  ;;  %v478_v60 = vmul.f32 %v447_v30, %v1019_v19 }
 0x124   :  { %v592_v50 = vcombine.low %v588_v44, %v589_v47  ;;  %v477_v37 = vmul.f32 %v443_v29, %v1008_v9  ;;  %v609_v1 = vmul.f32 %v581_v31, %v951_v38  ;;  %v610_v2 = vmul.f32 %v585_v33, %v955_v40 }
 0x125   :  { %v461_v48 = vrot.slane %v454_v43, %v428_v8  ;;  %v611_v41 = vmul.f32 %v581_v31, %v959_v42  ;;  %v612_v45 = vmul.f32 %v585_v33, %v967_v46  ;;  %v613_v53 = vmul.f32 %v581_v31, %v983_v54 }
 0x126   :  { %v599_v52 = vrot.slane %v592_v50, %v428_v8  ;;  %v614_v3 = vmul.f32 %v585_v33, %v999_v0  ;;  %v615_v19 = vmul.f32 %v581_v31, %v1010_v10  ;;  %v616_v5 = vmul.f32 %v585_v33, %v1021_v20 }
 0x127   :  { %v468_v51 = vrot.slane %v461_v48, %v428_v8 }
 0x128   :  { %v606_v58 = vrot.slane %v599_v52, %v428_v8 }
 0x129   :  { %v470_v55 = vsub.f32 %v361_v49, %v468_v51 }
 0x12a   :  { %v608_v39 = vsub.f32 %v499_v22, %v606_v58 }
 0x12b   :  { %v483_v61 = vrot.slane %v470_v55, %v442_v21  ;;  %v487_v62 = vrot.slane %v470_v55, %v446_v24 }
 0x12c   :  { %v621_v7 = vrot.slane %v608_v39, %v442_v21  ;;  %v625_v38 = vrot.slane %v608_v39, %v446_v24 }
 0x12d   :  { %v490_v63 = vadd.f32 %v483_v61, %v471_v56  ;;  %v491_v4 = vadd.f32 %v487_v62, %v472_v57  ;;  %v492_v9 = vadd.f32 %v483_v61, %v473_v23  ;;  %v493_v6 = vadd.f32 %v487_v62, %v474_v32 }
 0x12e   :  { %v494_v8 = vadd.f32 %v483_v61, %v475_v36  ;;  %v495_v40 = vadd.f32 %v487_v62, %v476_v59  ;;  %v497_v11 = vadd.f32 %v487_v62, %v478_v60  ;;  %v496_v42 = vadd.f32 %v483_v61, %v477_v37 }
 0x12f   :  { %v628_v12 = vadd.f32 %v621_v7, %v609_v1  ;;  %v629_v46 = vadd.f32 %v625_v38, %v610_v2  ;;  %v630_v13 = vadd.f32 %v621_v7, %v611_v41  ;;  %v631_v54 = vadd.f32 %v625_v38, %v612_v45 }
 0x130   :  { %v632_v14 = vadd.f32 %v621_v7, %v613_v53  ;;  %v633_v0 = vadd.f32 %v625_v38, %v614_v3  ;;  %v634_v15 = vadd.f32 %v621_v7, %v615_v19  ;;  %v635_v16 = vadd.f32 %v625_v38, %v616_v5 }
 0x131   :  { %v636_v17 = vadd.f32 %v628_v12, %v490_v63  ;;  %v637_v10 = vadd.f32 %v629_v46, %v491_v4  ;;  %v638_v18 = vadd.f32 %v630_v13, %v492_v9  ;;  %v639_v20 = vadd.f32 %v631_v54, %v493_v6 }
 0x132   :  { %v640_v25 = vadd.f32 %v632_v14, %v494_v8  ;;  %v641_v26 = vadd.f32 %v633_v0, %v495_v40  ;;  %v642_v21 = vadd.f32 %v634_v15, %v496_v42  ;;  %v643_v24 = vadd.f32 %v635_v16, %v497_v11 }
 0x133   :  { %v644_v27 = vmax.f32 %v636_v17, 0.0  ;;  %v645_v28 = vmax.f32 %v637_v10, 0.0  ;;  %v646_v29 = vmax.f32 %v638_v18, 0.0  ;;  %v647_v30 = vmax.f32 %v639_v20, 0.0 }
 0x134   :  { %v648_v31 = vmax.f32 %v640_v25, 0.0  ;;  %v649_v33 = vmax.f32 %v641_v26, 0.0  ;;  %v650_v34 = vmax.f32 %v642_v21, 0.0  ;;  %v651_v35 = vmax.f32 %v643_v24, 0.0 }
 0x135   :  { %v724_v43 = vpack.c.bf16 %v645_v28, %v644_v27  ;;  %v725_v44 = vpack.c.bf16 %v647_v30, %v646_v29 }
 0x136   :  { %v726_v47 = vpack.c.bf16 %v649_v33, %v648_v31  ;;  %v727_v48 = vpack.c.bf16 %v651_v35, %v650_v34 }
 0x137   :  { %676 = vst [vmem:[%s1087_s8] sm:$0xff] %v724_v43  ;;  %677 = vst [vmem:[%s1087_s8 + $0x8] sm:$0xff] %v725_v44 }
 0x138   :  { %678 = vst [vmem:[%s1087_s8 + $0x10] sm:$0xff] %v726_v47  ;;  %679 = vst [vmem:[%s1087_s8 + $0x18] sm:$0xff] %v727_v48 }

// kernel: forward.21
= control target key start
LH: loop header
LB: loop body
LE: loop exit
PB: predicated region body
PF: predicated region fallthrough
CT: control target
= control target key end

     0   :  { %v458_v0 = vmov 0.0   ;;  %vm459_vm0 = vmmov 0   ;;  %v329_v58 = vlaneseq  ;;  %s572_s1 = inlined_call_operand.vmem [shape: bf16[384,128], index: 1, kind: input, shape index: {}]   ;;  %s573_s0 = inlined_call_operand.vmem [shape: bf16[8,384], index: 0, kind: input, shape index: {}]   ;;  %s574_s2 = inlined_call_operand.vmem [shape: f32[1,128], index: 2, kind: input, shape index: {}]   ;;  %s575_s3 = inlined_call_operand.vmem [shape: f32[1,128], index: 3, kind: input, shape index: {}]   ;;  %s576_s4 = inlined_call_operand.vmem [shape: bf16[8,128], index: 4, kind: output, shape index: {}]  }
   0x1   :  { %407 = vmatprep.subr.bf16.mxu1 %v458_v0  ;;  %v429_v1 = vld [vmem:[%s572_s1 + $0x78] sm:$0xff]   ;;  %423 = vmatprep.mubr.msk.bf16.mxu1 %vm459_vm0, %v458_v0  ;;  %v432_v4 = vld [vmem:[%s572_s1 + $0x70] sm:$0xff]   ;;  %v435_v7 = vld [vmem:[%s572_s1 + $0x68] sm:$0xff]  }
   0x2   :  { %v430_v2 = vld [vmem:[%s572_s1 + $0xb8] sm:$0xff]   ;;  %376 = vmatprep.subr.bf16.mxu0 %v429_v1  ;;  %v433_v5 = vld [vmem:[%s572_s1 + $0xb0] sm:$0xff]   ;;  %v436_v8 = vld [vmem:[%s572_s1 + $0xa8] sm:$0xff]   ;;  %v330_v59 = vshrl.u32 %v329_v58, 7 }
   0x3   :  { %v431_v3 = vld [vmem:[%s572_s1 + $0x38] sm:$0xff]   ;;  %408 = vmatpush3.bf16.msra.mxu1 %v430_v2  ;;  %v434_v6 = vld [vmem:[%s572_s1 + $0x30] sm:$0xff]   ;;  %v437_v9 = vld [vmem:[%s572_s1 + $0x28] sm:$0xff]  }
   0x4   :  { %377 = vmatpush3.bf16.msra.mxu0 %v431_v3  ;;  %409 = vmatprep.subr.bf16.mxu1 %v458_v0  ;;  %v438_v10 = vld [vmem:[%s572_s1 + $0x60] sm:$0xff]   ;;  %v441_v13 = vld [vmem:[%s572_s1 + $0x58] sm:$0xff]   ;;  %v444_v16 = vld [vmem:[%s572_s1 + $0x50] sm:$0xff]   ;;  %v331_v61 = vsub.s32 0, %v330_v59 }
   0x5   :  { %378 = vmatprep.subr.bf16.mxu0 %v432_v4  ;;  %v439_v11 = vld [vmem:[%s572_s1 + $0xa0] sm:$0xff]   ;;  %v442_v14 = vld [vmem:[%s572_s1 + $0x98] sm:$0xff]   ;;  %v445_v17 = vld [vmem:[%s572_s1 + $0x90] sm:$0xff]  }
   0x6   :  { %v440_v12 = vld [vmem:[%s572_s1 + $0x20] sm:$0xff]   ;;  %v443_v15 = vld [vmem:[%s572_s1 + $0x18] sm:$0xff]   ;;  %v446_v18 = vld [vmem:[%s572_s1 + $0x10] sm:$0xff]  }
   0x7   :  { %410 = vmatpush3.bf16.msra.mxu1 %v433_v5  ;;  %v447_v19 = vld [vmem:[%s572_s1 + $0x48] sm:$0xff]   ;;  %v18_v22 = vld [vmem:[%s573_s0] sm:$0xff] }
   0x8   :  { %379 = vmatpush3.bf16.msra.mxu0 %v434_v6  ;;  %411 = vmatprep.subr.bf16.mxu1 %v458_v0  ;;  %v448_v20 = vld [vmem:[%s572_s1 + $0x88] sm:$0xff]   ;;  %v450_v23 = vld [vmem:[%s572_s1 + $0x40] sm:$0xff]   ;;  %v350_v24 = vcombine.high %v18_v22, %v18_v22  ;;  %v349_v28 = vcombine.low %v18_v22, %v18_v22 }
   0x9   :  { %380 = vmatprep.subr.bf16.mxu0 %v435_v7  ;;  %v449_v21 = vld [vmem:[%s572_s1 + $0x8] sm:$0xff]   ;;  %v451_v25 = vld [vmem:[%s572_s1 + $0x80] sm:$0xff]  }
   0xa   :  { %255 = vmatprep.mubr.bf16.mxu0 %v350_v24  ;;  %v452_v26 = vld [vmem:[%s572_s1] sm:$0xff]   ;;  %v455_v27 = vld [vmem:[%s573_s0 + $0x8] ss:$0 sps:$4 sm:$0xff]  }
   0xb   :  { %412 = vmatpush3.bf16.msra.mxu1 %v436_v8  ;;  %v303_v60 = vld [vmem:[%s574_s2] sm:$0x1] }
   0xc   :  { %381 = vmatpush3.bf16.msra.mxu0 %v437_v9  ;;  %413 = vmatprep.subr.bf16.mxu1 %v458_v0 }
   0xd   :  { %382 = vmatprep.subr.bf16.mxu0 %v438_v10 }
   0xf   :  { %414 = vmatpush3.bf16.msra.mxu1 %v439_v11 }
  0x10   :  { %383 = vmatpush3.bf16.msra.mxu0 %v440_v12  ;;  %415 = vmatprep.subr.bf16.mxu1 %v458_v0 }
  0x11   :  { %384 = vmatprep.subr.bf16.mxu0 %v441_v13 }
  0x13   :  { %416 = vmatpush3.bf16.msra.mxu1 %v442_v14 }
  0x14   :  { %385 = vmatpush3.bf16.msra.mxu0 %v443_v15  ;;  %417 = vmatprep.subr.bf16.mxu1 %v458_v0 }
  0x15   :  { %386 = vmatprep.subr.bf16.mxu0 %v444_v16 }
  0x17   :  { %418 = vmatpush3.bf16.msra.mxu1 %v445_v17 }
  0x18   :  { %387 = vmatpush3.bf16.msra.mxu0 %v446_v18  ;;  %419 = vmatprep.subr.bf16.mxu1 %v458_v0 }
  0x19   :  { %388 = vmatprep.subr.bf16.mxu0 %v447_v19 }
  0x1b   :  { %420 = vmatpush3.bf16.msra.mxu1 %v448_v20 }
  0x1c   :  { %389 = vmatpush3.bf16.msra.mxu0 %v449_v21  ;;  %421 = vmatprep.subr.bf16.mxu1 %v458_v0  ;;  %v304_v0 = vld [vmem:[%s575_s3] sm:$0x1] }
  0x1d   :  { %390 = vmatprep.subr.bf16.mxu0 %v450_v23 }
  0x1f   :  { %422 = vmatpush3.bf16.msra.mxu1 %v451_v25 }
  0x20   :  { %391 = vmatpush3.bf16.msra.mxu0 %v452_v26 }
  0x22   :  { %424 = vmatmul.mubr.bf16.vlgmr.msra.gmra.mxu1 %v455_v27 }
  0x23   :  { %256 = vmatmul.mubr.bf16.vlgmr.msra.gmra.mxu0 %v349_v28 }
  0xe2   :  { %v297_v29 = vpop.f32.mrf.mxu1 }
  0xe3   :  { %v392_v30 = vpop.f32.mrf.mxu0 }
  0xe4   :  { %v425_v31 = vpop.f32.mrf.mxu1 }
  0xe5   :  { %v393_v32 = vpop.f32.mrf.mxu0 }
  0xe6   :  { %v394_v33 = vadd.f32 %v393_v32, %v392_v30  ;;  %v300_v34 = vpop.f32.mrf.mxu1 }
  0xe7   :  { %v395_v35 = vpop.f32.mrf.mxu0 }
  0xe8   :  { %v298_v36 = vadd.f32 %v394_v33, %v297_v29  ;;  %v426_v37 = vpop.f32.mrf.mxu1 }
  0xe9   :  { %v396_v38 = vpop.f32.mrf.mxu0 }
  0xea   :  { %v305_v39 = vrot.slane %v298_v36, 4  ;;  %v311_v40 = vmul.f32 %v298_v36, %v298_v36 }
  0xec   :  { %v306_v41 = vadd.f32 %v305_v39, %v298_v36  ;;  %v312_v42 = vrot.slane %v311_v40, 4 }
  0xee   :  { %v307_v43 = vrot.slane %v306_v41, 2  ;;  %v313_v44 = vadd.f32 %v312_v42, %v311_v40 }
  0xf0   :  { %v308_v45 = vadd.f32 %v307_v43, %v306_v41  ;;  %v314_v46 = vrot.slane %v313_v44, 2 }
  0xf2   :  { %v309_v47 = vrot.slane %v308_v45, 1  ;;  %v315_v48 = vadd.f32 %v314_v46, %v313_v44 }
  0xf4   :  { %v310_v49 = vadd.f32 %v309_v47, %v308_v45  ;;  %v316_v50 = vrot.slane %v315_v48, 1 }
  0xf6   :  { %v317_v51 = vadd.f32 %v316_v50, %v315_v48  ;;  %v318_v52 = vmul.f32 0.125, %v310_v49 }
  0xf8   :  { %v319_v53 = vmul.f32 0.125, %v317_v51  ;;  %v320_v54 = vmul.f32 %v318_v52, %v318_v52 }
  0xfa   :  { %v321_v55 = vsub.f32 %v319_v53, %v320_v54 }
  0xfc   :  { %v322_v56 = vmax.f32 %v321_v55, 0.0 }
  0xfe   :  { %v323_v57 = vadd.f32 1e-05, %v322_v56 }
 0x100   :  { %456 = vrsqrt.f32 %v323_v57 }
 0x10d   :  { %v457_v62 = vpop.eup %456 }
 0x10e   :  { %v325_v63 = vmul.f32 %v457_v62, %v303_v60 }
 0x110   :  { %v326_v1 = vmul.f32 %v325_v63, %v318_v52  ;;  %v332_v2 = vrot.slane %v325_v63, %v331_v61 }
 0x112   :  { %v327_v3 = vsub.f32 %v304_v0, %v326_v1  ;;  %v334_v4 = vmul.f32 %v332_v2, %v298_v36 }
 0x114   :  { %v339_v5 = vrot.slane %v327_v3, %v331_v61 }
 0x116   :  { %v341_v6 = vadd.f32 %v339_v5, %v334_v4 }
 0x118   :  { %v342_v7 = vmax.f32 %v341_v6, 0.0 }
 0x11a   :  { %v343_v8 = vpack.c.bf16 %v342_v7, %v342_v7 }
 0x11c   :  { %344 = vst [vmem:[%s576_s4] sm:$0xf] %v343_v8 }

// kernel: forward.25
= control target key start
LH: loop header
LB: loop body
LE: loop exit
PB: predicated region body
PF: predicated region fallthrough
CT: control target
= control target key end

     0   :  { %v100_v30 = vlaneseq  ;;  %v538_v34 = vmov 1966171168   ;;  %s665_s0 = inlined_call_operand.vmem [shape: bf16[2,512], index: 0, kind: input, shape index: {}]   ;;  %s666_s1 = inlined_call_operand.vmem [shape: bf16[512,128], index: 1, kind: input, shape index: {}]   ;;  %s667_s2 = inlined_call_operand.vmem [shape: f32[1,128], index: 2, kind: input, shape index: {}]   ;;  %s668_s3 = inlined_call_operand.hbm [shape: f32[2,128], index: 3, kind: output, shape index: {}]  }
   0x1   :  { %v484_v0 = vld [vmem:[%s666_s1 + $0x78] sm:$0xff]   ;;  %v488_v4 = vld [vmem:[%s666_s1 + $0x70] sm:$0xff]   ;;  %v492_v8 = vld [vmem:[%s666_s1 + $0x68] sm:$0xff]   ;;  %v98_v35 = vunpack.c.l.s4 %v538_v34 }
   0x2   :  { %v485_v1 = vld [vmem:[%s666_s1 + $0xf8] sm:$0xff]   ;;  %438 = vmatprep.subr.bf16.mxu0 %v484_v0  ;;  %v489_v5 = vld [vmem:[%s666_s1 + $0xf0] sm:$0xff]   ;;  %v493_v9 = vld [vmem:[%s666_s1 + $0xe8] sm:$0xff]   ;;  %v101_v36 = vshrl.u32 %v100_v30, 7 }
   0x3   :  { %v486_v2 = vld [vmem:[%s666_s1 + $0x38] sm:$0xff]   ;;  %460 = vmatprep.subr.bf16.mxu1 %v485_v1  ;;  %v490_v6 = vld [vmem:[%s666_s1 + $0x30] sm:$0xff]   ;;  %v494_v10 = vld [vmem:[%s666_s1 + $0x28] sm:$0xff]  }
   0x4   :  { %v487_v3 = vld [vmem:[%s666_s1 + $0xb8] sm:$0xff]   ;;  %439 = vmatpush3.bf16.msra.mxu0 %v486_v2  ;;  %v491_v7 = vld [vmem:[%s666_s1 + $0xb0] sm:$0xff]   ;;  %v495_v11 = vld [vmem:[%s666_s1 + $0xa8] sm:$0xff]  }
   0x5   :  { %461 = vmatpush3.bf16.msra.mxu1 %v487_v3  ;;  %440 = vmatprep.subr.bf16.mxu0 %v488_v4  ;;  %v496_v12 = vld [vmem:[%s666_s1 + $0x60] sm:$0xff]   ;;  %v500_v16 = vld [vmem:[%s666_s1 + $0x58] sm:$0xff]   ;;  %v504_v20 = vld [vmem:[%s666_s1 + $0x50] sm:$0xff]  }
   0x6   :  { %462 = vmatprep.subr.bf16.mxu1 %v489_v5  ;;  %v497_v13 = vld [vmem:[%s666_s1 + $0xe0] sm:$0xff]   ;;  %v501_v17 = vld [vmem:[%s666_s1 + $0xd8] sm:$0xff]   ;;  %v505_v21 = vld [vmem:[%s666_s1 + $0xd0] sm:$0xff]  }
   0x7   :  { %v498_v14 = vld [vmem:[%s666_s1 + $0x20] sm:$0xff]   ;;  %v502_v18 = vld [vmem:[%s666_s1 + $0x18] sm:$0xff]   ;;  %v506_v22 = vld [vmem:[%s666_s1 + $0x10] sm:$0xff]  }
   0x8   :  { %441 = vmatpush3.bf16.msra.mxu0 %v490_v6  ;;  %v499_v15 = vld [vmem:[%s666_s1 + $0xa0] sm:$0xff]   ;;  %v503_v19 = vld [vmem:[%s666_s1 + $0x98] sm:$0xff]   ;;  %v507_v23 = vld [vmem:[%s666_s1 + $0x90] sm:$0xff]  }
   0x9   :  { %463 = vmatpush3.bf16.msra.mxu1 %v491_v7  ;;  %442 = vmatprep.subr.bf16.mxu0 %v492_v8  ;;  %v508_v24 = vld [vmem:[%s666_s1 + $0x48] sm:$0xff]   ;;  %v512_v28 = vld [vmem:[%s666_s1 + $0x40] sm:$0xff]  }
   0xa   :  { %464 = vmatprep.subr.bf16.mxu1 %v493_v9  ;;  %v509_v25 = vld [vmem:[%s666_s1 + $0xc8] sm:$0xff]   ;;  %v513_v29 = vld [vmem:[%s666_s1 + $0xc0] sm:$0xff]  }
   0xb   :  { %v510_v26 = vld [vmem:[%s666_s1 + $0x8] sm:$0xff]   ;;  %v514_v31 = vld [vmem:[%s666_s1] sm:$0xff]  }
   0xc   :  { %443 = vmatpush3.bf16.msra.mxu0 %v494_v10  ;;  %v511_v27 = vld [vmem:[%s666_s1 + $0x88] sm:$0xff]   ;;  %v515_v32 = vld [vmem:[%s666_s1 + $0x80] sm:$0xff]  }
   0xd   :  { %465 = vmatpush3.bf16.msra.mxu1 %v495_v11  ;;  %444 = vmatprep.subr.bf16.mxu0 %v496_v12  ;;  %v405_v33 = vld.sshfl [vmem:[%s665_s0] sm:$0x33 pattern:$0x75316420] }
   0xe   :  { %466 = vmatprep.subr.bf16.mxu1 %v497_v13 }
  0x10   :  { %445 = vmatpush3.bf16.msra.mxu0 %v498_v14 }
  0x11   :  { %467 = vmatpush3.bf16.msra.mxu1 %v499_v15  ;;  %446 = vmatprep.subr.bf16.mxu0 %v500_v16 }
  0x12   :  { %468 = vmatprep.subr.bf16.mxu1 %v501_v17 }
  0x14   :  { %447 = vmatpush3.bf16.msra.mxu0 %v502_v18 }
  0x15   :  { %469 = vmatpush3.bf16.msra.mxu1 %v503_v19  ;;  %448 = vmatprep.subr.bf16.mxu0 %v504_v20 }
  0x16   :  { %470 = vmatprep.subr.bf16.mxu1 %v505_v21 }
  0x18   :  { %449 = vmatpush3.bf16.msra.mxu0 %v506_v22 }
  0x19   :  { %471 = vmatpush3.bf16.msra.mxu1 %v507_v23  ;;  %450 = vmatprep.subr.bf16.mxu0 %v508_v24 }
  0x1a   :  { %472 = vmatprep.subr.bf16.mxu1 %v509_v25 }
  0x1c   :  { %451 = vmatpush3.bf16.msra.mxu0 %v510_v26 }
  0x1d   :  { %473 = vmatpush3.bf16.msra.mxu1 %v511_v27  ;;  %452 = vmatprep.subr.bf16.mxu0 %v512_v28 }
  0x1e   :  { %474 = vmatprep.subr.bf16.mxu1 %v513_v29 }
  0x20   :  { %453 = vmatpush3.bf16.msra.mxu0 %v514_v31 }
  0x21   :  { %475 = vmatpush3.bf16.msra.mxu1 %v515_v32 }
  0x22   :  { %8 = vsyncpa [#allocation3], 0  ;;  %v96_v37 = vcombine.high %v405_v33, %v405_v33  ;;  %v99_v38 = vunpack.c.0.s8 %v98_v35  ;;  %v404_v46 = vld [vmem:[%s667_s2] ss:$0 sm:$0xff]  ;;  %s539_s24 = smov [#allocation2]  }
  0x23   :  { %s396_s25 = sshll.u32 %s539_s24, 4  ;;  %s397_s25 = int_to_ptr.vmem [resolvable:$true] %s396_s25 }
  0x24   :  { %v102_v39 = vsub.s32 %v99_v38, %v101_v36  ;;  %s516_s26 = scalar_lea.vmem %s397_s25, 32  ;;  %p521_p1 = scmp.lt.s32.totalorder %s397_s25, %s397_s25 }
  0x25   :  { %p517_p0 = scmp.ne.s32.totalorder %s397_s25, %s516_s26  ;;  %p522_p2 = scmp.lt.s32.totalorder %s516_s26, %s516_s26 }
  0x26   :  { %v110_v40 = vrot.slane %v96_v37, %v102_v39  ;;  %v103_v41 = vrot.slane %v405_v33, %v102_v39 }
  0x27   :  { %p523_p3 = por %p522_p2, %p521_p1 }
  0x28   :  { %341 = vmatprep.mubr.bf16.mxu0 %v110_v40  ;;  %v112_v42 = vcombine.high %v110_v40, %v110_v40  ;;  %v111_v43 = vcombine.high %v103_v41, %v103_v41 }
  0x29   :  { %342 = vmatmul.mubr.bf16.vlgmr.msra.gmra.mxu0 %v103_v41  ;;  %p524_p4 = pnand %p523_p3, %p517_p0 }
  0x2a   :  { %381 = vmatprep.mubr.bf16.mxu1 %v112_v42 }
  0x2b   :  { %382 = vmatmul.mubr.bf16.vlgmr.msra.gmra.mxu1 %v111_v43 }
  0xe9   :  { %v454_v44 = vpop.f32.mrf.mxu0 }
  0xeb   :  { %v476_v45 = vpop.f32.mrf.mxu1  ;;  %v455_v47 = vpop.f32.mrf.mxu0 }
  0xec   :  { %v456_v48 = vadd.f32 %v455_v47, %v454_v44 }
  0xed   :  { %v477_v49 = vpop.f32.mrf.mxu1  ;;  %v457_v50 = vpop.f32.mrf.mxu0 }
  0xee   :  { %v344_v51 = vadd.f32 %v456_v48, %v404_v46  ;;  %v478_v52 = vadd.f32 %v477_v49, %v476_v45 }
  0xef   :  { %v479_v53 = vpop.f32.mrf.mxu1  ;;  %v458_v54 = vpop.f32.mrf.mxu0 }
  0xf0   :  { %v384_v55 = vadd.f32 %v478_v52, %v344_v51 }
  0xf1   :  { %v480_v56 = vpop.f32.mrf.mxu1 }
  0xf2   :  { %389 = vst [vmem:[#allocation2] sm:$0x3] %v384_v55 }
  0xf3   :  { %527 = shalt.err (!%p524_p4)
}
  0xf4   :  { %399 = dma.vmem_to_hbm [thread:$0]  %s397_s25, 32, %s668_s3, [#allocation3]  }
  0xf5   :  { %536 = dma.done.wait [#allocation3], 32  }
  0xf6   :  { %537 = vsyncadd [#allocation3], 4294967264 }
  0xf7   :  { %403 = vsyncpa [#allocation3], 1 }

// kernel: forward.24
= control target key start
LH: loop header
LB: loop body
LE: loop exit
PB: predicated region body
PF: predicated region fallthrough
CT: control target
= control target key end

     0   :  { %v1467_v1 = vmov 0   ;;  %s1932_s1 = inlined_call_operand.vmem [shape: bf16[128,512], index: 1, kind: input, shape index: {}]   ;;  %s1933_s5 = inlined_call_operand.vmem [shape: bf16[256,512], index: 5, kind: input, shape index: {}]   ;;  %s1934_s0 = inlined_call_operand.vmem [shape: bf16[8,128], index: 0, kind: input, shape index: {}]   ;;  %s1935_s4 = inlined_call_operand.vmem [shape: bf16[8,256], index: 4, kind: input, shape index: {}]   ;;  %s1936_s2 = inlined_call_operand.vmem [shape: f32[1,512], index: 2, kind: input, shape index: {}]   ;;  %s1937_s3 = inlined_call_operand.vmem [shape: f32[1,512], index: 3, kind: input, shape index: {}]   ;;  %s1938_s6 = inlined_call_operand.vmem [shape: f32[1,512], index: 6, kind: input, shape index: {}]   ;;  %s1939_s7 = inlined_call_operand.vmem [shape: f32[1,512], index: 7, kind: input, shape index: {}]   ;;  %s1940_s8 = inlined_call_operand.vmem [shape: bf16[8,512], index: 8, kind: output, shape index: {}]  }
   0x1   :  { %v1305_v0 = vld [vmem:[%s1932_s1 + $0xe4] ss:$16 sps:$4 sm:$0xff]   ;;  %255 = vmatprep.mubr.bf16.mxu0 %v1467_v1  ;;  %296 = vmatprep.mubr.bf16.mxu1 %v1467_v1  ;;  %v1307_v2 = vld [vmem:[%s1932_s1 + $0xec] ss:$16 sps:$4 sm:$0xff]   ;;  %v1309_v3 = vld [vmem:[%s1932_s1 + $0xe0] ss:$16 sps:$4 sm:$0xff]  }
   0x2   :  { %223 = vmatprep.subr.bf16.mxu0 %v1305_v0  ;;  %v1310_v4 = vld [vmem:[%s1932_s1 + $0xe8] ss:$16 sps:$4 sm:$0xff]   ;;  %264 = vmatprep.subr.bf16.mxu1 %v1307_v2  ;;  %v1311_v5 = vld [vmem:[%s1932_s1 + $0xc4] ss:$16 sps:$4 sm:$0xff]   ;;  %v1313_v6 = vld [vmem:[%s1932_s1 + $0xcc] ss:$16 sps:$4 sm:$0xff]  }
   0x3   :  { %224 = vmatpush1.bf16.msra.mxu0 %v1309_v3  ;;  %265 = vmatpush1.bf16.msra.mxu1 %v1310_v4  ;;  %v1315_v7 = vld [vmem:[%s1932_s1 + $0xc0] ss:$16 sps:$4 sm:$0xff]   ;;  %v1316_v8 = vld [vmem:[%s1932_s1 + $0xc8] ss:$16 sps:$4 sm:$0xff]   ;;  %v1317_v9 = vld [vmem:[%s1932_s1 + $0xa4] ss:$16 sps:$4 sm:$0xff]  }
   0x4   :  { %225 = vmatprep.subr.bf16.mxu0 %v1311_v5  ;;  %266 = vmatprep.subr.bf16.mxu1 %v1313_v6  ;;  %v1319_v10 = vld [vmem:[%s1932_s1 + $0xac] ss:$16 sps:$4 sm:$0xff]   ;;  %v1321_v11 = vld [vmem:[%s1932_s1 + $0xa0] ss:$16 sps:$4 sm:$0xff]   ;;  %v1322_v12 = vld [vmem:[%s1932_s1 + $0xa8] ss:$16 sps:$4 sm:$0xff]  }
   0x5   :  { %v1323_v13 = vld [vmem:[%s1932_s1 + $0x84] ss:$16 sps:$4 sm:$0xff]   ;;  %v1325_v14 = vld [vmem:[%s1932_s1 + $0x8c] ss:$16 sps:$4 sm:$0xff]   ;;  %v1327_v15 = vld [vmem:[%s1932_s1 + $0x80] ss:$16 sps:$4 sm:$0xff]  }
   0x6   :  { %v1328_v16 = vld [vmem:[%s1932_s1 + $0x88] ss:$16 sps:$4 sm:$0xff]   ;;  %v1329_v17 = vld [vmem:[%s1932_s1 + $0x64] ss:$16 sps:$4 sm:$0xff]   ;;  %v1331_v18 = vld [vmem:[%s1932_s1 + $0x6c] ss:$16 sps:$4 sm:$0xff]  }
   0x7   :  { %226 = vmatpush1.bf16.msra.mxu0 %v1315_v7  ;;  %267 = vmatpush1.bf16.msra.mxu1 %v1316_v8  ;;  %v1333_v19 = vld [vmem:[%s1932_s1 + $0x60] ss:$16 sps:$4 sm:$0xff]   ;;  %v1334_v20 = vld [vmem:[%s1932_s1 + $0x68] ss:$16 sps:$4 sm:$0xff]   ;;  %v1335_v21 = vld [vmem:[%s1932_s1 + $0x44] ss:$16 sps:$4 sm:$0xff]  }
   0x8   :  { %227 = vmatprep.subr.bf16.mxu0 %v1317_v9  ;;  %268 = vmatprep.subr.bf16.mxu1 %v1319_v10  ;;  %v1337_v22 = vld [vmem:[%s1932_s1 + $0x4c] ss:$16 sps:$4 sm:$0xff]   ;;  %v1339_v23 = vld [vmem:[%s1932_s1 + $0x40] ss:$16 sps:$4 sm:$0xff]   ;;  %v1340_v24 = vld [vmem:[%s1932_s1 + $0x48] ss:$16 sps:$4 sm:$0xff]  }
   0x9   :  { %v1341_v25 = vld [vmem:[%s1932_s1 + $0x24] ss:$16 sps:$4 sm:$0xff]   ;;  %v1343_v26 = vld [vmem:[%s1932_s1 + $0x2c] ss:$16 sps:$4 sm:$0xff]   ;;  %v1345_v27 = vld [vmem:[%s1932_s1 + $0x20] ss:$16 sps:$4 sm:$0xff]  }
   0xa   :  { %v1346_v28 = vld [vmem:[%s1932_s1 + $0x28] ss:$16 sps:$4 sm:$0xff]   ;;  %v1347_v29 = vld [vmem:[%s1932_s1 + $0x4] ss:$16 sps:$4 sm:$0xff]   ;;  %v1349_v30 = vld [vmem:[%s1932_s1 + $0xc] ss:$16 sps:$4 sm:$0xff]  }
   0xb   :  { %228 = vmatpush1.bf16.msra.mxu0 %v1321_v11  ;;  %269 = vmatpush1.bf16.msra.mxu1 %v1322_v12  ;;  %v1351_v31 = vld [vmem:[%s1932_s1] ss:$16 sps:$4 sm:$0xff]   ;;  %v1352_v32 = vld [vmem:[%s1932_s1 + $0x8] ss:$16 sps:$4 sm:$0xff]   ;;  %v1355_v33 = vld [vmem:[%s1933_s5 + $0xe4] ss:$16 sps:$4 sm:$0xff]  }
   0xc   :  { %229 = vmatprep.subr.bf16.mxu0 %v1323_v13  ;;  %270 = vmatprep.subr.bf16.mxu1 %v1325_v14  ;;  %v1358_v34 = vld [vmem:[%s1933_s5 + $0xec] ss:$16 sps:$4 sm:$0xff]   ;;  %v30_v35 = vld [vmem:[%s1934_s0] sm:$0xf]  ;;  %v1356_v37 = vld [vmem:[%s1933_s5 + $0xe8] ss:$16 sps:$4 sm:$0xff]  }
   0xd   :  { %v1353_v36 = vld [vmem:[%s1933_s5 + $0xe0] ss:$16 sps:$4 sm:$0xff]   ;;  %v1361_v38 = vld [vmem:[%s1933_s5 + $0xc4] ss:$16 sps:$4 sm:$0xff]   ;;  %v1364_v39 = vld [vmem:[%s1933_s5 + $0xcc] ss:$16 sps:$4 sm:$0xff]  }
   0xe   :  { %v1359_v40 = vld [vmem:[%s1933_s5 + $0xc0] ss:$16 sps:$4 sm:$0xff]   ;;  %v1362_v41 = vld [vmem:[%s1933_s5 + $0xc8] ss:$16 sps:$4 sm:$0xff]   ;;  %v1367_v42 = vld [vmem:[%s1933_s5 + $0xa4] ss:$16 sps:$4 sm:$0xff]  }
   0xf   :  { %230 = vmatpush1.bf16.msra.mxu0 %v1327_v15  ;;  %271 = vmatpush1.bf16.msra.mxu1 %v1328_v16  ;;  %v1370_v43 = vld [vmem:[%s1933_s5 + $0xac] ss:$16 sps:$4 sm:$0xff]   ;;  %v1365_v44 = vld [vmem:[%s1933_s5 + $0xa0] ss:$16 sps:$4 sm:$0xff]   ;;  %v1368_v45 = vld [vmem:[%s1933_s5 + $0xa8] ss:$16 sps:$4 sm:$0xff]  }
  0x10   :  { %231 = vmatprep.subr.bf16.mxu0 %v1329_v17  ;;  %272 = vmatprep.subr.bf16.mxu1 %v1331_v18  ;;  %v1373_v46 = vld [vmem:[%s1933_s5 + $0x84] ss:$16 sps:$4 sm:$0xff]   ;;  %v1376_v47 = vld [vmem:[%s1933_s5 + $0x8c] ss:$16 sps:$4 sm:$0xff]   ;;  %v1371_v48 = vld [vmem:[%s1933_s5 + $0x80] ss:$16 sps:$4 sm:$0xff]  }
  0x11   :  { %v1374_v49 = vld [vmem:[%s1933_s5 + $0x88] ss:$16 sps:$4 sm:$0xff]   ;;  %v1379_v50 = vld [vmem:[%s1933_s5 + $0x64] ss:$16 sps:$4 sm:$0xff]   ;;  %v1382_v51 = vld [vmem:[%s1933_s5 + $0x6c] ss:$16 sps:$4 sm:$0xff]  }
  0x12   :  { %v1377_v52 = vld [vmem:[%s1933_s5 + $0x60] ss:$16 sps:$4 sm:$0xff]   ;;  %v1380_v53 = vld [vmem:[%s1933_s5 + $0x68] ss:$16 sps:$4 sm:$0xff]   ;;  %v1385_v54 = vld [vmem:[%s1933_s5 + $0x44] ss:$16 sps:$4 sm:$0xff]  }
  0x13   :  { %232 = vmatpush1.bf16.msra.mxu0 %v1333_v19  ;;  %273 = vmatpush1.bf16.msra.mxu1 %v1334_v20  ;;  %v1388_v55 = vld [vmem:[%s1933_s5 + $0x4c] ss:$16 sps:$4 sm:$0xff]   ;;  %v1383_v56 = vld [vmem:[%s1933_s5 + $0x40] ss:$16 sps:$4 sm:$0xff]   ;;  %v1386_v57 = vld [vmem:[%s1933_s5 + $0x48] ss:$16 sps:$4 sm:$0xff]  }
  0x14   :  { %233 = vmatprep.subr.bf16.mxu0 %v1335_v21  ;;  %274 = vmatprep.subr.bf16.mxu1 %v1337_v22  ;;  %v1391_v58 = vld [vmem:[%s1933_s5 + $0x24] ss:$16 sps:$4 sm:$0xff]   ;;  %v1394_v59 = vld [vmem:[%s1933_s5 + $0x2c] ss:$16 sps:$4 sm:$0xff]   ;;  %v1389_v60 = vld [vmem:[%s1933_s5 + $0x20] ss:$16 sps:$4 sm:$0xff]  }
  0x15   :  { %v1392_v61 = vld [vmem:[%s1933_s5 + $0x28] ss:$16 sps:$4 sm:$0xff]   ;;  %v1397_v62 = vld [vmem:[%s1933_s5 + $0x4] ss:$16 sps:$4 sm:$0xff]   ;;  %v1400_v63 = vld [vmem:[%s1933_s5 + $0xc] ss:$16 sps:$4 sm:$0xff]  }
  0x16   :  { %v1395_v0 = vld [vmem:[%s1933_s5] ss:$16 sps:$4 sm:$0xff]   ;;  %v1398_v1 = vld [vmem:[%s1933_s5 + $0x8] ss:$16 sps:$4 sm:$0xff]   ;;  %v1403_v2 = vld [vmem:[%s1933_s5 + $0x1e4] ss:$16 sps:$4 sm:$0xff]  }
  0x17   :  { %234 = vmatpush1.bf16.msra.mxu0 %v1339_v23  ;;  %275 = vmatpush1.bf16.msra.mxu1 %v1340_v24  ;;  %v1406_v3 = vld [vmem:[%s1933_s5 + $0x1ec] ss:$16 sps:$4 sm:$0xff]   ;;  %v1401_v4 = vld [vmem:[%s1933_s5 + $0x1e0] ss:$16 sps:$4 sm:$0xff]   ;;  %v1404_v5 = vld [vmem:[%s1933_s5 + $0x1e8] ss:$16 sps:$4 sm:$0xff]  }
  0x18   :  { %235 = vmatprep.subr.bf16.mxu0 %v1341_v25  ;;  %276 = vmatprep.subr.bf16.mxu1 %v1343_v26  ;;  %v305_v6 = vld [vmem:[%s1935_s4] sm:$0xff]  ;;  %v1412_v8 = vld [vmem:[%s1933_s5 + $0x1cc] ss:$16 sps:$4 sm:$0xff]   ;;  %v1410_v11 = vld [vmem:[%s1933_s5 + $0x1c8] ss:$16 sps:$4 sm:$0xff]  }
  0x19   :  { %v1409_v7 = vld [vmem:[%s1933_s5 + $0x1c4] ss:$16 sps:$4 sm:$0xff]   ;;  %v1234_v9 = vcombine.high %v305_v6, %v305_v6  ;;  %v1407_v10 = vld [vmem:[%s1933_s5 + $0x1c0] ss:$16 sps:$4 sm:$0xff]   ;;  %v1418_v13 = vld [vmem:[%s1933_s5 + $0x1ac] ss:$16 sps:$4 sm:$0xff]  }
  0x1a   :  { %v1415_v12 = vld [vmem:[%s1933_s5 + $0x1a4] ss:$16 sps:$4 sm:$0xff]   ;;  %v1413_v14 = vld [vmem:[%s1933_s5 + $0x1a0] ss:$16 sps:$4 sm:$0xff]   ;;  %v1416_v15 = vld [vmem:[%s1933_s5 + $0x1a8] ss:$16 sps:$4 sm:$0xff]  }
  0x1b   :  { %236 = vmatpush1.bf16.msra.mxu0 %v1345_v27  ;;  %277 = vmatpush1.bf16.msra.mxu1 %v1346_v28  ;;  %v1421_v16 = vld [vmem:[%s1933_s5 + $0x184] ss:$16 sps:$4 sm:$0xff]   ;;  %v1424_v17 = vld [vmem:[%s1933_s5 + $0x18c] ss:$16 sps:$4 sm:$0xff]   ;;  %v1419_v18 = vld [vmem:[%s1933_s5 + $0x180] ss:$16 sps:$4 sm:$0xff]  }
  0x1c   :  { %237 = vmatprep.subr.bf16.mxu0 %v1347_v29  ;;  %278 = vmatprep.subr.bf16.mxu1 %v1349_v30  ;;  %v1422_v19 = vld [vmem:[%s1933_s5 + $0x188] ss:$16 sps:$4 sm:$0xff]   ;;  %v1427_v20 = vld [vmem:[%s1933_s5 + $0x164] ss:$16 sps:$4 sm:$0xff]   ;;  %v1430_v21 = vld [vmem:[%s1933_s5 + $0x16c] ss:$16 sps:$4 sm:$0xff]  }
  0x1d   :  { %v1425_v22 = vld [vmem:[%s1933_s5 + $0x160] ss:$16 sps:$4 sm:$0xff]   ;;  %v1428_v23 = vld [vmem:[%s1933_s5 + $0x168] ss:$16 sps:$4 sm:$0xff]   ;;  %v1433_v24 = vld [vmem:[%s1933_s5 + $0x144] ss:$16 sps:$4 sm:$0xff]  }
  0x1e   :  { %v1436_v25 = vld [vmem:[%s1933_s5 + $0x14c] ss:$16 sps:$4 sm:$0xff]   ;;  %v1431_v26 = vld [vmem:[%s1933_s5 + $0x140] ss:$16 sps:$4 sm:$0xff]   ;;  %v1434_v27 = vld [vmem:[%s1933_s5 + $0x148] ss:$16 sps:$4 sm:$0xff]  }
  0x1f   :  { %238 = vmatpush1.bf16.msra.mxu0 %v1351_v31  ;;  %279 = vmatpush1.bf16.msra.mxu1 %v1352_v32  ;;  %v1439_v28 = vld [vmem:[%s1933_s5 + $0x124] ss:$16 sps:$4 sm:$0xff]   ;;  %v1442_v29 = vld [vmem:[%s1933_s5 + $0x12c] ss:$16 sps:$4 sm:$0xff]   ;;  %v1437_v30 = vld [vmem:[%s1933_s5 + $0x120] ss:$16 sps:$4 sm:$0xff]  }
  0x20   :  { %697 = vmatprep.subr.bf16.mxu0 %v1355_v33  ;;  %738 = vmatprep.subr.bf16.mxu1 %v1358_v34  ;;  %v1440_v31 = vld [vmem:[%s1933_s5 + $0x128] ss:$16 sps:$4 sm:$0xff]   ;;  %v1445_v32 = vld [vmem:[%s1933_s5 + $0x104] ss:$16 sps:$4 sm:$0xff]   ;;  %v1448_v33 = vld [vmem:[%s1933_s5 + $0x10c] ss:$16 sps:$4 sm:$0xff]  }
  0x21   :  { %v1443_v34 = vld [vmem:[%s1933_s5 + $0x100] ss:$16 sps:$4 sm:$0xff]  }
  0x22   :  { %256 = vmatmul.mubr.bf16.vlgmr.msra.gmra.mxu0 %v30_v35  ;;  %297 = vmatmul.mubr.bf16.vlgmr.msra.gmra.mxu1 %v30_v35  ;;  %v1446_v35 = vld [vmem:[%s1933_s5 + $0x108] ss:$16 sps:$4 sm:$0xff]  }
  0x23   :  { %698 = vmatpush1.bf16.msra.mxu0 %v1353_v36  ;;  %739 = vmatpush1.bf16.msra.mxu1 %v1356_v37  ;;  %v1233_v36 = vcombine.low %v305_v6, %v305_v6 }
  0x24   :  { %699 = vmatprep.subr.bf16.mxu0 %v1361_v38  ;;  %740 = vmatprep.subr.bf16.mxu1 %v1364_v39 }
  0x25   :  { %729 = vmatprep.mubr.bf16.mxu0 %v1234_v9  ;;  %770 = vmatprep.mubr.bf16.mxu1 %v1234_v9 }
  0x27   :  { %700 = vmatpush1.bf16.msra.mxu0 %v1359_v40  ;;  %741 = vmatpush1.bf16.msra.mxu1 %v1362_v41 }
  0x28   :  { %701 = vmatprep.subr.bf16.mxu0 %v1367_v42  ;;  %742 = vmatprep.subr.bf16.mxu1 %v1370_v43 }
  0x2b   :  { %702 = vmatpush1.bf16.msra.mxu0 %v1365_v44  ;;  %743 = vmatpush1.bf16.msra.mxu1 %v1368_v45 }
  0x2c   :  { %703 = vmatprep.subr.bf16.mxu0 %v1373_v46  ;;  %744 = vmatprep.subr.bf16.mxu1 %v1376_v47 }
  0x2f   :  { %704 = vmatpush1.bf16.msra.mxu0 %v1371_v48  ;;  %745 = vmatpush1.bf16.msra.mxu1 %v1374_v49 }
  0x30   :  { %705 = vmatprep.subr.bf16.mxu0 %v1379_v50  ;;  %746 = vmatprep.subr.bf16.mxu1 %v1382_v51 }
  0x33   :  { %706 = vmatpush1.bf16.msra.mxu0 %v1377_v52  ;;  %747 = vmatpush1.bf16.msra.mxu1 %v1380_v53 }
  0x34   :  { %707 = vmatprep.subr.bf16.mxu0 %v1385_v54  ;;  %748 = vmatprep.subr.bf16.mxu1 %v1388_v55 }
  0x37   :  { %708 = vmatpush1.bf16.msra.mxu0 %v1383_v56  ;;  %749 = vmatpush1.bf16.msra.mxu1 %v1386_v57 }
  0x38   :  { %709 = vmatprep.subr.bf16.mxu0 %v1391_v58  ;;  %750 = vmatprep.subr.bf16.mxu1 %v1394_v59 }
  0x3b   :  { %710 = vmatpush1.bf16.msra.mxu0 %v1389_v60  ;;  %751 = vmatpush1.bf16.msra.mxu1 %v1392_v61 }
  0x3c   :  { %711 = vmatprep.subr.bf16.mxu0 %v1397_v62  ;;  %752 = vmatprep.subr.bf16.mxu1 %v1400_v63 }
  0x3f   :  { %712 = vmatpush1.bf16.msra.mxu0 %v1395_v0  ;;  %753 = vmatpush1.bf16.msra.mxu1 %v1398_v1 }
  0x40   :  { %713 = vmatprep.subr.bf16.mxu0 %v1403_v2  ;;  %754 = vmatprep.subr.bf16.mxu1 %v1406_v3 }
  0x43   :  { %714 = vmatpush2.bf16.msra.mxu0 %v1401_v4  ;;  %755 = vmatpush2.bf16.msra.mxu1 %v1404_v5 }
  0x44   :  { %715 = vmatprep.subr.bf16.mxu0 %v1409_v7  ;;  %756 = vmatprep.subr.bf16.mxu1 %v1412_v8 }
  0x47   :  { %716 = vmatpush2.bf16.msra.mxu0 %v1407_v10  ;;  %757 = vmatpush2.bf16.msra.mxu1 %v1410_v11 }
  0x48   :  { %717 = vmatprep.subr.bf16.mxu0 %v1415_v12  ;;  %758 = vmatprep.subr.bf16.mxu1 %v1418_v13 }
  0x4b   :  { %718 = vmatpush2.bf16.msra.mxu0 %v1413_v14  ;;  %759 = vmatpush2.bf16.msra.mxu1 %v1416_v15 }
  0x4c   :  { %719 = vmatprep.subr.bf16.mxu0 %v1421_v16  ;;  %760 = vmatprep.subr.bf16.mxu1 %v1424_v17 }
  0x4f   :  { %720 = vmatpush2.bf16.msra.mxu0 %v1419_v18  ;;  %761 = vmatpush2.bf16.msra.mxu1 %v1422_v19 }
  0x50   :  { %721 = vmatprep.subr.bf16.mxu0 %v1427_v20  ;;  %762 = vmatprep.subr.bf16.mxu1 %v1430_v21 }
  0x53   :  { %722 = vmatpush2.bf16.msra.mxu0 %v1425_v22  ;;  %763 = vmatpush2.bf16.msra.mxu1 %v1428_v23 }
  0x54   :  { %723 = vmatprep.subr.bf16.mxu0 %v1433_v24  ;;  %764 = vmatprep.subr.bf16.mxu1 %v1436_v25 }
  0x57   :  { %724 = vmatpush2.bf16.msra.mxu0 %v1431_v26  ;;  %765 = vmatpush2.bf16.msra.mxu1 %v1434_v27 }
  0x58   :  { %725 = vmatprep.subr.bf16.mxu0 %v1439_v28  ;;  %766 = vmatprep.subr.bf16.mxu1 %v1442_v29 }
  0x5b   :  { %726 = vmatpush2.bf16.msra.mxu0 %v1437_v30  ;;  %767 = vmatpush2.bf16.msra.mxu1 %v1440_v31 }
  0x5c   :  { %727 = vmatprep.subr.bf16.mxu0 %v1445_v32  ;;  %768 = vmatprep.subr.bf16.mxu1 %v1448_v33 }
  0x5f   :  { %728 = vmatpush2.bf16.msra.mxu0 %v1443_v34  ;;  %769 = vmatpush2.bf16.msra.mxu1 %v1446_v35 }
  0x62   :  { %730 = vmatmul.mubr.bf16.vlgmr.msra.gmra.mxu0 %v1233_v36  ;;  %771 = vmatmul.mubr.bf16.vlgmr.msra.gmra.mxu1 %v1233_v36 }
  0xe2   :  { %v1808_v37 = vpop.f32.mrf.mxu0  ;;  %v1810_v38 = vpop.f32.mrf.mxu1 }
  0xe3   :  { %v781_v39 = vrot.slane %v1808_v37, 4  ;;  %v805_v40 = vmul.f32 %v1808_v37, %v1808_v37  ;;  %v793_v41 = vrot.slane %v1810_v38, 4  ;;  %v807_v42 = vmul.f32 %v1810_v38, %v1810_v38 }
  0xe4   :  { %v1818_v43 = vpop.f32.mrf.mxu0  ;;  %v1820_v44 = vpop.f32.mrf.mxu1 }
  0xe5   :  { %v782_v45 = vadd.f32 %v781_v39, %v1808_v37  ;;  %v809_v46 = vrot.slane %v805_v40, 4  ;;  %v794_v47 = vadd.f32 %v793_v41, %v1810_v38  ;;  %v821_v48 = vrot.slane %v807_v42, 4 }
  0xe6   :  { %v787_v49 = vrot.slane %v1818_v43, 4  ;;  %v806_v50 = vmul.f32 %v1818_v43, %v1818_v43  ;;  %v799_v51 = vrot.slane %v1820_v44, 4  ;;  %v808_v52 = vmul.f32 %v1820_v44, %v1820_v44  ;;  %v261_v53 = vpop.f32.mrf.mxu0  ;;  %v302_v54 = vpop.f32.mrf.mxu1 }
  0xe7   :  { %v783_v55 = vrot.slane %v782_v45, 2  ;;  %v810_v56 = vadd.f32 %v809_v46, %v805_v40  ;;  %v795_v57 = vrot.slane %v794_v47, 2  ;;  %v822_v58 = vadd.f32 %v821_v48, %v807_v42 }
  0xe8   :  { %v788_v59 = vadd.f32 %v787_v49, %v1818_v43  ;;  %v815_v60 = vrot.slane %v806_v50, 4  ;;  %v800_v61 = vadd.f32 %v799_v51, %v1820_v44  ;;  %v827_v62 = vrot.slane %v808_v52, 4  ;;  %v262_v63 = vpop.f32.mrf.mxu0  ;;  %v303_v0 = vpop.f32.mrf.mxu1 }
  0xe9   :  { %v784_v1 = vadd.f32 %v783_v55, %v782_v45  ;;  %v811_v2 = vrot.slane %v810_v56, 2  ;;  %v796_v3 = vadd.f32 %v795_v57, %v794_v47  ;;  %v823_v4 = vrot.slane %v822_v58, 2 }
  0xea   :  { %v789_v5 = vrot.slane %v788_v59, 2  ;;  %v816_v6 = vadd.f32 %v815_v60, %v806_v50  ;;  %v801_v7 = vrot.slane %v800_v61, 2  ;;  %v828_v8 = vadd.f32 %v827_v62, %v808_v52 }
  0xeb   :  { %v785_v9 = vrot.slane %v784_v1, 1  ;;  %v812_v10 = vadd.f32 %v811_v2, %v810_v56  ;;  %v797_v11 = vrot.slane %v796_v3, 1  ;;  %v824_v12 = vadd.f32 %v823_v4, %v822_v58 }
  0xec   :  { %v790_v13 = vadd.f32 %v789_v5, %v788_v59  ;;  %v817_v14 = vrot.slane %v816_v6, 2  ;;  %v802_v15 = vadd.f32 %v801_v7, %v800_v61  ;;  %v829_v16 = vrot.slane %v828_v8, 2 }
  0xed   :  { %v786_v17 = vadd.f32 %v785_v9, %v784_v1  ;;  %v813_v18 = vrot.slane %v812_v10, 1  ;;  %v798_v19 = vadd.f32 %v797_v11, %v796_v3  ;;  %v825_v20 = vrot.slane %v824_v12, 1 }
  0xee   :  { %v791_v21 = vrot.slane %v790_v13, 1  ;;  %v818_v22 = vadd.f32 %v817_v14, %v816_v6  ;;  %v803_v23 = vrot.slane %v802_v15, 1  ;;  %v830_v24 = vadd.f32 %v829_v16, %v828_v8 }
  0xef   :  { %v814_v25 = vadd.f32 %v813_v18, %v812_v10  ;;  %v833_v26 = vmul.f32 0.125, %v786_v17  ;;  %v826_v27 = vadd.f32 %v825_v20, %v824_v12  ;;  %v835_v28 = vmul.f32 0.125, %v798_v19  ;;  %v779_v12 = vld [vmem:[%s1936_s2] sm:$0xf] }
  0xf0   :  { %v792_v29 = vadd.f32 %v791_v21, %v790_v13  ;;  %v819_v30 = vrot.slane %v818_v22, 1  ;;  %v804_v31 = vadd.f32 %v803_v23, %v802_v15  ;;  %v831_v32 = vrot.slane %v830_v24, 1 }
  0xf1   :  { %v837_v33 = vmul.f32 0.125, %v814_v25  ;;  %v841_v34 = vmul.f32 %v833_v26, %v833_v26  ;;  %v839_v35 = vmul.f32 0.125, %v826_v27  ;;  %v843_v36 = vmul.f32 %v835_v28, %v835_v28 }
  0xf2   :  { %v820_v39 = vadd.f32 %v819_v30, %v818_v22  ;;  %v834_v40 = vmul.f32 0.125, %v792_v29  ;;  %v832_v41 = vadd.f32 %v831_v32, %v830_v24  ;;  %v836_v42 = vmul.f32 0.125, %v804_v31 }
  0xf3   :  { %v845_v45 = vsub.f32 %v837_v33, %v841_v34  ;;  %v847_v46 = vsub.f32 %v839_v35, %v843_v36  ;;  %v1468_v61 = vmov 1966171168   ;;  %v870_v63 = vlaneseq }
  0xf4   :  { %v838_v47 = vmul.f32 0.125, %v820_v39  ;;  %v842_v48 = vmul.f32 %v834_v40, %v834_v40  ;;  %v840_v49 = vmul.f32 0.125, %v832_v41  ;;  %v844_v50 = vmul.f32 %v836_v42, %v836_v42 }
  0xf5   :  { %v849_v51 = vmax.f32 %v845_v45, 0.0  ;;  %v851_v52 = vmax.f32 %v847_v46, 0.0  ;;  %v868_v62 = vunpack.c.l.s4 %v1468_v61  ;;  %v871_v1 = vshrl.u32 %v870_v63, 7 }
  0xf6   :  { %v846_v53 = vsub.f32 %v838_v47, %v842_v48  ;;  %v848_v54 = vsub.f32 %v840_v49, %v844_v50 }
  0xf7   :  { %v853_v55 = vadd.f32 1e-05, %v849_v51  ;;  %v855_v56 = vadd.f32 1e-05, %v851_v52  ;;  %v869_v0 = vunpack.c.0.s8 %v868_v62  ;;  %v1839_v13 = vsub.s32 0, %v871_v1 }
  0xf8   :  { %v850_v57 = vmax.f32 %v846_v53, 0.0  ;;  %v852_v58 = vmax.f32 %v848_v54, 0.0  ;;  %v1842_v15 = vsub.s32 1, %v871_v1  ;;  %v1844_v16 = vsub.s32 2, %v871_v1 }
  0xf9   :  { %1451 = vrsqrt.f32 %v853_v55  ;;  %v1832_v4 = vsub.s32 %v869_v0, %v871_v1  ;;  %v1846_v17 = vsub.s32 3, %v871_v1 }
  0xfa   :  { %v854_v59 = vadd.f32 1e-05, %v850_v57  ;;  %v856_v60 = vadd.f32 1e-05, %v852_v58  ;;  %1453 = vrsqrt.f32 %v855_v56 }
  0xfc   :  { %1455 = vrsqrt.f32 %v854_v59 }
  0xfd   :  { %1457 = vrsqrt.f32 %v856_v60 }
 0x106   :  { %v1452_v2 = vpop.eup %1451 }
 0x107   :  { %v1454_v3 = vpop.eup %1453 }
 0x109   :  { %v1456_v5 = vpop.eup %1455 }
 0x10a   :  { %v1458_v6 = vpop.eup %1457  ;;  %v865_v7 = vcombine.low %v1452_v2, %v1456_v5 }
 0x10b   :  { %v866_v8 = vcombine.low %v1454_v3, %v1458_v6 }
 0x10c   :  { %v873_v9 = vrot.slane %v865_v7, %v1832_v4 }
 0x10d   :  { %v880_v10 = vrot.slane %v866_v8, %v1832_v4 }
 0x10f   :  { %v881_v11 = vcombine.low %v873_v9, %v880_v10 }
 0x111   :  { %v888_v14 = vrot.slane %v881_v11, %v1832_v4 }
 0x113   :  { %v890_v18 = vmul.f32 %v888_v14, %v779_v12 }
 0x115   :  { %v895_v19 = vrot.slane %v890_v18, %v1839_v13  ;;  %v899_v20 = vrot.slane %v890_v18, %v1842_v15  ;;  %v903_v21 = vrot.slane %v890_v18, %v1844_v16  ;;  %v907_v22 = vrot.slane %v890_v18, %v1846_v17 }
 0x117   :  { %v912_v23 = vmul.f32 %v895_v19, %v833_v26  ;;  %v913_v24 = vmul.f32 %v899_v20, %v834_v40  ;;  %v914_v25 = vmul.f32 %v903_v21, %v835_v28  ;;  %v915_v27 = vmul.f32 %v907_v22, %v836_v42  ;;  %v780_v26 = vld [vmem:[%s1937_s3] sm:$0xf] }
 0x118   :  { %v948_v29 = vmul.f32 %v903_v21, %v1810_v38  ;;  %v949_v30 = vmul.f32 %v907_v22, %v1820_v44  ;;  %v946_v31 = vmul.f32 %v895_v19, %v1808_v37  ;;  %v947_v32 = vmul.f32 %v899_v20, %v1818_v43 }
 0x119   :  { %v920_v33 = vcombine.low %v912_v23, %v913_v24  ;;  %v921_v34 = vcombine.low %v914_v25, %v915_v27 }
 0x11b   :  { %v928_v35 = vrot.slane %v920_v33, %v1832_v4  ;;  %v935_v36 = vrot.slane %v921_v34, %v1832_v4 }
 0x11d   :  { %v936_v39 = vcombine.low %v928_v35, %v935_v36 }
 0x11f   :  { %v943_v28 = vrot.slane %v936_v39, %v1832_v4 }
 0x121   :  { %v945_v38 = vsub.f32 %v780_v26, %v943_v28 }
 0x122   :  { %v1862_v40 = vpop.f32.mrf.mxu0  ;;  %v1864_v44 = vpop.f32.mrf.mxu1 }
 0x123   :  { %v966_v37 = vrot.slane %v945_v38, %v1846_v17  ;;  %v977_v43 = vrot.slane %v1862_v40, 4  ;;  %v1001_v41 = vmul.f32 %v1862_v40, %v1862_v40  ;;  %v989_v42 = vrot.slane %v1864_v44, 4 }
 0x124   :  { %v1003_v45 = vmul.f32 %v1864_v44, %v1864_v44  ;;  %v1873_v46 = vpop.f32.mrf.mxu0  ;;  %v1875_v47 = vpop.f32.mrf.mxu1  ;;  %v954_v48 = vrot.slane %v945_v38, %v1839_v13  ;;  %v958_v49 = vrot.slane %v945_v38, %v1842_v15  ;;  %v962_v50 = vrot.slane %v945_v38, %v1844_v16 }
 0x125   :  { %v1880_v51 = vadd.f32 %v966_v37, %v949_v30  ;;  %v978_v52 = vadd.f32 %v977_v43, %v1862_v40  ;;  %v1005_v53 = vrot.slane %v1001_v41, 4  ;;  %v990_v54 = vadd.f32 %v989_v42, %v1864_v44 }
 0x126   :  { %v1017_v55 = vrot.slane %v1003_v45, 4  ;;  %v983_v56 = vrot.slane %v1873_v46, 4  ;;  %v1002_v57 = vmul.f32 %v1873_v46, %v1873_v46  ;;  %v1887_v58 = vadd.f32 %v954_v48, %v946_v31  ;;  %v735_v59 = vpop.f32.mrf.mxu0  ;;  %v776_v60 = vpop.f32.mrf.mxu1 }
 0x127   :  { %v979_v61 = vrot.slane %v978_v52, 2  ;;  %v1006_v62 = vadd.f32 %v1005_v53, %v1001_v41  ;;  %v991_v63 = vrot.slane %v990_v54, 2  ;;  %v1889_v0 = vadd.f32 %v958_v49, %v947_v32 }
 0x128   :  { %v1018_v1 = vadd.f32 %v1017_v55, %v1003_v45  ;;  %v984_v2 = vadd.f32 %v983_v56, %v1873_v46  ;;  %v1011_v3 = vrot.slane %v1002_v57, 4  ;;  %v1892_v5 = vadd.f32 %v962_v50, %v948_v29  ;;  %v736_v6 = vpop.f32.mrf.mxu0  ;;  %v777_v7 = vpop.f32.mrf.mxu1 }
 0x129   :  { %v980_v8 = vadd.f32 %v979_v61, %v978_v52  ;;  %v1007_v9 = vrot.slane %v1006_v62, 2  ;;  %v992_v10 = vadd.f32 %v991_v63, %v990_v54  ;;  %v995_v11 = vrot.slane %v1875_v47, 4 }
 0x12a   :  { %v1019_v12 = vrot.slane %v1018_v1, 2  ;;  %v985_v14 = vrot.slane %v984_v2, 2  ;;  %v1012_v18 = vadd.f32 %v1011_v3, %v1002_v57  ;;  %v1004_v19 = vmul.f32 %v1875_v47, %v1875_v47 }
 0x12b   :  { %v981_v20 = vrot.slane %v980_v8, 1  ;;  %v1008_v21 = vadd.f32 %v1007_v9, %v1006_v62  ;;  %v993_v22 = vrot.slane %v992_v10, 1  ;;  %v996_v23 = vadd.f32 %v995_v11, %v1875_v47 }
 0x12c   :  { %v1020_v24 = vadd.f32 %v1019_v12, %v1018_v1  ;;  %v986_v25 = vadd.f32 %v985_v14, %v984_v2  ;;  %v1013_v27 = vrot.slane %v1012_v18, 2  ;;  %v1023_v29 = vrot.slane %v1004_v19, 4 }
 0x12d   :  { %v982_v30 = vadd.f32 %v981_v20, %v980_v8  ;;  %v1009_v31 = vrot.slane %v1008_v21, 1  ;;  %v994_v32 = vadd.f32 %v993_v22, %v992_v10  ;;  %v997_v33 = vrot.slane %v996_v23, 2 }
 0x12e   :  { %v1021_v34 = vrot.slane %v1020_v24, 1  ;;  %v987_v35 = vrot.slane %v986_v25, 1  ;;  %v1014_v36 = vadd.f32 %v1013_v27, %v1012_v18  ;;  %v1024_v39 = vadd.f32 %v1023_v29, %v1004_v19 }
 0x12f   :  { %v1010_v26 = vadd.f32 %v1009_v31, %v1008_v21  ;;  %v1029_v28 = vmul.f32 0.125, %v982_v30  ;;  %v1031_v38 = vmul.f32 0.125, %v994_v32  ;;  %v998_v37 = vadd.f32 %v997_v33, %v996_v23  ;;  %v975_v32 = vld [vmem:[%s1938_s6] sm:$0xf] }
 0x130   :  { %v1022_v43 = vadd.f32 %v1021_v34, %v1020_v24  ;;  %v988_v41 = vadd.f32 %v987_v35, %v986_v25  ;;  %v1015_v42 = vrot.slane %v1014_v36, 1  ;;  %v1025_v45 = vrot.slane %v1024_v39, 2 }
 0x131   :  { %v1033_v48 = vmul.f32 0.125, %v1010_v26  ;;  %v1037_v49 = vmul.f32 %v1029_v28, %v1029_v28  ;;  %v1039_v50 = vmul.f32 %v1031_v38, %v1031_v38  ;;  %v999_v52 = vrot.slane %v998_v37, 1 }
 0x132   :  { %v1035_v53 = vmul.f32 0.125, %v1022_v43  ;;  %v1016_v54 = vadd.f32 %v1015_v42, %v1014_v36  ;;  %v1030_v55 = vmul.f32 0.125, %v988_v41  ;;  %v1026_v56 = vadd.f32 %v1025_v45, %v1024_v39 }
 0x133   :  { %v1041_v57 = vsub.f32 %v1033_v48, %v1037_v49  ;;  %v1000_v59 = vadd.f32 %v999_v52, %v998_v37 }
 0x134   :  { %v1043_v60 = vsub.f32 %v1035_v53, %v1039_v50  ;;  %v1034_v61 = vmul.f32 0.125, %v1016_v54  ;;  %v1038_v62 = vmul.f32 %v1030_v55, %v1030_v55  ;;  %v1027_v63 = vrot.slane %v1026_v56, 1  ;;  %v976_v53 = vld [vmem:[%s1939_s7] sm:$0xf] }
 0x135   :  { %v1045_v1 = vmax.f32 %v1041_v57, 0.0  ;;  %v1032_v2 = vmul.f32 0.125, %v1000_v59 }
 0x136   :  { %v1042_v3 = vsub.f32 %v1034_v61, %v1038_v62  ;;  %v1028_v6 = vadd.f32 %v1027_v63, %v1026_v56  ;;  %v1047_v8 = vmax.f32 %v1043_v60, 0.0 }
 0x137   :  { %v1049_v7 = vadd.f32 1e-05, %v1045_v1  ;;  %v1040_v9 = vmul.f32 %v1032_v2, %v1032_v2 }
 0x138   :  { %v1046_v10 = vmax.f32 %v1042_v3, 0.0  ;;  %v1036_v11 = vmul.f32 0.125, %v1028_v6  ;;  %v1051_v18 = vadd.f32 1e-05, %v1047_v8 }
 0x139   :  { %1459 = vrsqrt.f32 %v1049_v7 }
 0x13a   :  { %v1050_v12 = vadd.f32 1e-05, %v1046_v10  ;;  %v1044_v14 = vsub.f32 %v1036_v11, %v1040_v9 }
 0x13c   :  { %1461 = vrsqrt.f32 %v1050_v12  ;;  %v1048_v19 = vmax.f32 %v1044_v14, 0.0 }
 0x13d   :  { %1463 = vrsqrt.f32 %v1051_v18 }
 0x13e   :  { %v1052_v20 = vadd.f32 1e-05, %v1048_v19 }
 0x140   :  { %1465 = vrsqrt.f32 %v1052_v20 }
 0x146   :  { %v1460_v21 = vpop.eup %1459 }
 0x149   :  { %v1462_v22 = vpop.eup %1461 }
 0x14a   :  { %v1061_v23 = vcombine.low %v1460_v21, %v1462_v22  ;;  %v1464_v24 = vpop.eup %1463 }
 0x14c   :  { %v1069_v29 = vrot.slane %v1061_v23, %v1832_v4 }
 0x14d   :  { %v1466_v25 = vpop.eup %1465 }
 0x14e   :  { %v1062_v27 = vcombine.low %v1464_v24, %v1466_v25 }
 0x150   :  { %v1076_v30 = vrot.slane %v1062_v27, %v1832_v4 }
 0x152   :  { %v1077_v31 = vcombine.low %v1069_v29, %v1076_v30 }
 0x154   :  { %v1084_v33 = vrot.slane %v1077_v31, %v1832_v4 }
 0x156   :  { %v1086_v34 = vmul.f32 %v1084_v33, %v975_v32 }
 0x158   :  { %v1091_v35 = vrot.slane %v1086_v34, %v1839_v13  ;;  %v1095_v36 = vrot.slane %v1086_v34, %v1842_v15  ;;  %v1099_v39 = vrot.slane %v1086_v34, %v1844_v16  ;;  %v1103_v26 = vrot.slane %v1086_v34, %v1846_v17 }
 0x15a   :  { %v1108_v37 = vmul.f32 %v1091_v35, %v1029_v28  ;;  %v1109_v43 = vmul.f32 %v1095_v36, %v1030_v55  ;;  %v1110_v41 = vmul.f32 %v1099_v39, %v1031_v38  ;;  %v1111_v42 = vmul.f32 %v1103_v26, %v1032_v2 }
 0x15b   :  { %v1142_v57 = vmul.f32 %v1091_v35, %v1862_v40  ;;  %v1143_v28 = vmul.f32 %v1095_v36, %v1873_v46  ;;  %v1144_v38 = vmul.f32 %v1099_v39, %v1864_v44  ;;  %v1145_v55 = vmul.f32 %v1103_v26, %v1875_v47 }
 0x15c   :  { %v1116_v45 = vcombine.low %v1108_v37, %v1109_v43  ;;  %v1117_v48 = vcombine.low %v1110_v41, %v1111_v42 }
 0x15e   :  { %v1124_v49 = vrot.slane %v1116_v45, %v1832_v4  ;;  %v1131_v50 = vrot.slane %v1117_v48, %v1832_v4 }
 0x160   :  { %v1132_v52 = vcombine.low %v1124_v49, %v1131_v50 }
 0x162   :  { %v1139_v54 = vrot.slane %v1132_v52, %v1832_v4 }
 0x164   :  { %v1141_v56 = vsub.f32 %v976_v53, %v1139_v54 }
 0x166   :  { %v1150_v59 = vrot.slane %v1141_v56, %v1839_v13  ;;  %v1154_v60 = vrot.slane %v1141_v56, %v1842_v15  ;;  %v1158_v61 = vrot.slane %v1141_v56, %v1844_v16  ;;  %v1162_v62 = vrot.slane %v1141_v56, %v1846_v17 }
 0x168   :  { %v1167_v63 = vadd.f32 %v1150_v59, %v1142_v57  ;;  %v1168_v1 = vadd.f32 %v1154_v60, %v1143_v28  ;;  %v1169_v4 = vadd.f32 %v1158_v61, %v1144_v38  ;;  %v1170_v2 = vadd.f32 %v1162_v62, %v1145_v55 }
 0x16a   :  { %v1171_v40 = vadd.f32 %v1167_v63, %v1887_v58  ;;  %v1172_v46 = vadd.f32 %v1168_v1, %v1889_v0  ;;  %v1173_v44 = vadd.f32 %v1169_v4, %v1892_v5  ;;  %v1174_v47 = vadd.f32 %v1170_v2, %v1880_v51 }
 0x16c   :  { %v1175_v3 = vmax.f32 %v1171_v40, 0.0  ;;  %v1176_v13 = vmax.f32 %v1172_v46, 0.0  ;;  %v1177_v6 = vmax.f32 %v1173_v44, 0.0  ;;  %v1178_v15 = vmax.f32 %v1174_v47, 0.0 }
 0x16e   :  { %v1301_v7 = vpack.c.bf16 %v1176_v13, %v1175_v3  ;;  %v1302_v16 = vpack.c.bf16 %v1178_v15, %v1177_v6 }
 0x170   :  { %1195 = vst [vmem:[%s1940_s8] sm:$0xff] %v1301_v7  ;;  %1196 = vst [vmem:[%s1940_s8 + $0x8] sm:$0xff] %v1302_v16 }

</bundles_post_ra>
